<compile_context>
chip_gen: v6e
topology: v6e:2x2x1
jax: 0.10.0
libtpu: 0.0.40
codegen_flags: <defaults>
</compile_context>

<pallas_src>
import functools

import jax
import jax.numpy as jnp
from jax import lax
from jax.experimental import pallas as pl
from jax.experimental.pallas import tpu as pltpu

# ----------------------------- configuration -----------------------------
BATCH = 2
IN_CHANS = 3
IMG = 16
PATCH = 4
EMBED_DIM = 32
DEPTH = 2
NUM_HEADS = 4
MLP_RATIO = 2
LN_EPS = 1e-5  # torch.nn.LayerNorm default

NUM_PATCHES = (IMG // PATCH) ** 2      # 16
SEQ = NUM_PATCHES + 1                  # 17 (CLS + patches)
PATCH_DIM = IN_CHANS * PATCH * PATCH   # 48
HEAD_DIM = EMBED_DIM // NUM_HEADS      # 8
MLP_DIM = EMBED_DIM * MLP_RATIO        # 64


# --------------------------- in-kernel helpers ----------------------------
def _mm(a, w):
    """MXU matmul: bf16 operands, f32 accumulation."""
    return jnp.dot(a.astype(jnp.bfloat16), w.astype(jnp.bfloat16),
                   preferred_element_type=jnp.float32)


def _mm_nt(a, b):
    """a @ b.T (contract last dims) with bf16 operands, f32 accumulation."""
    return lax.dot_general(a.astype(jnp.bfloat16), b.astype(jnp.bfloat16),
                           (((1,), (1,)), ((), ())),
                           preferred_element_type=jnp.float32)


def _layernorm(x, g, b, eps=LN_EPS):
    """Row-wise layernorm, statistics kept in f32."""
    x = x.astype(jnp.float32)
    mean = jnp.mean(x, axis=-1, keepdims=True)
    var = jnp.mean(jnp.square(x - mean), axis=-1, keepdims=True)
    xhat = (x - mean) * lax.rsqrt(var + eps)
    return xhat * g.astype(jnp.float32) + b.astype(jnp.float32)


# ------------------------- fused ViT forward kernel ------------------------
def _vit_kernel(patches_ref, wp_ref, bp_ref, cls_ref, pos_ref,
                ln1_g_ref, ln1_b_ref, wqkv_ref, bqkv_ref, wo_ref, bo_ref,
                ln2_g_ref, ln2_b_ref, w1_ref, b1_ref, w2_ref, b2_ref,
                lnf_g_ref, lnf_b_ref, out_ref):
    D = EMBED_DIM
    dh = HEAD_DIM
    scale = 1.0 / float(dh) ** 0.5

    # --- patch embedding + CLS token + positional embedding (all in VMEM) ---
    tok = _mm(patches_ref[...], wp_ref[...]) + bp_ref[...]            # (P, D)
    x = jnp.concatenate([cls_ref[...].astype(jnp.float32), tok], axis=0)
    x = x + pos_ref[...].astype(jnp.float32)                          # (SEQ, D) f32 residual

    # --- transformer blocks: depth unrolled, weights indexed statically ---
    for li in range(DEPTH):
        # ---------------- attention ----------------
        h = _layernorm(x, ln1_g_ref[li], ln1_b_ref[li])
        qkv = _mm(h, wqkv_ref[li]) + bqkv_ref[li]                     # (SEQ, 3D)
        heads = []
        for hh in range(NUM_HEADS):
            # head split done in-kernel on the VMEM-resident QKV slab
            q = qkv[:, hh * dh:(hh + 1) * dh]                         # (SEQ, dh)
            k = qkv[:, D + hh * dh:D + (hh + 1) * dh]
            v = qkv[:, 2 * D + hh * dh:2 * D + (hh + 1) * dh]
            s = _mm_nt(q, k) * scale                                  # (SEQ, SEQ)
            s = s - jnp.max(s, axis=-1, keepdims=True)
            p = jnp.exp(s)
            p = p * pl.reciprocal(jnp.sum(p, axis=-1, keepdims=True), approx=True)
            heads.append(_mm(p, v))                                   # (SEQ, dh)
        attn = jnp.concatenate(heads, axis=-1)                        # (SEQ, D)
        x = x + _mm(attn, wo_ref[li]) + bo_ref[li]                    # residual in-kernel

        # ---------------- MLP ----------------
        h2 = _layernorm(x, ln2_g_ref[li], ln2_b_ref[li])
        h2 = _mm(h2, w1_ref[li]) + b1_ref[li]
        # TODO(synk): torch.nn.GELU default is the exact erf form; tanh approx used here.
        h2 = jax.nn.gelu(h2, approximate=True)
        x = x + _mm(h2, w2_ref[li]) + b2_ref[li]                      # residual in-kernel

    # --- final layernorm on the CLS row only (1 row, not SEQ rows) ---
    cls_out = _layernorm(x[0:1, :], lnf_g_ref[...], lnf_b_ref[...])
    out_ref[...] = cls_out.astype(out_ref.dtype)


# ------------------------------- forward -----------------------------------
def vit_forward(params, x):
    """x: (B, C, H, W) NCHW float32 -> (B, EMBED_DIM) CLS feature embeddings."""
    B, C, H, W = x.shape
    p = PATCH
    nh, nw = H // p, W // p

    # Patchify (conv(kernel=stride=patch) == patchify + matmul). Tiny one-time
    # layout plumbing of the 6 KB input, kept in the XLA wrapper.
    patches = (
        x.reshape(B, C, nh, p, nw, p)
        .transpose(0, 2, 4, 1, 3, 5)
        .reshape(B, nh * nw, C * p * p)
    )

    blk = params["blocks"]
    D, Dm = EMBED_DIM, MLP_DIM

    out = pl.pallas_call(
        _vit_kernel,
        out_shape=jax.ShapeDtypeStruct((B, 1, D), jnp.float32),
        grid=(B,),
        in_specs=[
            pl.BlockSpec((None, NUM_PATCHES, PATCH_DIM), lambda b: (b, 0, 0)),
            pl.BlockSpec((PATCH_DIM, D), lambda b: (0, 0)),              # wp
            pl.BlockSpec((1, D), lambda b: (0, 0)),                      # bp
            pl.BlockSpec((1, D), lambda b: (0, 0)),                      # cls
            pl.BlockSpec((SEQ, D), lambda b: (0, 0)),                    # pos
            pl.BlockSpec((DEPTH, 1, D), lambda b: (0, 0, 0)),            # ln1_g
            pl.BlockSpec((DEPTH, 1, D), lambda b: (0, 0, 0)),            # ln1_b
            pl.BlockSpec((DEPTH, D, 3 * D), lambda b: (0, 0, 0)),        # wqkv
            pl.BlockSpec((DEPTH, 1, 3 * D), lambda b: (0, 0, 0)),        # bqkv
            pl.BlockSpec((DEPTH, D, D), lambda b: (0, 0, 0)),            # wo
            pl.BlockSpec((DEPTH, 1, D), lambda b: (0, 0, 0)),            # bo
            pl.BlockSpec((DEPTH, 1, D), lambda b: (0, 0, 0)),            # ln2_g
            pl.BlockSpec((DEPTH, 1, D), lambda b: (0, 0, 0)),            # ln2_b
            pl.BlockSpec((DEPTH, D, Dm), lambda b: (0, 0, 0)),           # w1
            pl.BlockSpec((DEPTH, 1, Dm), lambda b: (0, 0, 0)),           # b1
            pl.BlockSpec((DEPTH, Dm, D), lambda b: (0, 0, 0)),           # w2
            pl.BlockSpec((DEPTH, 1, D), lambda b: (0, 0, 0)),            # b2
            pl.BlockSpec((1, D), lambda b: (0, 0)),                      # lnf_g
            pl.BlockSpec((1, D), lambda b: (0, 0)),                      # lnf_b
        ],
        out_specs=pl.BlockSpec((None, 1, D), lambda b: (b, 0, 0)),
        compiler_params=pltpu.CompilerParams(
            dimension_semantics=("parallel",)),  # v7x: shard batch over 2 TCs
    )(
        patches,
        params["wp"], params["bp"], params["cls"], params["pos"],
        blk["ln1_g"], blk["ln1_b"], blk["wqkv"], blk["bqkv"],
        blk["wo"], blk["bo"], blk["ln2_g"], blk["ln2_b"],
        blk["w1"], blk["b1"], blk["w2"], blk["b2"],
        params["lnf_g"], params["lnf_b"],
    )
    return out.reshape(B, D)


def get_margins(params):
    return params["m1"], params["m2"]


# ------------------------------ parameters --------------------------------
def init_params(key):
    D, Dm = EMBED_DIM, MLP_DIM

    def nrm(k, shape, std=0.02):
        return (std * jax.random.normal(k, shape)).astype(jnp.float32)

    keys = jax.random.split(key, 4)
    params = {
        "wp": nrm(keys[0], (PATCH_DIM, D)),
        "bp": jnp.zeros((1, D), jnp.float32),
        "cls": nrm(keys[1], (1, D)),
        "pos": nrm(keys[2], (SEQ, D)),
        "lnf_g": jnp.ones((1, D), jnp.float32),
        "lnf_b": jnp.zeros((1, D), jnp.float32),
        # LearnableMargins(m1_init=0.0, m2_init=0.6)
        "m1": jnp.float32(0.0),
        "m2": jnp.float32(0.6),
    }
    bkeys = jax.random.split(keys[3], DEPTH * 4)
    params["blocks"] = {
        "ln1_g": jnp.ones((DEPTH, 1, D), jnp.float32),
        "ln1_b": jnp.zeros((DEPTH, 1, D), jnp.float32),
        "wqkv": jnp.stack([nrm(bkeys[4 * i + 0], (D, 3 * D)) for i in range(DEPTH)]),
        "bqkv": jnp.zeros((DEPTH, 1, 3 * D), jnp.float32),
        "wo": jnp.stack([nrm(bkeys[4 * i + 1], (D, D)) for i in range(DEPTH)]),
        "bo": jnp.zeros((DEPTH, 1, D), jnp.float32),
        "ln2_g": jnp.ones((DEPTH, 1, D), jnp.float32),
        "ln2_b": jnp.zeros((DEPTH, 1, D), jnp.float32),
        "w1": jnp.stack([nrm(bkeys[4 * i + 2], (D, Dm)) for i in range(DEPTH)]),
        "b1": jnp.zeros((DEPTH, 1, Dm), jnp.float32),
        "w2": jnp.stack([nrm(bkeys[4 * i + 3], (Dm, D)) for i in range(DEPTH)]),
        "b2": jnp.zeros((DEPTH, 1, D), jnp.float32),
    }
    return params


# --------------------------------- main ------------------------------------
if __name__ == "__main__":
    key = jax.random.PRNGKey(0)
    pkey, xkey = jax.random.split(key)
    params = init_params(pkey)
    x = jax.random.normal(xkey, (BATCH, IN_CHANS, IMG, IMG), dtype=jnp.float32)

    forward = jax.jit(vit_forward)
    feats = jax.block_until_ready(forward(params, x))
    m1, m2 = get_margins(params)

    assert feats.shape == (BATCH, EMBED_DIM), feats.shape
    assert feats.dtype == jnp.float32
    assert bool(jnp.all(jnp.isfinite(feats)))
    assert float(m1) == 0.0 and abs(float(m2) - 0.6) < 1e-6

    print("KERNEL_OK")
</pallas_src>

<mosaic_0001>
module attributes {stable_mosaic.version = 11 : i64} {
  func.func @_vit_kernel(%arg0: i32, %arg1: memref<1x16x48xf32, #tpu.memory_space<vmem>>, %arg2: memref<48x32xf32, #tpu.memory_space<vmem>>, %arg3: memref<1x32xf32, #tpu.memory_space<vmem>>, %arg4: memref<1x32xf32, #tpu.memory_space<vmem>>, %arg5: memref<17x32xf32, #tpu.memory_space<vmem>>, %arg6: memref<2x1x32xf32, #tpu.memory_space<vmem>>, %arg7: memref<2x1x32xf32, #tpu.memory_space<vmem>>, %arg8: memref<2x32x96xf32, #tpu.memory_space<vmem>>, %arg9: memref<2x1x96xf32, #tpu.memory_space<vmem>>, %arg10: memref<2x32x32xf32, #tpu.memory_space<vmem>>, %arg11: memref<2x1x32xf32, #tpu.memory_space<vmem>>, %arg12: memref<2x1x32xf32, #tpu.memory_space<vmem>>, %arg13: memref<2x1x32xf32, #tpu.memory_space<vmem>>, %arg14: memref<2x32x64xf32, #tpu.memory_space<vmem>>, %arg15: memref<2x1x64xf32, #tpu.memory_space<vmem>>, %arg16: memref<2x64x32xf32, #tpu.memory_space<vmem>>, %arg17: memref<2x1x32xf32, #tpu.memory_space<vmem>>, %arg18: memref<1x32xf32, #tpu.memory_space<vmem>>, %arg19: memref<1x32xf32, #tpu.memory_space<vmem>>, %arg20: memref<1x1x32xf32, #tpu.memory_space<vmem>>) attributes {dimension_semantics = [#tpu.dimension_semantics<parallel>], iteration_bounds = array<i64: 2>, scalar_prefetch = 0 : i64, scratch_operands = 0 : i64, tpu.core_type = #tpu.core_type<tc>, window_params = [{transform_indices = @transform_0, window_bounds = array<i64: 1, 16, 48>}, {pipeline_mode = #tpu.pipeline_mode<synchronous>, transform_indices = @transform_1, window_bounds = array<i64: 48, 32>}, {pipeline_mode = #tpu.pipeline_mode<synchronous>, transform_indices = @transform_2, window_bounds = array<i64: 1, 32>}, {pipeline_mode = #tpu.pipeline_mode<synchronous>, transform_indices = @transform_3, window_bounds = array<i64: 1, 32>}, {pipeline_mode = #tpu.pipeline_mode<synchronous>, transform_indices = @transform_4, window_bounds = array<i64: 17, 32>}, {pipeline_mode = #tpu.pipeline_mode<synchronous>, transform_indices = @transform_5, window_bounds = array<i64: 2, 1, 32>}, {pipeline_mode = #tpu.pipeline_mode<synchronous>, transform_indices = @transform_6, window_bounds = array<i64: 2, 1, 32>}, {pipeline_mode = #tpu.pipeline_mode<synchronous>, transform_indices = @transform_7, window_bounds = array<i64: 2, 32, 96>}, {pipeline_mode = #tpu.pipeline_mode<synchronous>, transform_indices = @transform_8, window_bounds = array<i64: 2, 1, 96>}, {pipeline_mode = #tpu.pipeline_mode<synchronous>, transform_indices = @transform_9, window_bounds = array<i64: 2, 32, 32>}, {pipeline_mode = #tpu.pipeline_mode<synchronous>, transform_indices = @transform_10, window_bounds = array<i64: 2, 1, 32>}, {pipeline_mode = #tpu.pipeline_mode<synchronous>, transform_indices = @transform_11, window_bounds = array<i64: 2, 1, 32>}, {pipeline_mode = #tpu.pipeline_mode<synchronous>, transform_indices = @transform_12, window_bounds = array<i64: 2, 1, 32>}, {pipeline_mode = #tpu.pipeline_mode<synchronous>, transform_indices = @transform_13, window_bounds = array<i64: 2, 32, 64>}, {pipeline_mode = #tpu.pipeline_mode<synchronous>, transform_indices = @transform_14, window_bounds = array<i64: 2, 1, 64>}, {pipeline_mode = #tpu.pipeline_mode<synchronous>, transform_indices = @transform_15, window_bounds = array<i64: 2, 64, 32>}, {pipeline_mode = #tpu.pipeline_mode<synchronous>, transform_indices = @transform_16, window_bounds = array<i64: 2, 1, 32>}, {pipeline_mode = #tpu.pipeline_mode<synchronous>, transform_indices = @transform_17, window_bounds = array<i64: 1, 32>}, {pipeline_mode = #tpu.pipeline_mode<synchronous>, transform_indices = @transform_18, window_bounds = array<i64: 1, 32>}, {transform_indices = @transform_19, window_bounds = array<i64: 1, 1, 32>}]} {
    %c0 = arith.constant 0 : index
    %c0_0 = arith.constant 0 : index
    %c0_1 = arith.constant 0 : index
    %0 = vector.load %arg1[%c0, %c0_0, %c0_1] : memref<1x16x48xf32, #tpu.memory_space<vmem>>, vector<1x16x48xf32>
    %1 = vector.shape_cast %0 : vector<1x16x48xf32> to vector<16x48xf32>
    %c0_2 = arith.constant 0 : index
    %c0_3 = arith.constant 0 : index
    %2 = vector.load %arg2[%c0_2, %c0_3] : memref<48x32xf32, #tpu.memory_space<vmem>>, vector<48x32xf32>
    %3 = arith.truncf %1 : vector<16x48xf32> to vector<16x48xbf16>
    %4 = arith.truncf %2 : vector<48x32xf32> to vector<48x32xbf16>
    %cst = arith.constant dense<0.000000e+00> : vector<16x32xf32>
    %5 = tpu.matmul %3, %4, %cst {dimension_numbers = #tpu.dot_dimension_numbers<[1], [0], [0], [1], [0, 0, 1, 1], [], []>} : vector<16x48xbf16>, vector<48x32xbf16>, vector<16x32xf32> -> vector<16x32xf32>
    %c0_4 = arith.constant 0 : index
    %c0_5 = arith.constant 0 : index
    %6 = vector.load %arg3[%c0_4, %c0_5] : memref<1x32xf32, #tpu.memory_space<vmem>>, vector<1x32xf32>
    %7 = vector.broadcast %6 : vector<1x32xf32> to vector<16x32xf32>
    %8 = arith.addf %5, %7 : vector<16x32xf32>
    %c0_6 = arith.constant 0 : index
    %c0_7 = arith.constant 0 : index
    %9 = vector.load %arg4[%c0_6, %c0_7] : memref<1x32xf32, #tpu.memory_space<vmem>>, vector<1x32xf32>
    %10 = tpu.concatenate %9, %8 in 0 : vector<1x32xf32>, vector<16x32xf32> -> vector<17x32xf32>
    %c0_8 = arith.constant 0 : index
    %c0_9 = arith.constant 0 : index
    %11 = vector.load %arg5[%c0_8, %c0_9] : memref<17x32xf32, #tpu.memory_space<vmem>>, vector<17x32xf32>
    %12 = arith.addf %10, %11 : vector<17x32xf32>
    %c0_10 = arith.constant 0 : index
    %c0_11 = arith.constant 0 : index
    %c0_12 = arith.constant 0 : index
    %13 = vector.load %arg6[%c0_10, %c0_11, %c0_12] : memref<2x1x32xf32, #tpu.memory_space<vmem>>, vector<1x1x32xf32>
    %14 = vector.shape_cast %13 : vector<1x1x32xf32> to vector<1x32xf32>
    %c0_13 = arith.constant 0 : index
    %c0_14 = arith.constant 0 : index
    %c0_15 = arith.constant 0 : index
    %15 = vector.load %arg7[%c0_13, %c0_14, %c0_15] : memref<2x1x32xf32, #tpu.memory_space<vmem>>, vector<1x1x32xf32>
    %16 = vector.shape_cast %15 : vector<1x1x32xf32> to vector<1x32xf32>
    %cst_16 = arith.constant dense<0.000000e+00> : vector<17xf32>
    %17 = vector.multi_reduction <add>, %12, %cst_16 [1] : vector<17x32xf32> to vector<17xf32>
    %18 = vector.shape_cast %17 : vector<17xf32> to vector<17x1xf32>
    %cst_17 = arith.constant 3.200000e+01 : f32
    %19 = vector.broadcast %cst_17 : f32 to vector<17x1xf32>
    %20 = arith.divf %18, %19 : vector<17x1xf32>
    %21 = vector.broadcast %20 : vector<17x1xf32> to vector<17x32xf32>
    %22 = arith.subf %12, %21 : vector<17x32xf32>
    %23 = arith.mulf %22, %22 : vector<17x32xf32>
    %cst_18 = arith.constant dense<0.000000e+00> : vector<17xf32>
    %24 = vector.multi_reduction <add>, %23, %cst_18 [1] : vector<17x32xf32> to vector<17xf32>
    %25 = vector.shape_cast %24 : vector<17xf32> to vector<17x1xf32>
    %cst_19 = arith.constant 3.200000e+01 : f32
    %26 = vector.broadcast %cst_19 : f32 to vector<17x1xf32>
    %27 = arith.divf %25, %26 : vector<17x1xf32>
    %28 = vector.broadcast %20 : vector<17x1xf32> to vector<17x32xf32>
    %29 = arith.subf %12, %28 : vector<17x32xf32>
    %cst_20 = arith.constant 9.99999974E-6 : f32
    %30 = vector.broadcast %cst_20 : f32 to vector<17x1xf32>
    %31 = arith.addf %27, %30 : vector<17x1xf32>
    %32 = math.rsqrt %31 : vector<17x1xf32>
    %33 = vector.broadcast %32 : vector<17x1xf32> to vector<17x32xf32>
    %34 = arith.mulf %29, %33 : vector<17x32xf32>
    %35 = vector.broadcast %14 : vector<1x32xf32> to vector<17x32xf32>
    %36 = arith.mulf %34, %35 : vector<17x32xf32>
    %37 = vector.broadcast %16 : vector<1x32xf32> to vector<17x32xf32>
    %38 = arith.addf %36, %37 : vector<17x32xf32>
    %c0_21 = arith.constant 0 : index
    %c0_22 = arith.constant 0 : index
    %c0_23 = arith.constant 0 : index
    %39 = vector.load %arg8[%c0_21, %c0_22, %c0_23] : memref<2x32x96xf32, #tpu.memory_space<vmem>>, vector<1x32x96xf32>
    %40 = vector.shape_cast %39 : vector<1x32x96xf32> to vector<32x96xf32>
    %41 = arith.truncf %38 : vector<17x32xf32> to vector<17x32xbf16>
    %42 = arith.truncf %40 : vector<32x96xf32> to vector<32x96xbf16>
    %cst_24 = arith.constant dense<0.000000e+00> : vector<17x96xf32>
    %43 = tpu.matmul %41, %42, %cst_24 {dimension_numbers = #tpu.dot_dimension_numbers<[1], [0], [0], [1], [0, 0, 1, 1], [], []>} : vector<17x32xbf16>, vector<32x96xbf16>, vector<17x96xf32> -> vector<17x96xf32>
    %c0_25 = arith.constant 0 : index
    %c0_26 = arith.constant 0 : index
    %c0_27 = arith.constant 0 : index
    %44 = vector.load %arg9[%c0_25, %c0_26, %c0_27] : memref<2x1x96xf32, #tpu.memory_space<vmem>>, vector<1x1x96xf32>
    %45 = vector.shape_cast %44 : vector<1x1x96xf32> to vector<1x96xf32>
    %46 = vector.broadcast %45 : vector<1x96xf32> to vector<17x96xf32>
    %47 = arith.addf %43, %46 : vector<17x96xf32>
    %48 = vector.extract_strided_slice %47 {offsets = [0, 0], sizes = [17, 8], strides = [1, 1]} : vector<17x96xf32> to vector<17x8xf32>
    %49 = vector.extract_strided_slice %47 {offsets = [0, 32], sizes = [17, 8], strides = [1, 1]} : vector<17x96xf32> to vector<17x8xf32>
    %50 = vector.extract_strided_slice %47 {offsets = [0, 64], sizes = [17, 8], strides = [1, 1]} : vector<17x96xf32> to vector<17x8xf32>
    %51 = arith.truncf %48 : vector<17x8xf32> to vector<17x8xbf16>
    %52 = arith.truncf %49 : vector<17x8xf32> to vector<17x8xbf16>
    %cst_28 = arith.constant dense<0.000000e+00> : vector<17x17xf32>
    %53 = tpu.matmul %51, %52, %cst_28 {dimension_numbers = #tpu.dot_dimension_numbers<[1], [1], [0], [0], [0, 0, 1, 0], [], []>} : vector<17x8xbf16>, vector<17x8xbf16>, vector<17x17xf32> -> vector<17x17xf32>
    %cst_29 = arith.constant 0.353553385 : f32
    %54 = vector.broadcast %cst_29 : f32 to vector<17x17xf32>
    %55 = arith.mulf %53, %54 : vector<17x17xf32>
    %cst_30 = arith.constant dense<0xFF800000> : vector<17xf32>
    %56 = vector.multi_reduction <maximumf>, %55, %cst_30 [1] : vector<17x17xf32> to vector<17xf32>
    %57 = vector.shape_cast %56 : vector<17xf32> to vector<17x1xf32>
    %58 = vector.broadcast %57 : vector<17x1xf32> to vector<17x17xf32>
    %59 = arith.subf %55, %58 : vector<17x17xf32>
    %60 = math.exp %59 : vector<17x17xf32>
    %cst_31 = arith.constant dense<0.000000e+00> : vector<17xf32>
    %61 = vector.multi_reduction <add>, %60, %cst_31 [1] : vector<17x17xf32> to vector<17xf32>
    %62 = vector.shape_cast %61 : vector<17xf32> to vector<17x1xf32>
    %63 = tpu.reciprocal %62 {approx = true} : vector<17x1xf32> -> vector<17x1xf32>
    %64 = vector.broadcast %63 : vector<17x1xf32> to vector<17x17xf32>
    %65 = arith.mulf %60, %64 : vector<17x17xf32>
    %66 = arith.truncf %65 : vector<17x17xf32> to vector<17x17xbf16>
    %67 = arith.truncf %50 : vector<17x8xf32> to vector<17x8xbf16>
    %cst_32 = arith.constant dense<0.000000e+00> : vector<17x8xf32>
    %68 = tpu.matmul %66, %67, %cst_32 {dimension_numbers = #tpu.dot_dimension_numbers<[1], [0], [0], [1], [0, 0, 1, 1], [], []>} : vector<17x17xbf16>, vector<17x8xbf16>, vector<17x8xf32> -> vector<17x8xf32>
    %69 = vector.extract_strided_slice %47 {offsets = [0, 8], sizes = [17, 8], strides = [1, 1]} : vector<17x96xf32> to vector<17x8xf32>
    %70 = vector.extract_strided_slice %47 {offsets = [0, 40], sizes = [17, 8], strides = [1, 1]} : vector<17x96xf32> to vector<17x8xf32>
    %71 = vector.extract_strided_slice %47 {offsets = [0, 72], sizes = [17, 8], strides = [1, 1]} : vector<17x96xf32> to vector<17x8xf32>
    %72 = arith.truncf %69 : vector<17x8xf32> to vector<17x8xbf16>
    %73 = arith.truncf %70 : vector<17x8xf32> to vector<17x8xbf16>
    %cst_33 = arith.constant dense<0.000000e+00> : vector<17x17xf32>
    %74 = tpu.matmul %72, %73, %cst_33 {dimension_numbers = #tpu.dot_dimension_numbers<[1], [1], [0], [0], [0, 0, 1, 0], [], []>} : vector<17x8xbf16>, vector<17x8xbf16>, vector<17x17xf32> -> vector<17x17xf32>
    %cst_34 = arith.constant 0.353553385 : f32
    %75 = vector.broadcast %cst_34 : f32 to vector<17x17xf32>
    %76 = arith.mulf %74, %75 : vector<17x17xf32>
    %cst_35 = arith.constant dense<0xFF800000> : vector<17xf32>
    %77 = vector.multi_reduction <maximumf>, %76, %cst_35 [1] : vector<17x17xf32> to vector<17xf32>
    %78 = vector.shape_cast %77 : vector<17xf32> to vector<17x1xf32>
    %79 = vector.broadcast %78 : vector<17x1xf32> to vector<17x17xf32>
    %80 = arith.subf %76, %79 : vector<17x17xf32>
    %81 = math.exp %80 : vector<17x17xf32>
    %cst_36 = arith.constant dense<0.000000e+00> : vector<17xf32>
    %82 = vector.multi_reduction <add>, %81, %cst_36 [1] : vector<17x17xf32> to vector<17xf32>
    %83 = vector.shape_cast %82 : vector<17xf32> to vector<17x1xf32>
    %84 = tpu.reciprocal %83 {approx = true} : vector<17x1xf32> -> vector<17x1xf32>
    %85 = vector.broadcast %84 : vector<17x1xf32> to vector<17x17xf32>
    %86 = arith.mulf %81, %85 : vector<17x17xf32>
    %87 = arith.truncf %86 : vector<17x17xf32> to vector<17x17xbf16>
    %88 = arith.truncf %71 : vector<17x8xf32> to vector<17x8xbf16>
    %cst_37 = arith.constant dense<0.000000e+00> : vector<17x8xf32>
    %89 = tpu.matmul %87, %88, %cst_37 {dimension_numbers = #tpu.dot_dimension_numbers<[1], [0], [0], [1], [0, 0, 1, 1], [], []>} : vector<17x17xbf16>, vector<17x8xbf16>, vector<17x8xf32> -> vector<17x8xf32>
    %90 = vector.extract_strided_slice %47 {offsets = [0, 16], sizes = [17, 8], strides = [1, 1]} : vector<17x96xf32> to vector<17x8xf32>
    %91 = vector.extract_strided_slice %47 {offsets = [0, 48], sizes = [17, 8], strides = [1, 1]} : vector<17x96xf32> to vector<17x8xf32>
    %92 = vector.extract_strided_slice %47 {offsets = [0, 80], sizes = [17, 8], strides = [1, 1]} : vector<17x96xf32> to vector<17x8xf32>
    %93 = arith.truncf %90 : vector<17x8xf32> to vector<17x8xbf16>
    %94 = arith.truncf %91 : vector<17x8xf32> to vector<17x8xbf16>
    %cst_38 = arith.constant dense<0.000000e+00> : vector<17x17xf32>
    %95 = tpu.matmul %93, %94, %cst_38 {dimension_numbers = #tpu.dot_dimension_numbers<[1], [1], [0], [0], [0, 0, 1, 0], [], []>} : vector<17x8xbf16>, vector<17x8xbf16>, vector<17x17xf32> -> vector<17x17xf32>
    %cst_39 = arith.constant 0.353553385 : f32
    %96 = vector.broadcast %cst_39 : f32 to vector<17x17xf32>
    %97 = arith.mulf %95, %96 : vector<17x17xf32>
    %cst_40 = arith.constant dense<0xFF800000> : vector<17xf32>
    %98 = vector.multi_reduction <maximumf>, %97, %cst_40 [1] : vector<17x17xf32> to vector<17xf32>
    %99 = vector.shape_cast %98 : vector<17xf32> to vector<17x1xf32>
    %100 = vector.broadcast %99 : vector<17x1xf32> to vector<17x17xf32>
    %101 = arith.subf %97, %100 : vector<17x17xf32>
    %102 = math.exp %101 : vector<17x17xf32>
    %cst_41 = arith.constant dense<0.000000e+00> : vector<17xf32>
    %103 = vector.multi_reduction <add>, %102, %cst_41 [1] : vector<17x17xf32> to vector<17xf32>
    %104 = vector.shape_cast %103 : vector<17xf32> to vector<17x1xf32>
    %105 = tpu.reciprocal %104 {approx = true} : vector<17x1xf32> -> vector<17x1xf32>
    %106 = vector.broadcast %105 : vector<17x1xf32> to vector<17x17xf32>
    %107 = arith.mulf %102, %106 : vector<17x17xf32>
    %108 = arith.truncf %107 : vector<17x17xf32> to vector<17x17xbf16>
    %109 = arith.truncf %92 : vector<17x8xf32> to vector<17x8xbf16>
    %cst_42 = arith.constant dense<0.000000e+00> : vector<17x8xf32>
    %110 = tpu.matmul %108, %109, %cst_42 {dimension_numbers = #tpu.dot_dimension_numbers<[1], [0], [0], [1], [0, 0, 1, 1], [], []>} : vector<17x17xbf16>, vector<17x8xbf16>, vector<17x8xf32> -> vector<17x8xf32>
    %111 = vector.extract_strided_slice %47 {offsets = [0, 24], sizes = [17, 8], strides = [1, 1]} : vector<17x96xf32> to vector<17x8xf32>
    %112 = vector.extract_strided_slice %47 {offsets = [0, 56], sizes = [17, 8], strides = [1, 1]} : vector<17x96xf32> to vector<17x8xf32>
    %113 = vector.extract_strided_slice %47 {offsets = [0, 88], sizes = [17, 8], strides = [1, 1]} : vector<17x96xf32> to vector<17x8xf32>
    %114 = arith.truncf %111 : vector<17x8xf32> to vector<17x8xbf16>
    %115 = arith.truncf %112 : vector<17x8xf32> to vector<17x8xbf16>
    %cst_43 = arith.constant dense<0.000000e+00> : vector<17x17xf32>
    %116 = tpu.matmul %114, %115, %cst_43 {dimension_numbers = #tpu.dot_dimension_numbers<[1], [1], [0], [0], [0, 0, 1, 0], [], []>} : vector<17x8xbf16>, vector<17x8xbf16>, vector<17x17xf32> -> vector<17x17xf32>
    %cst_44 = arith.constant 0.353553385 : f32
    %117 = vector.broadcast %cst_44 : f32 to vector<17x17xf32>
    %118 = arith.mulf %116, %117 : vector<17x17xf32>
    %cst_45 = arith.constant dense<0xFF800000> : vector<17xf32>
    %119 = vector.multi_reduction <maximumf>, %118, %cst_45 [1] : vector<17x17xf32> to vector<17xf32>
    %120 = vector.shape_cast %119 : vector<17xf32> to vector<17x1xf32>
    %121 = vector.broadcast %120 : vector<17x1xf32> to vector<17x17xf32>
    %122 = arith.subf %118, %121 : vector<17x17xf32>
    %123 = math.exp %122 : vector<17x17xf32>
    %cst_46 = arith.constant dense<0.000000e+00> : vector<17xf32>
    %124 = vector.multi_reduction <add>, %123, %cst_46 [1] : vector<17x17xf32> to vector<17xf32>
    %125 = vector.shape_cast %124 : vector<17xf32> to vector<17x1xf32>
    %126 = tpu.reciprocal %125 {approx = true} : vector<17x1xf32> -> vector<17x1xf32>
    %127 = vector.broadcast %126 : vector<17x1xf32> to vector<17x17xf32>
    %128 = arith.mulf %123, %127 : vector<17x17xf32>
    %129 = arith.truncf %128 : vector<17x17xf32> to vector<17x17xbf16>
    %130 = arith.truncf %113 : vector<17x8xf32> to vector<17x8xbf16>
    %cst_47 = arith.constant dense<0.000000e+00> : vector<17x8xf32>
    %131 = tpu.matmul %129, %130, %cst_47 {dimension_numbers = #tpu.dot_dimension_numbers<[1], [0], [0], [1], [0, 0, 1, 1], [], []>} : vector<17x17xbf16>, vector<17x8xbf16>, vector<17x8xf32> -> vector<17x8xf32>
    %132 = tpu.concatenate %68, %89, %110, %131 in 1 : vector<17x8xf32>, vector<17x8xf32>, vector<17x8xf32>, vector<17x8xf32> -> vector<17x32xf32>
    %c0_48 = arith.constant 0 : index
    %c0_49 = arith.constant 0 : index
    %c0_50 = arith.constant 0 : index
    %133 = vector.load %arg10[%c0_48, %c0_49, %c0_50] : memref<2x32x32xf32, #tpu.memory_space<vmem>>, vector<1x32x32xf32>
    %134 = vector.shape_cast %133 : vector<1x32x32xf32> to vector<32x32xf32>
    %135 = arith.truncf %132 : vector<17x32xf32> to vector<17x32xbf16>
    %136 = arith.truncf %134 : vector<32x32xf32> to vector<32x32xbf16>
    %cst_51 = arith.constant dense<0.000000e+00> : vector<17x32xf32>
    %137 = tpu.matmul %135, %136, %cst_51 {dimension_numbers = #tpu.dot_dimension_numbers<[1], [0], [0], [1], [0, 0, 1, 1], [], []>} : vector<17x32xbf16>, vector<32x32xbf16>, vector<17x32xf32> -> vector<17x32xf32>
    %138 = arith.addf %12, %137 : vector<17x32xf32>
    %c0_52 = arith.constant 0 : index
    %c0_53 = arith.constant 0 : index
    %c0_54 = arith.constant 0 : index
    %139 = vector.load %arg11[%c0_52, %c0_53, %c0_54] : memref<2x1x32xf32, #tpu.memory_space<vmem>>, vector<1x1x32xf32>
    %140 = vector.shape_cast %139 : vector<1x1x32xf32> to vector<1x32xf32>
    %141 = vector.broadcast %140 : vector<1x32xf32> to vector<17x32xf32>
    %142 = arith.addf %138, %141 : vector<17x32xf32>
    %c0_55 = arith.constant 0 : index
    %c0_56 = arith.constant 0 : index
    %c0_57 = arith.constant 0 : index
    %143 = vector.load %arg12[%c0_55, %c0_56, %c0_57] : memref<2x1x32xf32, #tpu.memory_space<vmem>>, vector<1x1x32xf32>
    %144 = vector.shape_cast %143 : vector<1x1x32xf32> to vector<1x32xf32>
    %c0_58 = arith.constant 0 : index
    %c0_59 = arith.constant 0 : index
    %c0_60 = arith.constant 0 : index
    %145 = vector.load %arg13[%c0_58, %c0_59, %c0_60] : memref<2x1x32xf32, #tpu.memory_space<vmem>>, vector<1x1x32xf32>
    %146 = vector.shape_cast %145 : vector<1x1x32xf32> to vector<1x32xf32>
    %cst_61 = arith.constant dense<0.000000e+00> : vector<17xf32>
    %147 = vector.multi_reduction <add>, %142, %cst_61 [1] : vector<17x32xf32> to vector<17xf32>
    %148 = vector.shape_cast %147 : vector<17xf32> to vector<17x1xf32>
    %cst_62 = arith.constant 3.200000e+01 : f32
    %149 = vector.broadcast %cst_62 : f32 to vector<17x1xf32>
    %150 = arith.divf %148, %149 : vector<17x1xf32>
    %151 = vector.broadcast %150 : vector<17x1xf32> to vector<17x32xf32>
    %152 = arith.subf %142, %151 : vector<17x32xf32>
    %153 = arith.mulf %152, %152 : vector<17x32xf32>
    %cst_63 = arith.constant dense<0.000000e+00> : vector<17xf32>
    %154 = vector.multi_reduction <add>, %153, %cst_63 [1] : vector<17x32xf32> to vector<17xf32>
    %155 = vector.shape_cast %154 : vector<17xf32> to vector<17x1xf32>
    %cst_64 = arith.constant 3.200000e+01 : f32
    %156 = vector.broadcast %cst_64 : f32 to vector<17x1xf32>
    %157 = arith.divf %155, %156 : vector<17x1xf32>
    %158 = vector.broadcast %150 : vector<17x1xf32> to vector<17x32xf32>
    %159 = arith.subf %142, %158 : vector<17x32xf32>
    %cst_65 = arith.constant 9.99999974E-6 : f32
    %160 = vector.broadcast %cst_65 : f32 to vector<17x1xf32>
    %161 = arith.addf %157, %160 : vector<17x1xf32>
    %162 = math.rsqrt %161 : vector<17x1xf32>
    %163 = vector.broadcast %162 : vector<17x1xf32> to vector<17x32xf32>
    %164 = arith.mulf %159, %163 : vector<17x32xf32>
    %165 = vector.broadcast %144 : vector<1x32xf32> to vector<17x32xf32>
    %166 = arith.mulf %164, %165 : vector<17x32xf32>
    %167 = vector.broadcast %146 : vector<1x32xf32> to vector<17x32xf32>
    %168 = arith.addf %166, %167 : vector<17x32xf32>
    %c0_66 = arith.constant 0 : index
    %c0_67 = arith.constant 0 : index
    %c0_68 = arith.constant 0 : index
    %169 = vector.load %arg14[%c0_66, %c0_67, %c0_68] : memref<2x32x64xf32, #tpu.memory_space<vmem>>, vector<1x32x64xf32>
    %170 = vector.shape_cast %169 : vector<1x32x64xf32> to vector<32x64xf32>
    %171 = arith.truncf %168 : vector<17x32xf32> to vector<17x32xbf16>
    %172 = arith.truncf %170 : vector<32x64xf32> to vector<32x64xbf16>
    %cst_69 = arith.constant dense<0.000000e+00> : vector<17x64xf32>
    %173 = tpu.matmul %171, %172, %cst_69 {dimension_numbers = #tpu.dot_dimension_numbers<[1], [0], [0], [1], [0, 0, 1, 1], [], []>} : vector<17x32xbf16>, vector<32x64xbf16>, vector<17x64xf32> -> vector<17x64xf32>
    %c0_70 = arith.constant 0 : index
    %c0_71 = arith.constant 0 : index
    %c0_72 = arith.constant 0 : index
    %174 = vector.load %arg15[%c0_70, %c0_71, %c0_72] : memref<2x1x64xf32, #tpu.memory_space<vmem>>, vector<1x1x64xf32>
    %175 = vector.shape_cast %174 : vector<1x1x64xf32> to vector<1x64xf32>
    %176 = vector.broadcast %175 : vector<1x64xf32> to vector<17x64xf32>
    %177 = arith.addf %173, %176 : vector<17x64xf32>
    %178 = arith.mulf %177, %177 : vector<17x64xf32>
    %179 = arith.mulf %177, %178 : vector<17x64xf32>
    %cst_73 = arith.constant 4.471500e-02 : f32
    %180 = vector.broadcast %cst_73 : f32 to vector<17x64xf32>
    %181 = arith.mulf %180, %179 : vector<17x64xf32>
    %182 = arith.addf %177, %181 : vector<17x64xf32>
    %cst_74 = arith.constant 0.797884583 : f32
    %183 = vector.broadcast %cst_74 : f32 to vector<17x64xf32>
    %184 = arith.mulf %183, %182 : vector<17x64xf32>
    %185 = math.tanh %184 : vector<17x64xf32>
    %cst_75 = arith.constant 1.000000e+00 : f32
    %186 = vector.broadcast %cst_75 : f32 to vector<17x64xf32>
    %187 = arith.addf %186, %185 : vector<17x64xf32>
    %cst_76 = arith.constant 5.000000e-01 : f32
    %188 = vector.broadcast %cst_76 : f32 to vector<17x64xf32>
    %189 = arith.mulf %188, %187 : vector<17x64xf32>
    %190 = arith.mulf %177, %189 : vector<17x64xf32>
    %c0_77 = arith.constant 0 : index
    %c0_78 = arith.constant 0 : index
    %c0_79 = arith.constant 0 : index
    %191 = vector.load %arg16[%c0_77, %c0_78, %c0_79] : memref<2x64x32xf32, #tpu.memory_space<vmem>>, vector<1x64x32xf32>
    %192 = vector.shape_cast %191 : vector<1x64x32xf32> to vector<64x32xf32>
    %193 = arith.truncf %190 : vector<17x64xf32> to vector<17x64xbf16>
    %194 = arith.truncf %192 : vector<64x32xf32> to vector<64x32xbf16>
    %cst_80 = arith.constant dense<0.000000e+00> : vector<17x32xf32>
    %195 = tpu.matmul %193, %194, %cst_80 {dimension_numbers = #tpu.dot_dimension_numbers<[1], [0], [0], [1], [0, 0, 1, 1], [], []>} : vector<17x64xbf16>, vector<64x32xbf16>, vector<17x32xf32> -> vector<17x32xf32>
    %196 = arith.addf %142, %195 : vector<17x32xf32>
    %c0_81 = arith.constant 0 : index
    %c0_82 = arith.constant 0 : index
    %c0_83 = arith.constant 0 : index
    %197 = vector.load %arg17[%c0_81, %c0_82, %c0_83] : memref<2x1x32xf32, #tpu.memory_space<vmem>>, vector<1x1x32xf32>
    %198 = vector.shape_cast %197 : vector<1x1x32xf32> to vector<1x32xf32>
    %199 = vector.broadcast %198 : vector<1x32xf32> to vector<17x32xf32>
    %200 = arith.addf %196, %199 : vector<17x32xf32>
    %c1 = arith.constant 1 : index
    %c0_84 = arith.constant 0 : index
    %c0_85 = arith.constant 0 : index
    %201 = vector.load %arg6[%c1, %c0_84, %c0_85] : memref<2x1x32xf32, #tpu.memory_space<vmem>>, vector<1x1x32xf32>
    %202 = vector.shape_cast %201 : vector<1x1x32xf32> to vector<1x32xf32>
    %c1_86 = arith.constant 1 : index
    %c0_87 = arith.constant 0 : index
    %c0_88 = arith.constant 0 : index
    %203 = vector.load %arg7[%c1_86, %c0_87, %c0_88] : memref<2x1x32xf32, #tpu.memory_space<vmem>>, vector<1x1x32xf32>
    %204 = vector.shape_cast %203 : vector<1x1x32xf32> to vector<1x32xf32>
    %cst_89 = arith.constant dense<0.000000e+00> : vector<17xf32>
    %205 = vector.multi_reduction <add>, %200, %cst_89 [1] : vector<17x32xf32> to vector<17xf32>
    %206 = vector.shape_cast %205 : vector<17xf32> to vector<17x1xf32>
    %cst_90 = arith.constant 3.200000e+01 : f32
    %207 = vector.broadcast %cst_90 : f32 to vector<17x1xf32>
    %208 = arith.divf %206, %207 : vector<17x1xf32>
    %209 = vector.broadcast %208 : vector<17x1xf32> to vector<17x32xf32>
    %210 = arith.subf %200, %209 : vector<17x32xf32>
    %211 = arith.mulf %210, %210 : vector<17x32xf32>
    %cst_91 = arith.constant dense<0.000000e+00> : vector<17xf32>
    %212 = vector.multi_reduction <add>, %211, %cst_91 [1] : vector<17x32xf32> to vector<17xf32>
    %213 = vector.shape_cast %212 : vector<17xf32> to vector<17x1xf32>
    %cst_92 = arith.constant 3.200000e+01 : f32
    %214 = vector.broadcast %cst_92 : f32 to vector<17x1xf32>
    %215 = arith.divf %213, %214 : vector<17x1xf32>
    %216 = vector.broadcast %208 : vector<17x1xf32> to vector<17x32xf32>
    %217 = arith.subf %200, %216 : vector<17x32xf32>
    %cst_93 = arith.constant 9.99999974E-6 : f32
    %218 = vector.broadcast %cst_93 : f32 to vector<17x1xf32>
    %219 = arith.addf %215, %218 : vector<17x1xf32>
    %220 = math.rsqrt %219 : vector<17x1xf32>
    %221 = vector.broadcast %220 : vector<17x1xf32> to vector<17x32xf32>
    %222 = arith.mulf %217, %221 : vector<17x32xf32>
    %223 = vector.broadcast %202 : vector<1x32xf32> to vector<17x32xf32>
    %224 = arith.mulf %222, %223 : vector<17x32xf32>
    %225 = vector.broadcast %204 : vector<1x32xf32> to vector<17x32xf32>
    %226 = arith.addf %224, %225 : vector<17x32xf32>
    %c1_94 = arith.constant 1 : index
    %c0_95 = arith.constant 0 : index
    %c0_96 = arith.constant 0 : index
    %227 = vector.load %arg8[%c1_94, %c0_95, %c0_96] : memref<2x32x96xf32, #tpu.memory_space<vmem>>, vector<1x32x96xf32>
    %228 = vector.shape_cast %227 : vector<1x32x96xf32> to vector<32x96xf32>
    %229 = arith.truncf %226 : vector<17x32xf32> to vector<17x32xbf16>
    %230 = arith.truncf %228 : vector<32x96xf32> to vector<32x96xbf16>
    %cst_97 = arith.constant dense<0.000000e+00> : vector<17x96xf32>
    %231 = tpu.matmul %229, %230, %cst_97 {dimension_numbers = #tpu.dot_dimension_numbers<[1], [0], [0], [1], [0, 0, 1, 1], [], []>} : vector<17x32xbf16>, vector<32x96xbf16>, vector<17x96xf32> -> vector<17x96xf32>
    %c1_98 = arith.constant 1 : index
    %c0_99 = arith.constant 0 : index
    %c0_100 = arith.constant 0 : index
    %232 = vector.load %arg9[%c1_98, %c0_99, %c0_100] : memref<2x1x96xf32, #tpu.memory_space<vmem>>, vector<1x1x96xf32>
    %233 = vector.shape_cast %232 : vector<1x1x96xf32> to vector<1x96xf32>
    %234 = vector.broadcast %233 : vector<1x96xf32> to vector<17x96xf32>
    %235 = arith.addf %231, %234 : vector<17x96xf32>
    %236 = vector.extract_strided_slice %235 {offsets = [0, 0], sizes = [17, 8], strides = [1, 1]} : vector<17x96xf32> to vector<17x8xf32>
    %237 = vector.extract_strided_slice %235 {offsets = [0, 32], sizes = [17, 8], strides = [1, 1]} : vector<17x96xf32> to vector<17x8xf32>
    %238 = vector.extract_strided_slice %235 {offsets = [0, 64], sizes = [17, 8], strides = [1, 1]} : vector<17x96xf32> to vector<17x8xf32>
    %239 = arith.truncf %236 : vector<17x8xf32> to vector<17x8xbf16>
    %240 = arith.truncf %237 : vector<17x8xf32> to vector<17x8xbf16>
    %cst_101 = arith.constant dense<0.000000e+00> : vector<17x17xf32>
    %241 = tpu.matmul %239, %240, %cst_101 {dimension_numbers = #tpu.dot_dimension_numbers<[1], [1], [0], [0], [0, 0, 1, 0], [], []>} : vector<17x8xbf16>, vector<17x8xbf16>, vector<17x17xf32> -> vector<17x17xf32>
    %cst_102 = arith.constant 0.353553385 : f32
    %242 = vector.broadcast %cst_102 : f32 to vector<17x17xf32>
    %243 = arith.mulf %241, %242 : vector<17x17xf32>
    %cst_103 = arith.constant dense<0xFF800000> : vector<17xf32>
    %244 = vector.multi_reduction <maximumf>, %243, %cst_103 [1] : vector<17x17xf32> to vector<17xf32>
    %245 = vector.shape_cast %244 : vector<17xf32> to vector<17x1xf32>
    %246 = vector.broadcast %245 : vector<17x1xf32> to vector<17x17xf32>
    %247 = arith.subf %243, %246 : vector<17x17xf32>
    %248 = math.exp %247 : vector<17x17xf32>
    %cst_104 = arith.constant dense<0.000000e+00> : vector<17xf32>
    %249 = vector.multi_reduction <add>, %248, %cst_104 [1] : vector<17x17xf32> to vector<17xf32>
    %250 = vector.shape_cast %249 : vector<17xf32> to vector<17x1xf32>
    %251 = tpu.reciprocal %250 {approx = true} : vector<17x1xf32> -> vector<17x1xf32>
    %252 = vector.broadcast %251 : vector<17x1xf32> to vector<17x17xf32>
    %253 = arith.mulf %248, %252 : vector<17x17xf32>
    %254 = arith.truncf %253 : vector<17x17xf32> to vector<17x17xbf16>
    %255 = arith.truncf %238 : vector<17x8xf32> to vector<17x8xbf16>
    %cst_105 = arith.constant dense<0.000000e+00> : vector<17x8xf32>
    %256 = tpu.matmul %254, %255, %cst_105 {dimension_numbers = #tpu.dot_dimension_numbers<[1], [0], [0], [1], [0, 0, 1, 1], [], []>} : vector<17x17xbf16>, vector<17x8xbf16>, vector<17x8xf32> -> vector<17x8xf32>
    %257 = vector.extract_strided_slice %235 {offsets = [0, 8], sizes = [17, 8], strides = [1, 1]} : vector<17x96xf32> to vector<17x8xf32>
    %258 = vector.extract_strided_slice %235 {offsets = [0, 40], sizes = [17, 8], strides = [1, 1]} : vector<17x96xf32> to vector<17x8xf32>
    %259 = vector.extract_strided_slice %235 {offsets = [0, 72], sizes = [17, 8], strides = [1, 1]} : vector<17x96xf32> to vector<17x8xf32>
    %260 = arith.truncf %257 : vector<17x8xf32> to vector<17x8xbf16>
    %261 = arith.truncf %258 : vector<17x8xf32> to vector<17x8xbf16>
    %cst_106 = arith.constant dense<0.000000e+00> : vector<17x17xf32>
    %262 = tpu.matmul %260, %261, %cst_106 {dimension_numbers = #tpu.dot_dimension_numbers<[1], [1], [0], [0], [0, 0, 1, 0], [], []>} : vector<17x8xbf16>, vector<17x8xbf16>, vector<17x17xf32> -> vector<17x17xf32>
    %cst_107 = arith.constant 0.353553385 : f32
    %263 = vector.broadcast %cst_107 : f32 to vector<17x17xf32>
    %264 = arith.mulf %262, %263 : vector<17x17xf32>
    %cst_108 = arith.constant dense<0xFF800000> : vector<17xf32>
    %265 = vector.multi_reduction <maximumf>, %264, %cst_108 [1] : vector<17x17xf32> to vector<17xf32>
    %266 = vector.shape_cast %265 : vector<17xf32> to vector<17x1xf32>
    %267 = vector.broadcast %266 : vector<17x1xf32> to vector<17x17xf32>
    %268 = arith.subf %264, %267 : vector<17x17xf32>
    %269 = math.exp %268 : vector<17x17xf32>
    %cst_109 = arith.constant dense<0.000000e+00> : vector<17xf32>
    %270 = vector.multi_reduction <add>, %269, %cst_109 [1] : vector<17x17xf32> to vector<17xf32>
    %271 = vector.shape_cast %270 : vector<17xf32> to vector<17x1xf32>
    %272 = tpu.reciprocal %271 {approx = true} : vector<17x1xf32> -> vector<17x1xf32>
    %273 = vector.broadcast %272 : vector<17x1xf32> to vector<17x17xf32>
    %274 = arith.mulf %269, %273 : vector<17x17xf32>
    %275 = arith.truncf %274 : vector<17x17xf32> to vector<17x17xbf16>
    %276 = arith.truncf %259 : vector<17x8xf32> to vector<17x8xbf16>
    %cst_110 = arith.constant dense<0.000000e+00> : vector<17x8xf32>
    %277 = tpu.matmul %275, %276, %cst_110 {dimension_numbers = #tpu.dot_dimension_numbers<[1], [0], [0], [1], [0, 0, 1, 1], [], []>} : vector<17x17xbf16>, vector<17x8xbf16>, vector<17x8xf32> -> vector<17x8xf32>
    %278 = vector.extract_strided_slice %235 {offsets = [0, 16], sizes = [17, 8], strides = [1, 1]} : vector<17x96xf32> to vector<17x8xf32>
    %279 = vector.extract_strided_slice %235 {offsets = [0, 48], sizes = [17, 8], strides = [1, 1]} : vector<17x96xf32> to vector<17x8xf32>
    %280 = vector.extract_strided_slice %235 {offsets = [0, 80], sizes = [17, 8], strides = [1, 1]} : vector<17x96xf32> to vector<17x8xf32>
    %281 = arith.truncf %278 : vector<17x8xf32> to vector<17x8xbf16>
    %282 = arith.truncf %279 : vector<17x8xf32> to vector<17x8xbf16>
    %cst_111 = arith.constant dense<0.000000e+00> : vector<17x17xf32>
    %283 = tpu.matmul %281, %282, %cst_111 {dimension_numbers = #tpu.dot_dimension_numbers<[1], [1], [0], [0], [0, 0, 1, 0], [], []>} : vector<17x8xbf16>, vector<17x8xbf16>, vector<17x17xf32> -> vector<17x17xf32>
    %cst_112 = arith.constant 0.353553385 : f32
    %284 = vector.broadcast %cst_112 : f32 to vector<17x17xf32>
    %285 = arith.mulf %283, %284 : vector<17x17xf32>
    %cst_113 = arith.constant dense<0xFF800000> : vector<17xf32>
    %286 = vector.multi_reduction <maximumf>, %285, %cst_113 [1] : vector<17x17xf32> to vector<17xf32>
    %287 = vector.shape_cast %286 : vector<17xf32> to vector<17x1xf32>
    %288 = vector.broadcast %287 : vector<17x1xf32> to vector<17x17xf32>
    %289 = arith.subf %285, %288 : vector<17x17xf32>
    %290 = math.exp %289 : vector<17x17xf32>
    %cst_114 = arith.constant dense<0.000000e+00> : vector<17xf32>
    %291 = vector.multi_reduction <add>, %290, %cst_114 [1] : vector<17x17xf32> to vector<17xf32>
    %292 = vector.shape_cast %291 : vector<17xf32> to vector<17x1xf32>
    %293 = tpu.reciprocal %292 {approx = true} : vector<17x1xf32> -> vector<17x1xf32>
    %294 = vector.broadcast %293 : vector<17x1xf32> to vector<17x17xf32>
    %295 = arith.mulf %290, %294 : vector<17x17xf32>
    %296 = arith.truncf %295 : vector<17x17xf32> to vector<17x17xbf16>
    %297 = arith.truncf %280 : vector<17x8xf32> to vector<17x8xbf16>
    %cst_115 = arith.constant dense<0.000000e+00> : vector<17x8xf32>
    %298 = tpu.matmul %296, %297, %cst_115 {dimension_numbers = #tpu.dot_dimension_numbers<[1], [0], [0], [1], [0, 0, 1, 1], [], []>} : vector<17x17xbf16>, vector<17x8xbf16>, vector<17x8xf32> -> vector<17x8xf32>
    %299 = vector.extract_strided_slice %235 {offsets = [0, 24], sizes = [17, 8], strides = [1, 1]} : vector<17x96xf32> to vector<17x8xf32>
    %300 = vector.extract_strided_slice %235 {offsets = [0, 56], sizes = [17, 8], strides = [1, 1]} : vector<17x96xf32> to vector<17x8xf32>
    %301 = vector.extract_strided_slice %235 {offsets = [0, 88], sizes = [17, 8], strides = [1, 1]} : vector<17x96xf32> to vector<17x8xf32>
    %302 = arith.truncf %299 : vector<17x8xf32> to vector<17x8xbf16>
    %303 = arith.truncf %300 : vector<17x8xf32> to vector<17x8xbf16>
    %cst_116 = arith.constant dense<0.000000e+00> : vector<17x17xf32>
    %304 = tpu.matmul %302, %303, %cst_116 {dimension_numbers = #tpu.dot_dimension_numbers<[1], [1], [0], [0], [0, 0, 1, 0], [], []>} : vector<17x8xbf16>, vector<17x8xbf16>, vector<17x17xf32> -> vector<17x17xf32>
    %cst_117 = arith.constant 0.353553385 : f32
    %305 = vector.broadcast %cst_117 : f32 to vector<17x17xf32>
    %306 = arith.mulf %304, %305 : vector<17x17xf32>
    %cst_118 = arith.constant dense<0xFF800000> : vector<17xf32>
    %307 = vector.multi_reduction <maximumf>, %306, %cst_118 [1] : vector<17x17xf32> to vector<17xf32>
    %308 = vector.shape_cast %307 : vector<17xf32> to vector<17x1xf32>
    %309 = vector.broadcast %308 : vector<17x1xf32> to vector<17x17xf32>
    %310 = arith.subf %306, %309 : vector<17x17xf32>
    %311 = math.exp %310 : vector<17x17xf32>
    %cst_119 = arith.constant dense<0.000000e+00> : vector<17xf32>
    %312 = vector.multi_reduction <add>, %311, %cst_119 [1] : vector<17x17xf32> to vector<17xf32>
    %313 = vector.shape_cast %312 : vector<17xf32> to vector<17x1xf32>
    %314 = tpu.reciprocal %313 {approx = true} : vector<17x1xf32> -> vector<17x1xf32>
    %315 = vector.broadcast %314 : vector<17x1xf32> to vector<17x17xf32>
    %316 = arith.mulf %311, %315 : vector<17x17xf32>
    %317 = arith.truncf %316 : vector<17x17xf32> to vector<17x17xbf16>
    %318 = arith.truncf %301 : vector<17x8xf32> to vector<17x8xbf16>
    %cst_120 = arith.constant dense<0.000000e+00> : vector<17x8xf32>
    %319 = tpu.matmul %317, %318, %cst_120 {dimension_numbers = #tpu.dot_dimension_numbers<[1], [0], [0], [1], [0, 0, 1, 1], [], []>} : vector<17x17xbf16>, vector<17x8xbf16>, vector<17x8xf32> -> vector<17x8xf32>
    %320 = tpu.concatenate %256, %277, %298, %319 in 1 : vector<17x8xf32>, vector<17x8xf32>, vector<17x8xf32>, vector<17x8xf32> -> vector<17x32xf32>
    %c1_121 = arith.constant 1 : index
    %c0_122 = arith.constant 0 : index
    %c0_123 = arith.constant 0 : index
    %321 = vector.load %arg10[%c1_121, %c0_122, %c0_123] : memref<2x32x32xf32, #tpu.memory_space<vmem>>, vector<1x32x32xf32>
    %322 = vector.shape_cast %321 : vector<1x32x32xf32> to vector<32x32xf32>
    %323 = arith.truncf %320 : vector<17x32xf32> to vector<17x32xbf16>
    %324 = arith.truncf %322 : vector<32x32xf32> to vector<32x32xbf16>
    %cst_124 = arith.constant dense<0.000000e+00> : vector<17x32xf32>
    %325 = tpu.matmul %323, %324, %cst_124 {dimension_numbers = #tpu.dot_dimension_numbers<[1], [0], [0], [1], [0, 0, 1, 1], [], []>} : vector<17x32xbf16>, vector<32x32xbf16>, vector<17x32xf32> -> vector<17x32xf32>
    %326 = arith.addf %200, %325 : vector<17x32xf32>
    %c1_125 = arith.constant 1 : index
    %c0_126 = arith.constant 0 : index
    %c0_127 = arith.constant 0 : index
    %327 = vector.load %arg11[%c1_125, %c0_126, %c0_127] : memref<2x1x32xf32, #tpu.memory_space<vmem>>, vector<1x1x32xf32>
    %328 = vector.shape_cast %327 : vector<1x1x32xf32> to vector<1x32xf32>
    %329 = vector.broadcast %328 : vector<1x32xf32> to vector<17x32xf32>
    %330 = arith.addf %326, %329 : vector<17x32xf32>
    %c1_128 = arith.constant 1 : index
    %c0_129 = arith.constant 0 : index
    %c0_130 = arith.constant 0 : index
    %331 = vector.load %arg12[%c1_128, %c0_129, %c0_130] : memref<2x1x32xf32, #tpu.memory_space<vmem>>, vector<1x1x32xf32>
    %332 = vector.shape_cast %331 : vector<1x1x32xf32> to vector<1x32xf32>
    %c1_131 = arith.constant 1 : index
    %c0_132 = arith.constant 0 : index
    %c0_133 = arith.constant 0 : index
    %333 = vector.load %arg13[%c1_131, %c0_132, %c0_133] : memref<2x1x32xf32, #tpu.memory_space<vmem>>, vector<1x1x32xf32>
    %334 = vector.shape_cast %333 : vector<1x1x32xf32> to vector<1x32xf32>
    %cst_134 = arith.constant dense<0.000000e+00> : vector<17xf32>
    %335 = vector.multi_reduction <add>, %330, %cst_134 [1] : vector<17x32xf32> to vector<17xf32>
    %336 = vector.shape_cast %335 : vector<17xf32> to vector<17x1xf32>
    %cst_135 = arith.constant 3.200000e+01 : f32
    %337 = vector.broadcast %cst_135 : f32 to vector<17x1xf32>
    %338 = arith.divf %336, %337 : vector<17x1xf32>
    %339 = vector.broadcast %338 : vector<17x1xf32> to vector<17x32xf32>
    %340 = arith.subf %330, %339 : vector<17x32xf32>
    %341 = arith.mulf %340, %340 : vector<17x32xf32>
    %cst_136 = arith.constant dense<0.000000e+00> : vector<17xf32>
    %342 = vector.multi_reduction <add>, %341, %cst_136 [1] : vector<17x32xf32> to vector<17xf32>
    %343 = vector.shape_cast %342 : vector<17xf32> to vector<17x1xf32>
    %cst_137 = arith.constant 3.200000e+01 : f32
    %344 = vector.broadcast %cst_137 : f32 to vector<17x1xf32>
    %345 = arith.divf %343, %344 : vector<17x1xf32>
    %346 = vector.broadcast %338 : vector<17x1xf32> to vector<17x32xf32>
    %347 = arith.subf %330, %346 : vector<17x32xf32>
    %cst_138 = arith.constant 9.99999974E-6 : f32
    %348 = vector.broadcast %cst_138 : f32 to vector<17x1xf32>
    %349 = arith.addf %345, %348 : vector<17x1xf32>
    %350 = math.rsqrt %349 : vector<17x1xf32>
    %351 = vector.broadcast %350 : vector<17x1xf32> to vector<17x32xf32>
    %352 = arith.mulf %347, %351 : vector<17x32xf32>
    %353 = vector.broadcast %332 : vector<1x32xf32> to vector<17x32xf32>
    %354 = arith.mulf %352, %353 : vector<17x32xf32>
    %355 = vector.broadcast %334 : vector<1x32xf32> to vector<17x32xf32>
    %356 = arith.addf %354, %355 : vector<17x32xf32>
    %c1_139 = arith.constant 1 : index
    %c0_140 = arith.constant 0 : index
    %c0_141 = arith.constant 0 : index
    %357 = vector.load %arg14[%c1_139, %c0_140, %c0_141] : memref<2x32x64xf32, #tpu.memory_space<vmem>>, vector<1x32x64xf32>
    %358 = vector.shape_cast %357 : vector<1x32x64xf32> to vector<32x64xf32>
    %359 = arith.truncf %356 : vector<17x32xf32> to vector<17x32xbf16>
    %360 = arith.truncf %358 : vector<32x64xf32> to vector<32x64xbf16>
    %cst_142 = arith.constant dense<0.000000e+00> : vector<17x64xf32>
    %361 = tpu.matmul %359, %360, %cst_142 {dimension_numbers = #tpu.dot_dimension_numbers<[1], [0], [0], [1], [0, 0, 1, 1], [], []>} : vector<17x32xbf16>, vector<32x64xbf16>, vector<17x64xf32> -> vector<17x64xf32>
    %c1_143 = arith.constant 1 : index
    %c0_144 = arith.constant 0 : index
    %c0_145 = arith.constant 0 : index
    %362 = vector.load %arg15[%c1_143, %c0_144, %c0_145] : memref<2x1x64xf32, #tpu.memory_space<vmem>>, vector<1x1x64xf32>
    %363 = vector.shape_cast %362 : vector<1x1x64xf32> to vector<1x64xf32>
    %364 = vector.broadcast %363 : vector<1x64xf32> to vector<17x64xf32>
    %365 = arith.addf %361, %364 : vector<17x64xf32>
    %366 = arith.mulf %365, %365 : vector<17x64xf32>
    %367 = arith.mulf %365, %366 : vector<17x64xf32>
    %cst_146 = arith.constant 4.471500e-02 : f32
    %368 = vector.broadcast %cst_146 : f32 to vector<17x64xf32>
    %369 = arith.mulf %368, %367 : vector<17x64xf32>
    %370 = arith.addf %365, %369 : vector<17x64xf32>
    %cst_147 = arith.constant 0.797884583 : f32
    %371 = vector.broadcast %cst_147 : f32 to vector<17x64xf32>
    %372 = arith.mulf %371, %370 : vector<17x64xf32>
    %373 = math.tanh %372 : vector<17x64xf32>
    %cst_148 = arith.constant 1.000000e+00 : f32
    %374 = vector.broadcast %cst_148 : f32 to vector<17x64xf32>
    %375 = arith.addf %374, %373 : vector<17x64xf32>
    %cst_149 = arith.constant 5.000000e-01 : f32
    %376 = vector.broadcast %cst_149 : f32 to vector<17x64xf32>
    %377 = arith.mulf %376, %375 : vector<17x64xf32>
    %378 = arith.mulf %365, %377 : vector<17x64xf32>
    %c1_150 = arith.constant 1 : index
    %c0_151 = arith.constant 0 : index
    %c0_152 = arith.constant 0 : index
    %379 = vector.load %arg16[%c1_150, %c0_151, %c0_152] : memref<2x64x32xf32, #tpu.memory_space<vmem>>, vector<1x64x32xf32>
    %380 = vector.shape_cast %379 : vector<1x64x32xf32> to vector<64x32xf32>
    %381 = arith.truncf %378 : vector<17x64xf32> to vector<17x64xbf16>
    %382 = arith.truncf %380 : vector<64x32xf32> to vector<64x32xbf16>
    %cst_153 = arith.constant dense<0.000000e+00> : vector<17x32xf32>
    %383 = tpu.matmul %381, %382, %cst_153 {dimension_numbers = #tpu.dot_dimension_numbers<[1], [0], [0], [1], [0, 0, 1, 1], [], []>} : vector<17x64xbf16>, vector<64x32xbf16>, vector<17x32xf32> -> vector<17x32xf32>
    %384 = arith.addf %330, %383 : vector<17x32xf32>
    %c1_154 = arith.constant 1 : index
    %c0_155 = arith.constant 0 : index
    %c0_156 = arith.constant 0 : index
    %385 = vector.load %arg17[%c1_154, %c0_155, %c0_156] : memref<2x1x32xf32, #tpu.memory_space<vmem>>, vector<1x1x32xf32>
    %386 = vector.shape_cast %385 : vector<1x1x32xf32> to vector<1x32xf32>
    %387 = vector.broadcast %386 : vector<1x32xf32> to vector<17x32xf32>
    %388 = arith.addf %384, %387 : vector<17x32xf32>
    %389 = vector.extract_strided_slice %388 {offsets = [0, 0], sizes = [1, 32], strides = [1, 1]} : vector<17x32xf32> to vector<1x32xf32>
    %c0_157 = arith.constant 0 : index
    %c0_158 = arith.constant 0 : index
    %390 = vector.load %arg18[%c0_157, %c0_158] : memref<1x32xf32, #tpu.memory_space<vmem>>, vector<1x32xf32>
    %c0_159 = arith.constant 0 : index
    %c0_160 = arith.constant 0 : index
    %391 = vector.load %arg19[%c0_159, %c0_160] : memref<1x32xf32, #tpu.memory_space<vmem>>, vector<1x32xf32>
    %cst_161 = arith.constant dense<0.000000e+00> : vector<1xf32>
    %392 = vector.multi_reduction <add>, %389, %cst_161 [1] : vector<1x32xf32> to vector<1xf32>
    %393 = vector.shape_cast %392 : vector<1xf32> to vector<1x1xf32>
    %cst_162 = arith.constant 3.200000e+01 : f32
    %394 = vector.broadcast %cst_162 : f32 to vector<1x1xf32>
    %395 = arith.divf %393, %394 : vector<1x1xf32>
    %396 = vector.broadcast %395 : vector<1x1xf32> to vector<1x32xf32>
    %397 = arith.subf %389, %396 : vector<1x32xf32>
    %398 = arith.mulf %397, %397 : vector<1x32xf32>
    %cst_163 = arith.constant dense<0.000000e+00> : vector<1xf32>
    %399 = vector.multi_reduction <add>, %398, %cst_163 [1] : vector<1x32xf32> to vector<1xf32>
    %400 = vector.shape_cast %399 : vector<1xf32> to vector<1x1xf32>
    %cst_164 = arith.constant 3.200000e+01 : f32
    %401 = vector.broadcast %cst_164 : f32 to vector<1x1xf32>
    %402 = arith.divf %400, %401 : vector<1x1xf32>
    %403 = vector.broadcast %395 : vector<1x1xf32> to vector<1x32xf32>
    %404 = arith.subf %389, %403 : vector<1x32xf32>
    %cst_165 = arith.constant 9.99999974E-6 : f32
    %405 = vector.broadcast %cst_165 : f32 to vector<1x1xf32>
    %406 = arith.addf %402, %405 : vector<1x1xf32>
    %407 = math.rsqrt %406 : vector<1x1xf32>
    %408 = vector.broadcast %407 : vector<1x1xf32> to vector<1x32xf32>
    %409 = arith.mulf %404, %408 : vector<1x32xf32>
    %410 = arith.mulf %409, %390 : vector<1x32xf32>
    %411 = arith.addf %410, %391 : vector<1x32xf32>
    %c0_166 = arith.constant 0 : index
    %c0_167 = arith.constant 0 : index
    %c0_168 = arith.constant 0 : index
    %412 = vector.load %arg20[%c0_166, %c0_167, %c0_168] : memref<1x1x32xf32, #tpu.memory_space<vmem>>, vector<1x1x32xf32>
    %413 = vector.shape_cast %412 : vector<1x1x32xf32> to vector<1x32xf32>
    %414 = vector.shape_cast %411 : vector<1x32xf32> to vector<1x1x32xf32>
    tpu.vector_store %arg20[%c0_166, %c0_167, %c0_168], %414 {strides = array<i32>} : memref<1x1x32xf32, #tpu.memory_space<vmem>>, vector<1x1x32xf32>,
    return
  }
  func.func @transform_0(%arg0: i32) -> (i32, i32, i32) {
    %c0_i32 = arith.constant 0 : i32
    %c0_i32_0 = arith.constant 0 : i32
    %c0_i32_1 = arith.constant 0 : i32
    return %arg0, %c0_i32, %c0_i32_0 : i32, i32, i32
  }
  func.func @transform_1(%arg0: i32) -> (i32, i32) {
    %c0_i32 = arith.constant 0 : i32
    %c0_i32_0 = arith.constant 0 : i32
    %c0_i32_1 = arith.constant 0 : i32
    return %c0_i32, %c0_i32_0 : i32, i32
  }
  func.func @transform_2(%arg0: i32) -> (i32, i32) {
    %c0_i32 = arith.constant 0 : i32
    %c0_i32_0 = arith.constant 0 : i32
    %c0_i32_1 = arith.constant 0 : i32
    return %c0_i32, %c0_i32_0 : i32, i32
  }
  func.func @transform_3(%arg0: i32) -> (i32, i32) {
    %c0_i32 = arith.constant 0 : i32
    %c0_i32_0 = arith.constant 0 : i32
    %c0_i32_1 = arith.constant 0 : i32
    return %c0_i32, %c0_i32_0 : i32, i32
  }
  func.func @transform_4(%arg0: i32) -> (i32, i32) {
    %c0_i32 = arith.constant 0 : i32
    %c0_i32_0 = arith.constant 0 : i32
    %c0_i32_1 = arith.constant 0 : i32
    return %c0_i32, %c0_i32_0 : i32, i32
  }
  func.func @transform_5(%arg0: i32) -> (i32, i32, i32) {
    %c0_i32 = arith.constant 0 : i32
    %c0_i32_0 = arith.constant 0 : i32
    %c0_i32_1 = arith.constant 0 : i32
    %c0_i32_2 = arith.constant 0 : i32
    return %c0_i32, %c0_i32_0, %c0_i32_1 : i32, i32, i32
  }
  func.func @transform_6(%arg0: i32) -> (i32, i32, i32) {
    %c0_i32 = arith.constant 0 : i32
    %c0_i32_0 = arith.constant 0 : i32
    %c0_i32_1 = arith.constant 0 : i32
    %c0_i32_2 = arith.constant 0 : i32
    return %c0_i32, %c0_i32_0, %c0_i32_1 : i32, i32, i32
  }
  func.func @transform_7(%arg0: i32) -> (i32, i32, i32) {
    %c0_i32 = arith.constant 0 : i32
    %c0_i32_0 = arith.constant 0 : i32
    %c0_i32_1 = arith.constant 0 : i32
    %c0_i32_2 = arith.constant 0 : i32
    return %c0_i32, %c0_i32_0, %c0_i32_1 : i32, i32, i32
  }
  func.func @transform_8(%arg0: i32) -> (i32, i32, i32) {
    %c0_i32 = arith.constant 0 : i32
    %c0_i32_0 = arith.constant 0 : i32
    %c0_i32_1 = arith.constant 0 : i32
    %c0_i32_2 = arith.constant 0 : i32
    return %c0_i32, %c0_i32_0, %c0_i32_1 : i32, i32, i32
  }
  func.func @transform_9(%arg0: i32) -> (i32, i32, i32) {
    %c0_i32 = arith.constant 0 : i32
    %c0_i32_0 = arith.constant 0 : i32
    %c0_i32_1 = arith.constant 0 : i32
    %c0_i32_2 = arith.constant 0 : i32
    return %c0_i32, %c0_i32_0, %c0_i32_1 : i32, i32, i32
  }
  func.func @transform_10(%arg0: i32) -> (i32, i32, i32) {
    %c0_i32 = arith.constant 0 : i32
    %c0_i32_0 = arith.constant 0 : i32
    %c0_i32_1 = arith.constant 0 : i32
    %c0_i32_2 = arith.constant 0 : i32
    return %c0_i32, %c0_i32_0, %c0_i32_1 : i32, i32, i32
  }
  func.func @transform_11(%arg0: i32) -> (i32, i32, i32) {
    %c0_i32 = arith.constant 0 : i32
    %c0_i32_0 = arith.constant 0 : i32
    %c0_i32_1 = arith.constant 0 : i32
    %c0_i32_2 = arith.constant 0 : i32
    return %c0_i32, %c0_i32_0, %c0_i32_1 : i32, i32, i32
  }
  func.func @transform_12(%arg0: i32) -> (i32, i32, i32) {
    %c0_i32 = arith.constant 0 : i32
    %c0_i32_0 = arith.constant 0 : i32
    %c0_i32_1 = arith.constant 0 : i32
    %c0_i32_2 = arith.constant 0 : i32
    return %c0_i32, %c0_i32_0, %c0_i32_1 : i32, i32, i32
  }
  func.func @transform_13(%arg0: i32) -> (i32, i32, i32) {
    %c0_i32 = arith.constant 0 : i32
    %c0_i32_0 = arith.constant 0 : i32
    %c0_i32_1 = arith.constant 0 : i32
    %c0_i32_2 = arith.constant 0 : i32
    return %c0_i32, %c0_i32_0, %c0_i32_1 : i32, i32, i32
  }
  func.func @transform_14(%arg0: i32) -> (i32, i32, i32) {
    %c0_i32 = arith.constant 0 : i32
    %c0_i32_0 = arith.constant 0 : i32
    %c0_i32_1 = arith.constant 0 : i32
    %c0_i32_2 = arith.constant 0 : i32
    return %c0_i32, %c0_i32_0, %c0_i32_1 : i32, i32, i32
  }
  func.func @transform_15(%arg0: i32) -> (i32, i32, i32) {
    %c0_i32 = arith.constant 0 : i32
    %c0_i32_0 = arith.constant 0 : i32
    %c0_i32_1 = arith.constant 0 : i32
    %c0_i32_2 = arith.constant 0 : i32
    return %c0_i32, %c0_i32_0, %c0_i32_1 : i32, i32, i32
  }
  func.func @transform_16(%arg0: i32) -> (i32, i32, i32) {
    %c0_i32 = arith.constant 0 : i32
    %c0_i32_0 = arith.constant 0 : i32
    %c0_i32_1 = arith.constant 0 : i32
    %c0_i32_2 = arith.constant 0 : i32
    return %c0_i32, %c0_i32_0, %c0_i32_1 : i32, i32, i32
  }
  func.func @transform_17(%arg0: i32) -> (i32, i32) {
    %c0_i32 = arith.constant 0 : i32
    %c0_i32_0 = arith.constant 0 : i32
    %c0_i32_1 = arith.constant 0 : i32
    return %c0_i32, %c0_i32_0 : i32, i32
  }
  func.func @transform_18(%arg0: i32) -> (i32, i32) {
    %c0_i32 = arith.constant 0 : i32
    %c0_i32_0 = arith.constant 0 : i32
    %c0_i32_1 = arith.constant 0 : i32
    return %c0_i32, %c0_i32_0 : i32, i32
  }
  func.func @transform_19(%arg0: i32) -> (i32, i32, i32) {
    %c0_i32 = arith.constant 0 : i32
    %c0_i32_0 = arith.constant 0 : i32
    %c0_i32_1 = arith.constant 0 : i32
    return %arg0, %c0_i32, %c0_i32_0 : i32, i32, i32
  }
}

</mosaic_0001>

<bundles_post_ra>
// kernel: vit_forward.1
= control target key start
LH: loop header
LB: loop body
LE: loop exit
PB: predicated region body
PF: predicated region fallthrough
CT: control target
= control target key end

     0   :  { %s4627_s0 = inlined_call_operand.vmem [shape: f32[2,16,48], index: 0, kind: input, shape index: {}]   ;;  %s4628_s1 = inlined_call_operand.vmem [shape: f32[48,32], index: 1, kind: input, shape index: {}]   ;;  %s4629_s2 = inlined_call_operand.vmem [shape: f32[1,32], index: 2, kind: input, shape index: {}]   ;;  %s4630_s3 = inlined_call_operand.vmem [shape: f32[1,32], index: 3, kind: input, shape index: {}]   ;;  %s4631_s4 = inlined_call_operand.vmem [shape: f32[17,32], index: 4, kind: input, shape index: {}]   ;;  %s4632_s5 = inlined_call_operand.vmem [shape: f32[2,1,32], index: 5, kind: input, shape index: {}]   ;;  %s4633_s6 = inlined_call_operand.vmem [shape: f32[2,1,32], index: 6, kind: input, shape index: {}]   ;;  %s4634_s7 = inlined_call_operand.vmem [shape: f32[2,32,96], index: 7, kind: input, shape index: {}]   ;;  %s4635_s8 = inlined_call_operand.vmem [shape: f32[2,1,96], index: 8, kind: input, shape index: {}]   ;;  %s4636_s9 = inlined_call_operand.vmem [shape: f32[2,32,32], index: 9, kind: input, shape index: {}]   ;;  %s4637_s10 = inlined_call_operand.vmem [shape: f32[2,1,32], index: 10, kind: input, shape index: {}]   ;;  %s4638_s11 = inlined_call_operand.vmem [shape: f32[2,1,32], index: 11, kind: input, shape index: {}]   ;;  %s4639_s12 = inlined_call_operand.vmem [shape: f32[2,1,32], index: 12, kind: input, shape index: {}]   ;;  %s4640_s13 = inlined_call_operand.vmem [shape: f32[2,32,64], index: 13, kind: input, shape index: {}]   ;;  %s4641_s14 = inlined_call_operand.vmem [shape: f32[2,1,64], index: 14, kind: input, shape index: {}]   ;;  %s4642_s15 = inlined_call_operand.vmem [shape: f32[2,64,32], index: 15, kind: input, shape index: {}]   ;;  %s4643_s16 = inlined_call_operand.vmem [shape: f32[2,1,32], index: 16, kind: input, shape index: {}]   ;;  %s4644_s17 = inlined_call_operand.vmem [shape: f32[1,32], index: 17, kind: input, shape index: {}]   ;;  %s4645_s18 = inlined_call_operand.vmem [shape: f32[1,32], index: 18, kind: input, shape index: {}]   ;;  %s4646_s19 = inlined_call_operand.hbm [shape: f32[2,1,32], index: 19, kind: output, shape index: {}]  }
   0x1   :  { %4676 = sst [smem:[#allocation11_spill]] %s4627_s0 }
   0x2   :  { %4677 = sst [smem:[#allocation12_spill]] %s4628_s1 }
   0x3   :  { %4678 = sst [smem:[#allocation13_spill]] %s4629_s2 }
   0x4   :  { %4679 = sst [smem:[#allocation14_spill]] %s4630_s3 }
   0x5   :  { %4680 = sst [smem:[#allocation15_spill]] %s4631_s4 }
   0x6   :  { %24 = vsyncpa [#allocation3], 0 }
   0x7   :  { %26 = vsyncpa [#allocation3 + $0x1], 0  ;;  %s3931_s0 = smov 0   ;;  %s3933_s30 = smov 0  }
   0x8   :  { %s3935_s20 = smov 0   ;;  %s3937_s21 = smov 0  }
   0x9 LB: > { %4681 = sst [smem:[#allocation5_spill]] %s3799_s0  ;;  %s3952_s1 = sadd.s32 4294967295, %s3811_s21   ;;  %s3811_s21 = sphi %s3937_s21, %s4708_s21   ;;  %s3807_s20 = sphi %s3935_s20, %s4710_s20   ;;  %s3803_s30 = sphi %s3933_s30, %s4712_s30   ;;  %s3799_s0 = sphi %s3931_s0, %s4711_s0  }
   0xa   : > { %4682 = sst [smem:[#allocation6_spill]] %s3807_s20  ;;  %s3097_s22 = sadd.s32 4294967294, %s3811_s21  }
   0xb   : > { %4683 = sst [smem:[#allocation7_spill]] %s3811_s21  ;;  %s3956_s2 = sadd.s32 1, %s3811_s21  }
   0xc   : > { %4684 = sst [smem:[#allocation8_spill]] %s3956_s2  ;;  %s443_s23 = sadd.s32 1, %s3807_s20 }
   0xd   : > { %s440_s24 = ssub.s32 %s3811_s21, %s3956_s2  ;;  %p453_p0 = scmp.ne.s32.totalorder %s3807_s20, %s3803_s30 }
   0xe   : > { %p441_p1 = scmp.eq.s32.totalorder %s440_s24, 0  ;;  %p454_p2 = scmp.eq.s32.totalorder %s3952_s1, 1 }
   0xf   : > { %p459_p3 = scmp.ne.s32.totalorder %s3803_s30, %s3799_s0  ;;  %p460_p4 = scmp.eq.s32.totalorder %s3097_s22, 1 }
  0x10   : > { %s3967_s25 = scalar_select %p441_p1, %s3807_s20, %s443_s23  }
  0x11   : > { %p3969_p5 = por %p454_p2, %p453_p0  ;;  %p3973_p6 = por %p460_p4, %p459_p3 }
  0x12   : > { %4685 = sst [smem:[#allocation9_spill]] %s3967_s25  ;;  %p3100_p7 = scmp.ge.s32.totalorder %s3811_s21, 1 }
  0x13   : > { %s4687_s26 = scalar_select %p3973_p6, 1, 0 }
  0x14   : > { %p540_p8 = scmp.lt.s32.totalorder %s3811_s21, 3 }
  0x15   : > { %4688 = sst [smem:[#allocation10_spill]] %s4687_s26 }
  0x16   : > { %p541_p9 = pnand %p3100_p7, %p540_p8 }
  0x17   : > { %s4689_s29 = sld [smem:[#allocation12_spill]] (!%p541_p9)  ;;  %p595_p10 = scmp.lt.s32.totalorder (!%p541_p9), %s3952_s1, 1 }
  0x18   : > { %544 = sbr.rel (%p541_p9) target bundleno = 8167 (0x1fe7), region = 96  ;;  %s4690_s21 = sld [smem:[#allocation11_spill]] (!%p541_p9) }
  0x19   : > { %s4691_s22 = sld [smem:[#allocation13_spill]] (!%p541_p9)  ;;  %s3815_s0 = smov (!%p541_p9), 96  }
  0x1a   : > { %s4693_s4 = sld [smem:[#allocation15_spill]] (!%p541_p9)  ;;  %s4672_s26 = smov (!%p541_p9), 88  }
  0x1b   : > { %s3818_s25 = smov (!%p541_p9), 64   ;;  %s4670_s23 = smov (!%p541_p9), 56  }
  0x1c   : > { %s4664_s2 = smov (!%p541_p9), 48   ;;  %s4656_s28 = smov (!%p541_p9), 72  }
  0x1d   : > { %v607_v0 = vld [vmem:[%s4689_s29 + $0x20] sm:$0xff]  ;;  %v608_v1 = vld [vmem:[%s4689_s29 + $0x28] sm:$0xff]  ;;  %v605_v2 = vld [vmem:[%s4689_s29 + $0x10] sm:$0xff]  ;;  %v3813_v3 = vmov 0.0   ;;  %vm3814_vm0 = vmmov 0   ;;  %s596_s27 = scalar_select %p595_p10, %s3952_s1, 1 }
  0x1e   : > { %3305 = vmatprep.subr.bf16.mxu0 %v3813_v3  ;;  %v612_v4 = vpack.c.bf16 %v608_v1, %v607_v0  ;;  %v606_v5 = vld [vmem:[%s4689_s29 + $0x18] sm:$0xff]  ;;  %3311 = vmatprep.mubr.msk.bf16.mxu0 %vm3814_vm0, %v3813_v3  ;;  %v603_v7 = vld [vmem:[%s4689_s29] sm:$0xff]  ;;  %v604_v8 = vld [vmem:[%s4689_s29 + $0x8] sm:$0xff]  ;;  %vm620_vm1 = vcmask 392192   ;;  %vm668_vm2 = vcmask 1040384   ;;  %vm684_vm3 = vcmask 261120  }
  0x1f   : > { %v611_v6 = vpack.c.bf16 %v606_v5, %v605_v2  ;;  %s3200_s24 = sshll.u32 %s596_s27, 4  ;;  %v610_v9 = vpack.c.bf16 %v604_v8, %v603_v7  ;;  %v3103_v13 = vld [vmem:[%s4691_s22] ss:$0 sm:$0xff]  ;;  %vm691_vm4 = vcmask 253952   ;;  %v746_v49 = vld [vmem:[%s4634_s7 + $0x10] sm:$0xff]  ;;  %v747_v50 = vld [vmem:[%s4634_s7 + $0x18] sm:$0xff] }
  0x20   : > { %3306 = vmatpush3.bf16.msra.mxu0 %v612_v4  ;;  %s599_s20 = scalar_lea.vmem %s4690_s21, %s3200_s24  ;;  %s4692_s21 = sld [smem:[#allocation14_spill]]  ;;  %v676_v19 = vld [vmem:[%s4693_s4] sm:$0xff]  ;;  %v678_v23 = vld [vmem:[%s4693_s4 + $0x10] sm:$0x1]  ;;  %v677_v27 = vld [vmem:[%s4693_s4 + $0x8] sm:$0xff]  ;;  %v751_v52 = vpack.c.bf16 %v747_v50, %v746_v49  ;;  %vm821_vm5 = vcmask 64512  }
  0x21   : > { %3307 = vmatprep.subr.bf16.mxu0 %v3813_v3  ;;  %v601_v10 = vld [vmem:[%s599_s20] sm:$0xff]  ;;  %v602_v11 = vld [vmem:[%s599_s20 + $0x8] sm:$0xff]  ;;  %vm885_vm6 = vcmask 138240   ;;  %vm892_vm7 = vcmask 131072   ;;  %s4668_s24 = smov 80   ;;  %s4666_s20 = smov 112  }
  0x22   : > { %v609_v12 = vpack.c.bf16 %v602_v11, %v601_v10  ;;  %v744_v51 = vld [vmem:[%s4634_s7] sm:$0xff]  ;;  %v745_v53 = vld [vmem:[%s4634_s7 + $0x8] sm:$0xff]  ;;  %3315 = vmatprep.subr.bf16.mxu1 %v751_v52  ;;  %s4654_s22 = smov 104   ;;  %s4662_s27 = smov 40   ;;  %vm1529_vm8 = vcmask 130048   ;;  %vm1533_vm9 = vcmask 195584  }
  0x23   : > { %v750_v54 = vpack.c.bf16 %v745_v53, %v744_v51  ;;  %3316 = vmatpush3.bf16.msra.mxu1 %v751_v52  ;;  %v3105_v2 = vld [vmem:[%s4632_s5] ss:$0 sm:$0xff]  ;;  %vm1781_vm10 = vcmask 523264  }
  0x24   : > { %3308 = vmatpush3.bf16.msra.mxu0 %v611_v6  ;;  %v3106_v8 = vld [vmem:[%s4633_s6] ss:$0 sm:$0xff] }
  0x25   : > { %3309 = vmatprep.subr.bf16.mxu0 %v3813_v3  ;;  %3317 = vmatprep.subr.bf16.mxu1 %v750_v54 }
  0x26   : > { %v665_v17 = vld [vmem:[%s4692_s21] sm:$0x1]  ;;  %s3816_s21 = smov 120  }
  0x27   : > { %3318 = vmatpush3.bf16.msra.mxu1 %v750_v54 }
  0x28   : > { %3310 = vmatpush3.bf16.msra.mxu0 %v610_v9 }
  0x2b   : > { %3312 = vmatmul.mubr.msk.bf16.vlgmr.msra.gmra.mxu0 %vm620_vm1, %v609_v12 }
  0xeb   : > { %v658_v14 = vpop.f32.mrf.mxu0 }
  0xec   : > { %v659_v15 = vadd.f32 %v3103_v13, %v658_v14 }
  0xed   : > { %v3313_v16 = vpop.f32.mrf.mxu0 }
  0xee   : > { %v669_v18 = vrot.slane %v659_v15, 7  ;;  %v3107_v16 = vld [vmem:[%s4635_s8] ss:$0 sm:$0xff] }
  0xef   : > { %v661_v20 = vpop.f32.mrf.mxu0 }
  0xf0   : > { %v662_v21 = vadd.f32 %v3103_v13, %v661_v20  ;;  %v675_v22 = vsel %vm668_vm2, %v665_v17, %v669_v18 }
  0xf1   : > { %v3314_v24 = vpop.f32.mrf.mxu0  ;;  %v4015_v25 = vadd.f32 %v676_v19, %v675_v22 }
  0xf2   : > { %v670_v26 = vrot.slane %v662_v21, 7 }
  0xf3   : > { %v685_v28 = vsel %vm684_vm3, %v4015_v25, 0.0 }
  0xf4   : > { %v671_v29 = vsel %vm668_vm2, %v669_v18, %v670_v26  ;;  %v4023_v30 = vadd.f32 %v678_v23, %v670_v26  ;;  %686 = vadd.xlane.f32.xlu0 %v685_v28 }
  0xf5   : > { %v4025_v31 = vadd.f32 %v677_v27, %v671_v29 }
  0xf6   : > { %v692_v32 = vsel %vm691_vm4, %v4023_v30, 0.0 }
  0xf7   : > { %693 = vadd.xlane.f32.xlu1 %v692_v32  ;;  %v688_v33 = vsel %vm684_vm3, %v4025_v31, 0.0 }
  0xf8   : > { %689 = vadd.xlane.f32.xlu0 %v688_v33 }
 0x17d   : > { %v687_v34 = vpop.xlane.xlu0 %686 }
 0x17e   : > { %v696_v35 = vmul.f32 0.03125, %v687_v34 }
 0x180   : > { %v699_v36 = vsub.f32 %v4015_v25, %v696_v35  ;;  %v694_v37 = vpop.xlane.xlu1 %693 }
 0x181   : > { %v698_v38 = vmul.f32 0.03125, %v694_v37  ;;  %v690_v39 = vpop.xlane.xlu0 %689 }
 0x182   : > { %v697_v40 = vmul.f32 0.03125, %v690_v39  ;;  %v702_v41 = vmul.f32 %v699_v36, %v699_v36 }
 0x183   : > { %v701_v42 = vsub.f32 %v4023_v30, %v698_v38 }
 0x184   : > { %v700_v43 = vsub.f32 %v4025_v31, %v697_v40  ;;  %v705_v44 = vsel %vm684_vm3, %v702_v41, 0.0 }
 0x185   : > { %706 = vadd.xlane.f32.xlu1 %v705_v44  ;;  %v704_v45 = vmul.f32 %v701_v42, %v701_v42 }
 0x186   : > { %v703_v46 = vmul.f32 %v700_v43, %v700_v43 }
 0x187   : > { %v711_v47 = vsel %vm691_vm4, %v704_v45, 0.0 }
 0x188   : > { %v708_v48 = vsel %vm684_vm3, %v703_v46, 0.0 }
 0x189   : > { %712 = vadd.xlane.f32.xlu1 %v711_v47  ;;  %709 = vadd.xlane.f32.xlu0 %v708_v48 }
 0x20e   : > { %v707_v55 = vpop.xlane.xlu1 %706 }
 0x20f   : > { %v714_v56 = vmul.f32 0.03125, %v707_v55 }
 0x211   : > { %v717_v57 = vadd.f32 1e-05, %v714_v56 }
 0x212   : > { %v713_v58 = vpop.xlane.xlu1 %712  ;;  %v710_v59 = vpop.xlane.xlu0 %709 }
 0x213   : > { %3617 = vrsqrt.f32 %v717_v57  ;;  %v716_v60 = vmul.f32 0.03125, %v713_v58  ;;  %v715_v61 = vmul.f32 0.03125, %v710_v59 }
 0x215   : > { %v719_v62 = vadd.f32 1e-05, %v716_v60  ;;  %v718_v63 = vadd.f32 1e-05, %v715_v61 }
 0x217   : > { %3619 = vrsqrt.f32 %v719_v62 }
 0x218   : > { %3621 = vrsqrt.f32 %v718_v63 }
 0x220   : > { %v3618_v0 = vpop.eup %3617 }
 0x221   : > { %v723_v1 = vmul.f32 %v3618_v0, %v699_v36 }
 0x223   : > { %v732_v7 = vmul.f32 %v3105_v2, %v723_v1 }
 0x224   : > { %v3620_v3 = vpop.eup %3619 }
 0x225   : > { %v3622_v4 = vpop.eup %3621  ;;  %v725_v5 = vmul.f32 %v3620_v3, %v701_v42  ;;  %v741_v12 = vadd.f32 %v3106_v8, %v732_v7 }
 0x226   : > { %v724_v6 = vmul.f32 %v3622_v4, %v700_v43 }
 0x227   : > { %v734_v9 = vmul.f32 %v3105_v2, %v725_v5 }
 0x228   : > { %v733_v10 = vmul.f32 %v3105_v2, %v724_v6 }
 0x229   : > { %v743_v11 = vadd.f32 %v3106_v8, %v734_v9 }
 0x22a   : > { %v742_v13 = vadd.f32 %v3106_v8, %v733_v10 }
 0x22b   : > { %v749_v14 = vpack.c.bf16 %v743_v11, %v743_v11 }
 0x22c   : > { %v748_v15 = vpack.c.bf16 %v742_v13, %v741_v12 }
 0x22e   : > { %3319 = vmatprep.mubr.msk.bf16.mxu1 %vm684_vm3, %v748_v15 }
 0x22f   : > { %3320 = vmatmul.mubr.msk.bf16.vlgmr.msra.gmra.mxu1 %vm684_vm3, %v749_v14 }
 0x2ef   : > { %v3321_v17 = vpop.f32.mrf.mxu1 }
 0x2f0   : > { %v808_v18 = vadd.f32 %v3321_v17, %v3107_v16 }
 0x2f1   : > { %v799_v19 = vpop.f32.mrf.mxu1 }
 0x2f2   : > { %v4060_v20 = vpack.c.bf16 %v808_v18, %v808_v18  ;;  %v800_v23 = vadd.f32 %v3107_v16, %v799_v19 }
 0x2f3   : > { %v3322_v21 = vpop.f32.mrf.mxu1 }
 0x2f4   : > { %819 = vrot.lane.b32.xlu0 %v4060_v20, %s3815_s0 }
 0x2f5   : > { %v802_v22 = vpop.f32.mrf.mxu1 }
 0x2f6   : > { %v803_v24 = vadd.f32 %v3107_v16, %v802_v22 }
 0x2f8   : > { %v4064_v26 = vpack.c.bf16 %v803_v24, %v800_v23 }
 0x2fa   : > { %986 = vrot.lane.b32.xlu0 %v4064_v26, %s3816_s21  ;;  %817 = vrot.lane.b32.xlu1 %v4064_v26, %s3815_s0 }
 0x2fb   : > { %3327 = vmatprep.mubr.msk.bf16.mxu1 %vm821_vm5, %v4064_v26 }
 0x2fe   : > { %992 = vrot.lane.b32.xlu1 %v4060_v20, %s4672_s26 }
 0x302   : > { %990 = vrot.lane.b32.xlu1 %v4064_v26, %s4672_s26  ;;  %s4697_s26 = smov 112  }
 0x306   : > { %988 = vrot.lane.b32.xlu1 %v4060_v20, %s3816_s21 }
 0x366   : > { %v820_v27 = vpop.permute.xlu0 %819 }
 0x367   : > { %3515 = vmatprep.subr.msk.bf16.mxu1 %vm821_vm5, %v820_v27  ;;  %v832_v28 = vsel %vm821_vm5, %v820_v27, 0 }
 0x368   : > { %3324 = vmatpush3.bf16.xpose.msra.mxu1 %v832_v28 }
 0x36c   : > { %v987_v29 = vpop.permute.xlu0 %986  ;;  %v818_v32 = vpop.permute.xlu1 %817 }
 0x36d   : > { %3516 = vmatprep.subr.msk.bf16.mxu1 %vm821_vm5, %v818_v32  ;;  %3343 = vmatprep.mubr.msk.bf16.mxu0 %vm821_vm5, %v987_v29  ;;  %v829_v33 = vsel %vm821_vm5, %v818_v32, 0 }
 0x370   : > { %3326 = vmatpush3.bf16.xpose.msra.mxu1 %v829_v33  ;;  %v993_v34 = vpop.permute.xlu1 %992  ;;  %v3822_v33 = vmov 0  }
 0x371   : > { %3517 = vmatprep.subr.msk.bf16.mxu0 %vm821_vm5, %v993_v34  ;;  %v1004_v35 = vsel %vm821_vm5, %v993_v34, 0  ;;  %v4128_v34 = vsel %vm668_vm2, 65535, %v3822_v33 }
 0x372   : > { %3340 = vmatpush3.bf16.xpose.msra.mxu0 %v1004_v35 }
 0x374   : > { %v991_v36 = vpop.permute.xlu1 %990 }
 0x375   : > { %3518 = vmatprep.subr.msk.bf16.mxu0 %vm821_vm5, %v991_v36  ;;  %v1001_v37 = vsel %vm821_vm5, %v991_v36, 0 }
 0x377   : > { %3328 = vmatmul.mubr.msk.bf16.vlgmr.msra.gmra.mxu1 %vm821_vm5, %v4060_v20 }
 0x378   : > { %v989_v38 = vpop.permute.xlu1 %988 }
 0x37a   : > { %3342 = vmatpush3.bf16.xpose.msra.mxu0 %v1001_v37 }
 0x381   : > { %3344 = vmatmul.mubr.msk.bf16.vlgmr.msra.gmra.mxu0 %vm821_vm5, %v989_v38 }
 0x437   : > { %v3329_v39 = vpop.f32.mrf.mxu1 }
 0x438   : > { %v884_v43 = vmul.f32 0.35355338, %v3329_v39 }
 0x439   : > { %v868_v40 = vpop.f32.mrf.mxu1 }
 0x43a   : > { %v882_v41 = vmul.f32 0.35355338, %v868_v40  ;;  %v893_v47 = vsel %vm892_vm7, %v884_v43, -inf }
 0x43b   : > { %v3330_v42 = vpop.f32.mrf.mxu1 }
 0x43c   : > { %v886_v44 = vsel %vm885_vm6, %v882_v41, -inf }
 0x43d   : > { %887 = vmax.xlane.f32.xlu0 %v886_v44  ;;  %v871_v45 = vpop.f32.mrf.mxu1 }
 0x43e   : > { %v883_v46 = vmul.f32 0.35355338, %v871_v45 }
 0x440   : > { %v889_v48 = vsel %vm885_vm6, %v883_v46, -inf }
 0x441   : > { %894 = vmax.xlane.f32.xlu0 %v893_v47  ;;  %890 = vmax.xlane.f32.xlu1 %v889_v48  ;;  %v3345_v49 = vpop.f32.mrf.mxu0 }
 0x442   : > { %v1056_v50 = vmul.f32 0.35355338, %v3345_v49 }
 0x443   : > { %v1040_v51 = vpop.f32.mrf.mxu0 }
 0x444   : > { %v1054_v52 = vmul.f32 0.35355338, %v1040_v51  ;;  %v1063_v53 = vsel %vm892_vm7, %v1056_v50, -inf }
 0x445   : > { %1064 = vmax.xlane.f32.xlu1 %v1063_v53  ;;  %v3346_v54 = vpop.f32.mrf.mxu0 }
 0x446   : > { %v1057_v55 = vsel %vm885_vm6, %v1054_v52, -inf }
 0x447   : > { %1058 = vmax.xlane.f32.xlu0 %v1057_v55  ;;  %v1043_v56 = vpop.f32.mrf.mxu0 }
 0x448   : > { %v1055_v57 = vmul.f32 0.35355338, %v1043_v56 }
 0x44a   : > { %v1060_v58 = vsel %vm885_vm6, %v1055_v57, -inf }
 0x44b   : > { %1061 = vmax.xlane.f32.xlu0 %v1060_v58 }
 0x4c6   : > { %v888_v59 = vpop.xlane.xlu0 %887 }
 0x4c7   : > { %v896_v60 = vsub.f32 %v882_v41, %v888_v59 }
 0x4c9   : > { %v899_v0 = vmul.f32 1.442695, %v896_v60 }
 0x4ca   : > { %v895_v61 = vpop.xlane.xlu0 %894  ;;  %v891_v62 = vpop.xlane.xlu1 %890 }
 0x4cb   : > { %v898_v63 = vsub.f32 %v884_v43, %v895_v61  ;;  %v897_v16 = vsub.f32 %v883_v46, %v891_v62 }
 0x4cd   : > { %v903_v1 = vmul.f32 1.442695, %v898_v63  ;;  %v901_v18 = vmul.f32 1.442695, %v897_v16 }
 0x4ce   : > { %v1065_v2 = vpop.xlane.xlu1 %1064 }
 0x4cf   : > { %3623 = vpow2.f32 %v903_v1  ;;  %v1068_v3 = vsub.f32 %v1056_v50, %v1065_v2 }
 0x4d0   : > { %3625 = vpow2.f32 %v899_v0  ;;  %v1059_v11 = vpop.xlane.xlu0 %1058 }
 0x4d1   : > { %v1073_v4 = vmul.f32 1.442695, %v1068_v3  ;;  %v1066_v14 = vsub.f32 %v1054_v52, %v1059_v11 }
 0x4d3   : > { %3627 = vpow2.f32 %v1073_v4  ;;  %v1069_v17 = vmul.f32 1.442695, %v1066_v14 }
 0x4d4   : > { %v1062_v12 = vpop.xlane.xlu0 %1061 }
 0x4d5   : > { %v1067_v13 = vsub.f32 %v1055_v57, %v1062_v12 }
 0x4d7   : > { %v1071_v15 = vmul.f32 1.442695, %v1067_v13 }
 0x4d9   : > { %3629 = vpow2.f32 %v1071_v15 }
 0x4da   : > { %3631 = vpow2.f32 %v1069_v17 }
 0x4db   : > { %3633 = vpow2.f32 %v901_v18 }
 0x4dc   : > { %v4096_v5 = vpop.eup %3623 }
 0x4dd   : > { %v911_v6 = vsel %vm892_vm7, %v4096_v5, 0.0  ;;  %v4100_v7 = vpop.eup %3625 }
 0x4de   : > { %912 = vadd.xlane.f32.xlu0 %v911_v6  ;;  %v905_v10 = vsel %vm885_vm6, %v4100_v7, 0.0 }
 0x4e0   : > { %v4102_v8 = vpop.eup %3627 }
 0x4e1   : > { %v1081_v9 = vsel %vm892_vm7, %v4102_v8, 0.0 }
 0x4e2   : > { %1082 = vadd.xlane.f32.xlu1 %v1081_v9  ;;  %906 = vadd.xlane.f32.xlu0 %v905_v10 }
 0x4e6   : > { %v3630_v19 = vpop.eup %3629 }
 0x4e7   : > { %v1078_v21 = vsel %vm885_vm6, %v3630_v19, 0.0  ;;  %v3632_v22 = vpop.eup %3631 }
 0x4e8   : > { %v1075_v23 = vsel %vm885_vm6, %v3632_v22, 0.0  ;;  %v3634_v24 = vpop.eup %3633 }
 0x4e9   : > { %v908_v27 = vsel %vm885_vm6, %v3634_v24, 0.0 }
 0x4f3   : > { %922 = vrot.lane.b32.xlu1 %v4064_v26, %s3818_s25 }
 0x4f7   : > { %1094 = vrot.lane.b32.xlu1 %v4060_v20, %s4670_s23 }
 0x4f8   : > { %924 = vrot.lane.b32.xlu0 %v4060_v20, %s3818_s25 }
 0x517   : > { %1079 = vadd.xlane.f32.xlu0 %v1078_v21 }
 0x51b   : > { %1076 = vadd.xlane.f32.xlu1 %v1075_v23 }
 0x51f   : > { %909 = vadd.xlane.f32.xlu1 %v908_v27 }
 0x52d   : > { %1160 = vrot.lane.b32.xlu0 %v4060_v20, %s4668_s24 }
 0x530   : > { %1092 = vrot.lane.b32.xlu1 %v4064_v26, %s4670_s23  ;;  %s4698_s23 = smov 48  }
 0x531   : > { %1154 = vrot.lane.b32.xlu0 %v4064_v26, %s4666_s20 }
 0x534   : > { %1158 = vrot.lane.b32.xlu1 %v4064_v26, %s4668_s24  ;;  %s4700_s24 = smov 104  }
 0x538   : > { %1156 = vrot.lane.b32.xlu1 %v4060_v20, %s4666_s20  ;;  %s4701_s20 = smov 40  }
 0x567   : > { %v913_v28 = vpop.xlane.xlu0 %912 }
 0x568   : > { %3635 = vrcp.f32 %v913_v28 }
 0x56b   : > { %v1083_v29 = vpop.xlane.xlu1 %1082  ;;  %v907_v32 = vpop.xlane.xlu0 %906 }
 0x56c   : > { %3637 = vrcp.f32 %v907_v32 }
 0x56f   : > { %v923_v35 = vpop.permute.xlu1 %922  ;;  %v925_v36 = vpop.permute.xlu0 %924 }
 0x570   : > { %v936_v37 = vand.u32 %v4128_v34, %v925_v36 }
 0x572   : > { %3331 = vmatprep.subr.bf16.mxu1 %v936_v37 }
 0x573   : > { %v1095_v38 = vpop.permute.xlu1 %1094  ;;  %3332 = vmatpush3.bf16.msra.mxu1 %v936_v37 }
 0x574   : > { %3333 = vmatprep.subr.bf16.mxu1 %v923_v35  ;;  %v1104_v39 = vand.u32 %v1095_v38, %v4128_v34 }
 0x575   : > { %v3636_v43 = vpop.eup %3635 }
 0x576   : > { %v919_v48 = vmul.f32 %v3636_v43, %v4096_v5 }
 0x577   : > { %3334 = vmatpush3.bf16.msra.mxu1 %v923_v35 }
 0x578   : > { %3347 = vmatprep.subr.bf16.mxu1 %v1104_v39  ;;  %v921_v54 = vpack.c.bf16 %v919_v48, %v919_v48 }
 0x579   : > { %v3638_v44 = vpop.eup %3637 }
 0x57a   : > { %v917_v49 = vmul.f32 %v3638_v44, %v4100_v7 }
 0x5a0   : > { %v1080_v41 = vpop.xlane.xlu0 %1079 }
 0x5a4   : > { %v1077_v40 = vpop.xlane.xlu1 %1076  ;;  %v1161_v58 = vpop.permute.xlu0 %1160 }
 0x5a5   : > { %3639 = vrcp.f32 %v1077_v40  ;;  %v1172_v62 = vsel %vm821_vm5, %v1161_v58, 0 }
 0x5a6   : > { %3641 = vrcp.f32 %v1080_v41 }
 0x5a8   : > { %v910_v42 = vpop.xlane.xlu1 %909  ;;  %v1155_v61 = vpop.permute.xlu0 %1154 }
 0x5a9   : > { %3643 = vrcp.f32 %v910_v42 }
 0x5aa   : > { %3645 = vrcp.f32 %v1083_v29 }
 0x5ac   : > { %v1093_v57 = vpop.permute.xlu1 %1092 }
 0x5b0   : > { %v1159_v63 = vpop.permute.xlu1 %1158 }
 0x5b1   : > { %v1169_v0 = vsel %vm821_vm5, %v1159_v63, 0 }
 0x5b2   : > { %v3640_v45 = vpop.eup %3639 }
 0x5b3   : > { %v3642_v46 = vpop.eup %3641  ;;  %v1087_v51 = vmul.f32 %v3640_v45, %v3632_v22 }
 0x5b4   : > { %v1088_v53 = vmul.f32 %v3642_v46, %v3630_v19  ;;  %v1157_v1 = vpop.permute.xlu1 %1156 }
 0x5b6   : > { %v3644_v47 = vpop.eup %3643  ;;  %v1090_v56 = vpack.c.bf16 %v1088_v53, %v1087_v51 }
 0x5b7   : > { %v918_v50 = vmul.f32 %v3644_v47, %v3634_v24  ;;  %v3646_v55 = vpop.eup %3645 }
 0x5b8   : > { %v1089_v59 = vmul.f32 %v3646_v55, %v4102_v8 }
 0x5b9   : > { %v920_v52 = vpack.c.bf16 %v918_v50, %v917_v49 }
 0x5ba   : > { %v1091_v60 = vpack.c.bf16 %v1089_v59, %v1089_v59 }
 0x5bb   : > { %3335 = vmatprep.mubr.msk.bf16.mxu1 %vm885_vm6, %v920_v52 }
 0x5bc   : > { %3336 = vmatmul.mubr.msk.bf16.vlgmr.msra.gmra.mxu1 %vm885_vm6, %v921_v54 }
 0x5bd   : > { %3348 = vmatpush3.bf16.msra.mxu1 %v1104_v39  ;;  %3351 = vmatprep.mubr.msk.bf16.mxu1 %vm885_vm6, %v1090_v56 }
 0x5be   : > { %3349 = vmatprep.subr.bf16.mxu1 %v1093_v57 }
 0x5c1   : > { %3350 = vmatpush3.bf16.msra.mxu1 %v1093_v57 }
 0x5c2   : > { %3519 = vmatprep.subr.msk.bf16.mxu1 %vm821_vm5, %v1161_v58 }
 0x5c4   : > { %3352 = vmatmul.mubr.msk.bf16.vlgmr.msra.gmra.mxu1 %vm885_vm6, %v1091_v60 }
 0x5c5   : > { %3356 = vmatpush3.bf16.xpose.msra.mxu1 %v1172_v62  ;;  %3359 = vmatprep.mubr.msk.bf16.mxu1 %vm821_vm5, %v1155_v61 }
 0x5c6   : > { %3520 = vmatprep.subr.msk.bf16.mxu1 %vm821_vm5, %v1159_v63 }
 0x5cd   : > { %3358 = vmatpush3.bf16.xpose.msra.mxu1 %v1169_v0 }
 0x5d4   : > { %3360 = vmatmul.mubr.msk.bf16.vlgmr.msra.gmra.mxu1 %vm821_vm5, %v1157_v1 }
 0x67c   : > { %v4145_v2 = vpop.f32.mrf.mxu1 }
 0x67e   : > { %v4147_v3 = vpop.f32.mrf.mxu1 }
 0x680   : > { %v3338_v4 = vpop.f32.mrf.mxu1 }
 0x682   : > { %v4149_v5 = vpop.f32.mrf.mxu1 }
 0x684   : > { %v4151_v6 = vpop.f32.mrf.mxu1 }
 0x686   : > { %v4153_v7 = vpop.f32.mrf.mxu1 }
 0x688   : > { %v3354_v8 = vpop.f32.mrf.mxu1 }
 0x68a   : > { %v4155_v9 = vpop.f32.mrf.mxu1 }
 0x68b   : > { %v3587_v10 = vpack.i.bf16 %v4155_v9, %v4153_v7 }
 0x694   : > { %v3361_v11 = vpop.f32.mrf.mxu1 }
 0x695   : > { %v1224_v15 = vmul.f32 0.35355338, %v3361_v11 }
 0x696   : > { %v1208_v12 = vpop.f32.mrf.mxu1 }
 0x697   : > { %v1222_v13 = vmul.f32 0.35355338, %v1208_v12  ;;  %v1231_v19 = vsel %vm892_vm7, %v1224_v15, -inf }
 0x698   : > { %v3362_v14 = vpop.f32.mrf.mxu1 }
 0x699   : > { %v1225_v16 = vsel %vm885_vm6, %v1222_v13, -inf }
 0x69a   : > { %1226 = vmax.xlane.f32.xlu0 %v1225_v16  ;;  %v1211_v17 = vpop.f32.mrf.mxu1 }
 0x69b   : > { %v1223_v18 = vmul.f32 0.35355338, %v1211_v17 }
 0x69d   : > { %v1228_v21 = vsel %vm885_vm6, %v1223_v18, -inf }
 0x69e   : > { %1232 = vmax.xlane.f32.xlu0 %v1231_v19  ;;  %1229 = vmax.xlane.f32.xlu1 %v1228_v21 }
 0x723   : > { %v1227_v22 = vpop.xlane.xlu0 %1226 }
 0x724   : > { %v1234_v23 = vsub.f32 %v1222_v13, %v1227_v22 }
 0x726   : > { %v1237_v24 = vmul.f32 1.442695, %v1234_v23 }
 0x727   : > { %v1233_v27 = vpop.xlane.xlu0 %1232  ;;  %v1230_v28 = vpop.xlane.xlu1 %1229 }
 0x728   : > { %3647 = vpow2.f32 %v1237_v24  ;;  %v1236_v29 = vsub.f32 %v1224_v15, %v1233_v27  ;;  %v1235_v32 = vsub.f32 %v1223_v18, %v1230_v28 }
 0x72a   : > { %v1241_v33 = vmul.f32 1.442695, %v1236_v29  ;;  %v1239_v35 = vmul.f32 1.442695, %v1235_v32 }
 0x72c   : > { %3649 = vpow2.f32 %v1241_v33 }
 0x72d   : > { %3651 = vpow2.f32 %v1239_v35 }
 0x735   : > { %v3648_v36 = vpop.eup %3647 }
 0x736   : > { %v1243_v37 = vsel %vm885_vm6, %v3648_v36, 0.0 }
 0x737   : > { %1244 = vadd.xlane.f32.xlu0 %v1243_v37 }
 0x739   : > { %v3650_v38 = vpop.eup %3649 }
 0x73a   : > { %v3652_v39 = vpop.eup %3651  ;;  %v1249_v40 = vsel %vm892_vm7, %v3650_v38, 0.0 }
 0x73b   : > { %1250 = vadd.xlane.f32.xlu1 %v1249_v40  ;;  %v1246_v41 = vsel %vm885_vm6, %v3652_v39, 0.0 }
 0x73c   : > { %1247 = vadd.xlane.f32.xlu0 %v1246_v41 }
 0x74c   : > { %1260 = vrot.lane.b32.xlu1 %v4064_v26, %s4664_s2 }
 0x750   : > { %1328 = vrot.lane.b32.xlu1 %v4060_v20, %s4656_s28 }
 0x752   : > { %1262 = vrot.lane.b32.xlu0 %v4060_v20, %s4664_s2  ;;  %s4702_s2 = smov 8  }
 0x754   : > { %1326 = vrot.lane.b32.xlu1 %v4064_v26, %s4656_s28  ;;  %s4658_s28 = smov 16  }
 0x756   : > { %1322 = vrot.lane.b32.xlu0 %v4064_v26, %s4654_s22 }
 0x758   : > { %1324 = vrot.lane.b32.xlu1 %v4060_v20, %s4654_s22  ;;  %s4660_s22 = smov 8  }
 0x7c0   : > { %v1245_v42 = vpop.xlane.xlu0 %1244 }
 0x7c1   : > { %3653 = vrcp.f32 %v1245_v42 }
 0x7c4   : > { %v1251_v43 = vpop.xlane.xlu1 %1250 }
 0x7c5   : > { %v1248_v44 = vpop.xlane.xlu0 %1247  ;;  %3655 = vrcp.f32 %v1251_v43 }
 0x7c6   : > { %3657 = vrcp.f32 %v1248_v44 }
 0x7c8   : > { %v1261_v47 = vpop.permute.xlu1 %1260 }
 0x7c9   : > { %v1263_v45 = vpop.permute.xlu0 %1262 }
 0x7ca   : > { %v1272_v46 = vand.u32 %v1263_v45, %v4128_v34 }
 0x7cc   : > { %3363 = vmatprep.subr.bf16.mxu0 %v1272_v46  ;;  %v1329_v49 = vpop.permute.xlu1 %1328 }
 0x7cd   : > { %3364 = vmatpush3.bf16.msra.mxu0 %v1272_v46  ;;  %v1323_v57 = vpop.permute.xlu0 %1322  ;;  %v1340_v58 = vsel %vm821_vm5, %v1329_v49, 0 }
 0x7ce   : > { %3365 = vmatprep.subr.bf16.mxu0 %v1261_v47  ;;  %v3654_v48 = vpop.eup %3653 }
 0x7cf   : > { %v1255_v53 = vmul.f32 %v3654_v48, %v3648_v36 }
 0x7d0   : > { %v1327_v59 = vpop.permute.xlu1 %1326 }
 0x7d1   : > { %3366 = vmatpush3.bf16.msra.mxu0 %v1261_v47  ;;  %v1337_v60 = vsel %vm821_vm5, %v1327_v59, 0 }
 0x7d2   : > { %v3656_v50 = vpop.eup %3655  ;;  %3521 = vmatprep.subr.msk.bf16.mxu0 %vm821_vm5, %v1329_v49  ;;  %v1539_v49 = vld [vmem:[%s4636_s9 + $0x10] sm:$0xff] }
 0x7d3   : > { %v3658_v51 = vpop.eup %3657  ;;  %v1257_v52 = vmul.f32 %v3656_v50, %v3650_v38  ;;  %v1540_v50 = vld [vmem:[%s4636_s9 + $0x18] sm:$0xff] }
 0x7d4   : > { %v1256_v54 = vmul.f32 %v3658_v51, %v3652_v39  ;;  %v1325_v61 = vpop.permute.xlu1 %1324  ;;  %v1544_v51 = vpack.c.bf16 %v1540_v50, %v1539_v49  ;;  %v1673_v49 = vld [vmem:[%s4640_s13 + $0x10] sm:$0xff]  ;;  %v1674_v50 = vld [vmem:[%s4640_s13 + $0x18] sm:$0xff] }
 0x7d5   : > { %v1259_v55 = vpack.c.bf16 %v1257_v52, %v1257_v52  ;;  %v1537_v52 = vld [vmem:[%s4636_s9] sm:$0xff] }
 0x7d6   : > { %v1258_v56 = vpack.c.bf16 %v1256_v54, %v1255_v53  ;;  %v1538_v53 = vld [vmem:[%s4636_s9 + $0x8] sm:$0xff] }
 0x7d7   : > { %v1543_v54 = vpack.c.bf16 %v1538_v53, %v1537_v52  ;;  %v1671_v52 = vld [vmem:[%s4640_s13] sm:$0xff]  ;;  %v1672_v53 = vld [vmem:[%s4640_s13 + $0x8] sm:$0xff] }
 0x7d8   : > { %3367 = vmatprep.mubr.msk.bf16.mxu0 %vm885_vm6, %v1258_v56 }
 0x7d9   : > { %3368 = vmatmul.mubr.msk.bf16.vlgmr.msra.gmra.mxu0 %vm885_vm6, %v1259_v55 }
 0x7da   : > { %3372 = vmatpush3.bf16.xpose.msra.mxu0 %v1340_v58  ;;  %3375 = vmatprep.mubr.msk.bf16.mxu0 %vm821_vm5, %v1323_v57 }
 0x7db   : > { %3522 = vmatprep.subr.msk.bf16.mxu0 %vm821_vm5, %v1327_v59 }
 0x7e2   : > { %3374 = vmatpush3.bf16.xpose.msra.mxu0 %v1337_v60 }
 0x7e9   : > { %3376 = vmatmul.mubr.msk.bf16.vlgmr.msra.gmra.mxu0 %vm821_vm5, %v1325_v61 }
 0x899   : > { %v3369_v62 = vpop.f32.mrf.mxu0 }
 0x89b   : > { %v1308_v63 = vpop.f32.mrf.mxu0 }
 0x89d   : > { %v3370_v0 = vpop.f32.mrf.mxu0 }
 0x89f   : > { %v1311_v1 = vpop.f32.mrf.mxu0 }
 0x8a0   : > { %v3592_v4 = vpack.i.bf16 %v1311_v1, %v1308_v63 }
 0x8a9   : > { %v3377_v8 = vpop.f32.mrf.mxu0 }
 0x8aa   : > { %v1392_v14 = vmul.f32 0.35355338, %v3377_v8 }
 0x8ab   : > { %v1376_v11 = vpop.f32.mrf.mxu0 }
 0x8ac   : > { %v1390_v12 = vmul.f32 0.35355338, %v1376_v11  ;;  %v1399_v18 = vsel %vm892_vm7, %v1392_v14, -inf }
 0x8ad   : > { %v3378_v13 = vpop.f32.mrf.mxu0 }
 0x8ae   : > { %v1393_v15 = vsel %vm885_vm6, %v1390_v12, -inf }
 0x8af   : > { %1394 = vmax.xlane.f32.xlu0 %v1393_v15  ;;  %v1379_v16 = vpop.f32.mrf.mxu0 }
 0x8b0   : > { %v1391_v17 = vmul.f32 0.35355338, %v1379_v16 }
 0x8b2   : > { %v1396_v19 = vsel %vm885_vm6, %v1391_v17, -inf }
 0x8b3   : > { %1400 = vmax.xlane.f32.xlu0 %v1399_v18  ;;  %1397 = vmax.xlane.f32.xlu1 %v1396_v19 }
 0x938   : > { %v1395_v21 = vpop.xlane.xlu0 %1394 }
 0x939   : > { %v1402_v22 = vsub.f32 %v1390_v12, %v1395_v21 }
 0x93b   : > { %v1405_v23 = vmul.f32 1.442695, %v1402_v22 }
 0x93c   : > { %v1401_v24 = vpop.xlane.xlu0 %1400  ;;  %v1398_v27 = vpop.xlane.xlu1 %1397 }
 0x93d   : > { %3659 = vpow2.f32 %v1405_v23  ;;  %v1404_v28 = vsub.f32 %v1392_v14, %v1401_v24  ;;  %v1403_v29 = vsub.f32 %v1391_v17, %v1398_v27 }
 0x93f   : > { %v1409_v32 = vmul.f32 1.442695, %v1404_v28  ;;  %v1407_v33 = vmul.f32 1.442695, %v1403_v29 }
 0x941   : > { %3661 = vpow2.f32 %v1409_v32  ;;  %v3128_v32 = vld [vmem:[%s4637_s10] ss:$0 sm:$0xff] }
 0x942   : > { %3663 = vpow2.f32 %v1407_v33 }
 0x94a   : > { %v3660_v35 = vpop.eup %3659 }
 0x94b   : > { %v1411_v36 = vsel %vm885_vm6, %v3660_v35, 0.0 }
 0x94c   : > { %1412 = vadd.xlane.f32.xlu0 %v1411_v36 }
 0x94e   : > { %v3662_v37 = vpop.eup %3661 }
 0x94f   : > { %v3664_v38 = vpop.eup %3663  ;;  %v1417_v39 = vsel %vm892_vm7, %v3662_v37, 0.0 }
 0x950   : > { %1418 = vadd.xlane.f32.xlu1 %v1417_v39  ;;  %v1414_v40 = vsel %vm885_vm6, %v3664_v38, 0.0 }
 0x951   : > { %1415 = vadd.xlane.f32.xlu0 %v1414_v40 }
 0x961   : > { %1428 = vrot.lane.b32.xlu1 %v4064_v26, %s4662_s27 }
 0x965   : > { %3588 = vrot.lane.b32.xlu1 %v3587_v10, %s4660_s22 }
 0x967   : > { %1430 = vrot.lane.b32.xlu0 %v4060_v20, %s4662_s27 }
 0x969   : > { %1497 = vrot.lane.b32.xlu1 %v4151_v6, %s4660_s22  ;;  %s4703_s22 = smov 16  }
 0x96b   : > { %3593 = vrot.lane.b32.xlu0 %v3592_v4, %s4658_s28 }
 0x96d   : > { %1509 = vrot.lane.b32.xlu1 %v3369_v62, %s4658_s28  ;;  %s4674_s28 = smov 24  }
 0x9d5   : > { %v1413_v41 = vpop.xlane.xlu0 %1412 }
 0x9d6   : > { %3665 = vrcp.f32 %v1413_v41 }
 0x9d9   : > { %v1419_v26 = vpop.xlane.xlu1 %1418 }
 0x9da   : > { %v1416_v42 = vpop.xlane.xlu0 %1415  ;;  %3667 = vrcp.f32 %v1419_v26 }
 0x9db   : > { %3669 = vrcp.f32 %v1416_v42 }
 0x9dd   : > { %v1429_v9 = vpop.permute.xlu1 %1428 }
 0x9de   : > { %v1431_v43 = vpop.permute.xlu0 %1430 }
 0x9df   : > { %v1440_v7 = vand.u32 %v1431_v43, %v4128_v34 }
 0x9e1   : > { %3379 = vmatprep.subr.bf16.mxu1 %v1440_v7  ;;  %v3589_v60 = vpop.permute.xlu1 %3588 }
 0x9e2   : > { %3380 = vmatpush3.bf16.msra.mxu1 %v1440_v7  ;;  %v3594_v62 = vpop.permute.xlu0 %3593  ;;  %v3591_v63 = vunpack.i.h.bf16 %v3589_v60  ;;  %v3590_v0 = vunpack.i.l.bf16 %v3589_v60 }
 0x9e3   : > { %3381 = vmatprep.subr.bf16.mxu1 %v1429_v9  ;;  %v3666_v20 = vpop.eup %3665  ;;  %v3596_v4 = vunpack.i.h.bf16 %v3594_v62  ;;  %v3595_v8 = vunpack.i.l.bf16 %v3594_v62 }
 0x9e4   : > { %v1423_v45 = vmul.f32 %v3666_v20, %v3660_v35  ;;  %v1527_v11 = vsel %vm821_vm5, %v4149_v5, %v3591_v63  ;;  %v1526_v12 = vsel %vm821_vm5, %v4147_v3, %v3590_v0 }
 0x9e5   : > { %v1498_v61 = vpop.permute.xlu1 %1497  ;;  %v1530_v21 = vsel %vm1529_vm8, %v1526_v12, %v3595_v8  ;;  %v1531_v5 = vsel %vm1529_vm8, %v1527_v11, %v3596_v4  ;;  %v3129_v4 = vld [vmem:[%s4638_s11] ss:$0 sm:$0xff] }
 0x9e6   : > { %3382 = vmatpush3.bf16.msra.mxu1 %v1429_v9  ;;  %v1528_v14 = vsel %vm821_vm5, %v4145_v2, %v1498_v61 }
 0x9e7   : > { %v3668_v6 = vpop.eup %3667  ;;  %3387 = vmatprep.subr.bf16.mxu1 %v1544_v51 }
 0x9e8   : > { %v3670_v10 = vpop.eup %3669  ;;  %v1425_v44 = vmul.f32 %v3668_v6, %v3662_v37 }
 0x9e9   : > { %v1424_v46 = vmul.f32 %v3670_v10, %v3664_v38  ;;  %v1510_v1 = vpop.permute.xlu1 %1509 }
 0x9ea   : > { %v1427_v47 = vpack.c.bf16 %v1425_v44, %v1425_v44  ;;  %v1532_v16 = vsel %vm1529_vm8, %v1528_v14, %v1510_v1 }
 0x9eb   : > { %v1426_v48 = vpack.c.bf16 %v1424_v46, %v1423_v45 }
 0x9ed   : > { %3383 = vmatprep.mubr.msk.bf16.mxu1 %vm885_vm6, %v1426_v48 }
 0x9ee   : > { %3384 = vmatmul.mubr.msk.bf16.vlgmr.msra.gmra.mxu1 %vm885_vm6, %v1427_v47 }
 0x9ef   : > { %3388 = vmatpush3.bf16.msra.mxu1 %v1544_v51  ;;  %v1678_v51 = vpack.c.bf16 %v1674_v50, %v1673_v49 }
 0x9f0   : > { %3389 = vmatprep.subr.bf16.mxu1 %v1543_v54 }
 0x9f1   : > { %3395 = vmatprep.subr.bf16.mxu0 %v1678_v51 }
 0x9f2   : > { %3396 = vmatpush3.bf16.msra.mxu0 %v1678_v51 }
 0x9f3   : > { %3390 = vmatpush3.bf16.msra.mxu1 %v1543_v54  ;;  %v1677_v54 = vpack.c.bf16 %v1672_v53, %v1671_v52 }
 0x9f5   : > { %3397 = vmatprep.subr.bf16.mxu0 %v1677_v54 }
 0x9f6   : > { %3398 = vmatpush3.bf16.msra.mxu0 %v1677_v54 }
 0xaae   : > { %v3385_v55 = vpop.f32.mrf.mxu1 }
 0xaaf   : > { %1521 = vrot.lane.b32.xlu1 %v3385_v55, %s4674_s28 }
 0xab0   : > { %v1476_v56 = vpop.f32.mrf.mxu1 }
 0xab2   : > { %v3386_v57 = vpop.f32.mrf.mxu1 }
 0xab4   : > { %v1479_v58 = vpop.f32.mrf.mxu1 }
 0xab5   : > { %v3597_v59 = vpack.i.bf16 %v1479_v58, %v1476_v56 }
 0xab7   : > { %3598 = vrot.lane.b32.xlu0 %v3597_v59, %s4674_s28  ;;  %s4699_s28 = smov 72  }
 0xb21   : > { %v1522_v13 = vpop.permute.xlu1 %1521 }
 0xb22   : > { %v1536_v19 = vsel %vm1533_vm9, %v1532_v16, %v1522_v13 }
 0xb23   : > { %v1542_v24 = vpack.c.bf16 %v1536_v19, %v1536_v19 }
 0xb29   : > { %v3599_v15 = vpop.permute.xlu0 %3598 }
 0xb2a   : > { %v3601_v17 = vunpack.i.h.bf16 %v3599_v15  ;;  %v3600_v18 = vunpack.i.l.bf16 %v3599_v15  ;;  %v3130_v15 = vld [vmem:[%s4639_s12] ss:$0 sm:$0xff] }
 0xb2c   : > { %v1534_v22 = vsel %vm1533_vm9, %v1530_v21, %v3600_v18  ;;  %v1535_v3 = vsel %vm1533_vm9, %v1531_v5, %v3601_v17 }
 0xb2d   : > { %v1541_v23 = vpack.c.bf16 %v1535_v3, %v1534_v22  ;;  %v1773_v3 = vld [vmem:[%s4642_s15 + $0x30] sm:$0xff] }
 0xb2f   : > { %3391 = vmatprep.mubr.msk.bf16.mxu1 %vm684_vm3, %v1541_v23  ;;  %v1774_v23 = vld [vmem:[%s4642_s15 + $0x38] sm:$0xff] }
 0xb30   : > { %3392 = vmatmul.mubr.msk.bf16.vlgmr.msra.gmra.mxu1 %vm684_vm3, %v1542_v24  ;;  %v1780_v24 = vpack.c.bf16 %v1774_v23, %v1773_v3 }
 0xb32   : > { %3403 = vmatprep.subr.bf16.mxu1 %v1780_v24 }
 0xb33   : > { %3404 = vmatpush3.bf16.msra.mxu1 %v1780_v24 }
 0xbf0   : > { %v3393_v2 = vpop.f32.mrf.mxu1 }
 0xbf1   : > { %v1601_v28 = vadd.f32 %v3393_v2, %v4023_v30  ;;  %v1771_v2 = vld [vmem:[%s4642_s15 + $0x20] sm:$0xff] }
 0xbf2   : > { %v1585_v27 = vpop.f32.mrf.mxu1 }
 0xbf3   : > { %v1599_v29 = vadd.f32 %v1585_v27, %v4015_v25  ;;  %v4242_v37 = vadd.f32 %v3128_v32, %v1601_v28  ;;  %v1772_v27 = vld [vmem:[%s4642_s15 + $0x28] sm:$0xff] }
 0xbf4   : > { %v3394_v33 = vpop.f32.mrf.mxu1  ;;  %v1779_v28 = vpack.c.bf16 %v1772_v27, %v1771_v2 }
 0xbf5   : > { %v4240_v35 = vadd.f32 %v3128_v32, %v1599_v29  ;;  %v1620_v25 = vsel %vm691_vm4, %v4242_v37, 0.0  ;;  %v1769_v29 = vld [vmem:[%s4642_s15 + $0x10] sm:$0xff] }
 0xbf6   : > { %v1588_v36 = vpop.f32.mrf.mxu1  ;;  %3405 = vmatprep.subr.bf16.mxu1 %v1779_v28 }
 0xbf7   : > { %v1600_v38 = vadd.f32 %v1588_v36, %v4025_v31  ;;  %v1614_v39 = vsel %vm684_vm3, %v4240_v35, 0.0  ;;  %3406 = vmatpush3.bf16.msra.mxu1 %v1779_v28  ;;  %v1767_v36 = vld [vmem:[%s4642_s15] sm:$0xff] }
 0xbf8   : > { %1615 = vadd.xlane.f32.xlu0 %v1614_v39 }
 0xbf9   : > { %v4247_v40 = vadd.f32 %v3128_v32, %v1600_v38  ;;  %v1770_v32 = vld [vmem:[%s4642_s15 + $0x18] sm:$0xff]  ;;  %v1768_v38 = vld [vmem:[%s4642_s15 + $0x8] sm:$0xff] }
 0xbfa   : > { %v1778_v33 = vpack.c.bf16 %v1770_v32, %v1769_v29  ;;  %v1777_v39 = vpack.c.bf16 %v1768_v38, %v1767_v36 }
 0xbfb   : > { %v1617_v30 = vsel %vm684_vm3, %v4247_v40, 0.0 }
 0xbfc   : > { %1621 = vadd.xlane.f32.xlu0 %v1620_v25  ;;  %1618 = vadd.xlane.f32.xlu1 %v1617_v30  ;;  %v3131_v25 = vld [vmem:[%s4641_s14] ss:$0 sm:$0xff] }
 0xbfd   : > { %3407 = vmatprep.subr.bf16.mxu1 %v1778_v33 }
 0xbfe   : > { %3408 = vmatpush3.bf16.msra.mxu1 %v1778_v33 }
 0xbff   : > { %3409 = vmatprep.subr.bf16.mxu1 %v1777_v39 }
 0xc02   : > { %3410 = vmatpush3.bf16.msra.mxu1 %v1777_v39 }
 0xc81   : > { %v1616_v41 = vpop.xlane.xlu0 %1615 }
 0xc82   : > { %v1623_v26 = vmul.f32 0.03125, %v1616_v41 }
 0xc84   : > { %v1626_v42 = vsub.f32 %v4240_v35, %v1623_v26 }
 0xc85   : > { %v1622_v43 = vpop.xlane.xlu0 %1621  ;;  %v1619_v31 = vpop.xlane.xlu1 %1618 }
 0xc86   : > { %v1625_v7 = vmul.f32 0.03125, %v1622_v43  ;;  %v1624_v9 = vmul.f32 0.03125, %v1619_v31  ;;  %v1629_v20 = vmul.f32 %v1626_v42, %v1626_v42 }
 0xc88   : > { %v1628_v6 = vsub.f32 %v4242_v37, %v1625_v7  ;;  %v1627_v10 = vsub.f32 %v4247_v40, %v1624_v9  ;;  %v1632_v44 = vsel %vm684_vm3, %v1629_v20, 0.0 }
 0xc89   : > { %1633 = vadd.xlane.f32.xlu0 %v1632_v44 }
 0xc8a   : > { %v1631_v45 = vmul.f32 %v1628_v6, %v1628_v6  ;;  %v1630_v46 = vmul.f32 %v1627_v10, %v1627_v10 }
 0xc8c   : > { %v1638_v47 = vsel %vm691_vm4, %v1631_v45, 0.0  ;;  %v1635_v48 = vsel %vm684_vm3, %v1630_v46, 0.0 }
 0xc8d   : > { %1639 = vadd.xlane.f32.xlu1 %v1638_v47  ;;  %1636 = vadd.xlane.f32.xlu0 %v1635_v48 }
 0xd12   : > { %v1634_v55 = vpop.xlane.xlu0 %1633 }
 0xd13   : > { %v1641_v56 = vmul.f32 0.03125, %v1634_v55 }
 0xd15   : > { %v1644_v57 = vadd.f32 1e-05, %v1641_v56 }
 0xd16   : > { %v1637_v58 = vpop.xlane.xlu0 %1636  ;;  %v1640_v59 = vpop.xlane.xlu1 %1639 }
 0xd17   : > { %3671 = vrsqrt.f32 %v1644_v57  ;;  %v1642_v60 = vmul.f32 0.03125, %v1637_v58  ;;  %v1643_v61 = vmul.f32 0.03125, %v1640_v59 }
 0xd19   : > { %v1645_v62 = vadd.f32 1e-05, %v1642_v60  ;;  %v1646_v63 = vadd.f32 1e-05, %v1643_v61 }
 0xd1b   : > { %3673 = vrsqrt.f32 %v1645_v62 }
 0xd1c   : > { %3675 = vrsqrt.f32 %v1646_v63 }
 0xd24   : > { %v3672_v0 = vpop.eup %3671 }
 0xd25   : > { %v1650_v1 = vmul.f32 %v3672_v0, %v1626_v42 }
 0xd27   : > { %v1659_v13 = vmul.f32 %v3129_v4, %v1650_v1 }
 0xd28   : > { %v3674_v8 = vpop.eup %3673 }
 0xd29   : > { %v3676_v11 = vpop.eup %3675  ;;  %v1651_v12 = vmul.f32 %v3674_v8, %v1627_v10  ;;  %v1668_v18 = vadd.f32 %v3130_v15, %v1659_v13 }
 0xd2a   : > { %v1652_v14 = vmul.f32 %v3676_v11, %v1628_v6 }
 0xd2b   : > { %v1660_v16 = vmul.f32 %v3129_v4, %v1651_v12 }
 0xd2c   : > { %v1661_v17 = vmul.f32 %v3129_v4, %v1652_v14 }
 0xd2d   : > { %v1669_v19 = vadd.f32 %v3130_v15, %v1660_v16  ;;  %v3136_v16 = vld [vmem:[%s4643_s16] ss:$0 sm:$0xff] }
 0xd2e   : > { %v1670_v21 = vadd.f32 %v3130_v15, %v1661_v17 }
 0xd2f   : > { %v1675_v5 = vpack.c.bf16 %v1669_v19, %v1668_v18 }
 0xd30   : > { %v1676_v22 = vpack.c.bf16 %v1670_v21, %v1670_v21 }
 0xd31   : > { %3399 = vmatprep.mubr.msk.bf16.mxu0 %vm684_vm3, %v1675_v5 }
 0xd32   : > { %3400 = vmatmul.mubr.msk.bf16.vlgmr.msra.gmra.mxu0 %vm684_vm3, %v1676_v22 }
 0xdf2   : > { %v3401_v30 = vpop.f32.mrf.mxu0 }
 0xdf3   : > { %v1735_v41 = vadd.f32 %v3401_v30, %v3131_v25 }
 0xdf4   : > { %v1726_v26 = vpop.f32.mrf.mxu0 }
 0xdf5   : > { %v1742_v42 = vmul.f32 %v1735_v41, %v1735_v41  ;;  %v1727_v43 = vadd.f32 %v3131_v25, %v1726_v26  ;;  %v3143_v26 = vld [vmem:[%s4634_s7 + $0x30] sm:$0xff] }
 0xdf6   : > { %v3402_v31 = vpop.f32.mrf.mxu0 }
 0xdf7   : > { %v1745_v7 = vmul.f32 %v1742_v42, %v1735_v41  ;;  %v1740_v9 = vmul.f32 %v1727_v43, %v1727_v43  ;;  %v3144_v42 = vld [vmem:[%s4634_s7 + $0x38] sm:$0xff]  ;;  %v3141_v31 = vld [vmem:[%s4634_s7 + $0x20] sm:$0xff] }
 0xdf8   : > { %v1729_v20 = vpop.f32.mrf.mxu0 }
 0xdf9   : > { %v1748_v6 = vmul.f32 0.044715, %v1745_v7  ;;  %v1743_v10 = vmul.f32 %v1740_v9, %v1727_v43  ;;  %v1730_v44 = vadd.f32 %v3131_v25, %v1729_v20  ;;  %v3142_v7 = vld [vmem:[%s4634_s7 + $0x28] sm:$0xff] }
 0xdfa   : > { %v1917_v9 = vpack.c.bf16 %v3142_v7, %v3141_v31 }
 0xdfb   : > { %v1751_v45 = vadd.f32 %v1748_v6, %v1735_v41  ;;  %v1746_v46 = vmul.f32 0.044715, %v1743_v10  ;;  %v1741_v47 = vmul.f32 %v1730_v44, %v1730_v44 }
 0xdfd   : > { %v1754_v48 = vmul.f32 0.7978846, %v1751_v45  ;;  %v1749_v49 = vadd.f32 %v1746_v46, %v1727_v43  ;;  %v1744_v50 = vmul.f32 %v1741_v47, %v1730_v44 }
 0xdff   : > { %3677 = vtanh.f32 %v1754_v48  ;;  %v1752_v51 = vmul.f32 0.7978846, %v1749_v49  ;;  %v1747_v52 = vmul.f32 0.044715, %v1744_v50 }
 0xe01   : > { %3679 = vtanh.f32 %v1752_v51  ;;  %v1750_v53 = vadd.f32 %v1747_v52, %v1730_v44  ;;  %v3139_v52 = vld [vmem:[%s4632_s5 + $0x1] ss:$0 sm:$0xff] }
 0xe03   : > { %v1753_v54 = vmul.f32 0.7978846, %v1750_v53 }
 0xe05   : > { %3681 = vtanh.f32 %v1753_v54 }
 0xe0c   : > { %v3678_v55 = vpop.eup %3677 }
 0xe0d   : > { %v1760_v57 = vadd.f32 1.0, %v3678_v55 }
 0xe0e   : > { %v3680_v56 = vpop.eup %3679 }
 0xe0f   : > { %v1758_v58 = vadd.f32 1.0, %v3680_v56  ;;  %v1763_v60 = vmul.f32 0.5, %v1760_v57 }
 0xe11   : > { %v1761_v61 = vmul.f32 0.5, %v1758_v58  ;;  %v1766_v0 = vmul.f32 %v1763_v60, %v1735_v41  ;;  %v3140_v58 = vld [vmem:[%s4633_s6 + $0x1] ss:$0 sm:$0xff] }
 0xe12   : > { %v3682_v59 = vpop.eup %3681 }
 0xe13   : > { %v1759_v62 = vadd.f32 1.0, %v3682_v59  ;;  %v1764_v1 = vmul.f32 %v1761_v61, %v1727_v43  ;;  %v1776_v11 = vpack.c.bf16 %v1766_v0, %v1766_v0  ;;  %v1918_v43 = vpack.c.bf16 %v3144_v42, %v3143_v26 }
 0xe15   : > { %v1762_v63 = vmul.f32 0.5, %v1759_v62  ;;  %3415 = vmatprep.subr.bf16.mxu0 %v1918_v43 }
 0xe16   : > { %3416 = vmatpush3.bf16.msra.mxu0 %v1918_v43 }
 0xe17   : > { %v1765_v4 = vmul.f32 %v1762_v63, %v1730_v44  ;;  %3417 = vmatprep.subr.bf16.mxu0 %v1917_v9 }
 0xe19   : > { %v1775_v8 = vpack.c.bf16 %v1765_v4, %v1764_v1  ;;  %v3146_v4 = vld [vmem:[%s4635_s8 + $0x1] ss:$0 sm:$0xff] }
 0xe1a   : > { %3418 = vmatpush3.bf16.msra.mxu0 %v1917_v9 }
 0xe1b   : > { %3411 = vmatprep.mubr.msk.bf16.mxu1 %vm1781_vm10, %v1775_v8 }
 0xe1c   : > { %3412 = vmatmul.mubr.msk.bf16.vlgmr.msra.gmra.mxu1 %vm1781_vm10, %v1776_v11 }
 0xedc   : > { %v3413_v12 = vpop.f32.mrf.mxu1 }
 0xedd   : > { %v1838_v14 = vadd.f32 %v3413_v12, %v4242_v37 }
 0xede   : > { %v1822_v13 = vpop.f32.mrf.mxu1 }
 0xedf   : > { %v1836_v15 = vadd.f32 %v1822_v13, %v4240_v35  ;;  %v4315_v21 = vadd.f32 %v3136_v16, %v1838_v14 }
 0xee0   : > { %v3414_v17 = vpop.f32.mrf.mxu1 }
 0xee1   : > { %v4313_v18 = vadd.f32 %v3136_v16, %v1836_v15  ;;  %v1859_v35 = vsel %vm691_vm4, %v4315_v21, 0.0 }
 0xee2   : > { %v1825_v19 = vpop.f32.mrf.mxu1 }
 0xee3   : > { %v1837_v5 = vadd.f32 %v1825_v19, %v4247_v40  ;;  %v1853_v22 = vsel %vm684_vm3, %v4313_v18, 0.0 }
 0xee4   : > { %1854 = vadd.xlane.f32.xlu0 %v1853_v22 }
 0xee5   : > { %v4320_v3 = vadd.f32 %v3136_v16, %v1837_v5 }
 0xee7   : > { %v1856_v37 = vsel %vm684_vm3, %v4320_v3, 0.0 }
 0xee8   : > { %1860 = vadd.xlane.f32.xlu0 %v1859_v35  ;;  %1857 = vadd.xlane.f32.xlu1 %v1856_v37 }
 0xf6d   : > { %v1855_v23 = vpop.xlane.xlu0 %1854 }
 0xf6e   : > { %v1862_v24 = vmul.f32 0.03125, %v1855_v23 }
 0xf70   : > { %v1865_v2 = vsub.f32 %v4313_v18, %v1862_v24 }
 0xf71   : > { %v1861_v27 = vpop.xlane.xlu0 %1860  ;;  %v1858_v40 = vpop.xlane.xlu1 %1857 }
 0xf72   : > { %v1864_v28 = vmul.f32 0.03125, %v1861_v27  ;;  %v1863_v29 = vmul.f32 0.03125, %v1858_v40  ;;  %v1868_v32 = vmul.f32 %v1865_v2, %v1865_v2 }
 0xf74   : > { %v1867_v33 = vsub.f32 %v4315_v21, %v1864_v28  ;;  %v1866_v36 = vsub.f32 %v4320_v3, %v1863_v29  ;;  %v1871_v38 = vsel %vm684_vm3, %v1868_v32, 0.0 }
 0xf75   : > { %1872 = vadd.xlane.f32.xlu1 %v1871_v38 }
 0xf76   : > { %v1870_v39 = vmul.f32 %v1867_v33, %v1867_v33  ;;  %v1869_v25 = vmul.f32 %v1866_v36, %v1866_v36 }
 0xf78   : > { %v1877_v30 = vsel %vm691_vm4, %v1870_v39, 0.0  ;;  %v1874_v41 = vsel %vm684_vm3, %v1869_v25, 0.0 }
 0xf79   : > { %1878 = vadd.xlane.f32.xlu1 %v1877_v30  ;;  %1875 = vadd.xlane.f32.xlu0 %v1874_v41 }
 0xffe   : > { %v1873_v20 = vpop.xlane.xlu1 %1872 }
 0xfff   : > { %v1880_v6 = vmul.f32 0.03125, %v1873_v20 }
0x1001   : > { %v1883_v10 = vadd.f32 1e-05, %v1880_v6 }
0x1002   : > { %v1876_v44 = vpop.xlane.xlu0 %1875  ;;  %v1879_v45 = vpop.xlane.xlu1 %1878 }
0x1003   : > { %3683 = vrsqrt.f32 %v1883_v10  ;;  %v1881_v46 = vmul.f32 0.03125, %v1876_v44  ;;  %v1882_v47 = vmul.f32 0.03125, %v1879_v45 }
0x1005   : > { %v1884_v48 = vadd.f32 1e-05, %v1881_v46  ;;  %v1885_v49 = vadd.f32 1e-05, %v1882_v47 }
0x1007   : > { %3685 = vrsqrt.f32 %v1884_v48 }
0x1008   : > { %3687 = vrsqrt.f32 %v1885_v49 }
0x1010   : > { %v3684_v50 = vpop.eup %3683 }
0x1011   : > { %v1889_v51 = vmul.f32 %v3684_v50, %v1865_v2 }
0x1013   : > { %v1898_v56 = vmul.f32 %v3139_v52, %v1889_v51 }
0x1014   : > { %v3686_v53 = vpop.eup %3685 }
0x1015   : > { %v3688_v54 = vpop.eup %3687  ;;  %v1890_v55 = vmul.f32 %v3686_v53, %v1866_v36  ;;  %v1907_v61 = vadd.f32 %v3140_v58, %v1898_v56 }
0x1016   : > { %v1891_v57 = vmul.f32 %v3688_v54, %v1867_v33 }
0x1017   : > { %v1899_v59 = vmul.f32 %v3139_v52, %v1890_v55 }
0x1018   : > { %v1900_v60 = vmul.f32 %v3139_v52, %v1891_v57 }
0x1019   : > { %v1908_v62 = vadd.f32 %v3140_v58, %v1899_v59 }
0x101a   : > { %v1909_v63 = vadd.f32 %v3140_v58, %v1900_v60 }
0x101b   : > { %v1915_v0 = vpack.c.bf16 %v1908_v62, %v1907_v61 }
0x101c   : > { %v1916_v1 = vpack.c.bf16 %v1909_v63, %v1909_v63 }
0x101d   : > { %3419 = vmatprep.mubr.msk.bf16.mxu0 %vm684_vm3, %v1915_v0 }
0x101e   : > { %3420 = vmatmul.mubr.msk.bf16.vlgmr.msra.gmra.mxu0 %vm684_vm3, %v1916_v1 }
0x10de   : > { %v3421_v8 = vpop.f32.mrf.mxu0 }
0x10df   : > { %v1976_v11 = vadd.f32 %v3421_v8, %v3146_v4 }
0x10e0   : > { %v1967_v12 = vpop.f32.mrf.mxu0 }
0x10e1   : > { %v4355_v13 = vpack.c.bf16 %v1976_v11, %v1976_v11  ;;  %v1968_v16 = vadd.f32 %v3146_v4, %v1967_v12 }
0x10e2   : > { %v3422_v14 = vpop.f32.mrf.mxu0 }
0x10e3   : > { %1987 = vrot.lane.b32.xlu0 %v4355_v13, %s3815_s0 }
0x10e4   : > { %v1970_v15 = vpop.f32.mrf.mxu0 }
0x10e5   : > { %v1971_v17 = vadd.f32 %v3146_v4, %v1970_v15 }
0x10e7   : > { %v4359_v19 = vpack.c.bf16 %v1971_v17, %v1968_v16 }
0x10e9   : > { %1985 = vrot.lane.b32.xlu1 %v4359_v19, %s3815_s0  ;;  %3427 = vmatprep.mubr.msk.bf16.mxu0 %vm821_vm5, %v4359_v19  ;;  %s4694_s0 = smov 88  }
0x1155   : > { %v1988_v5 = vpop.permute.xlu0 %1987 }
0x1156   : > { %v1999_v22 = vsel %vm821_vm5, %v1988_v5, 0  ;;  %3523 = vmatprep.subr.msk.bf16.mxu0 %vm821_vm5, %v1988_v5 }
0x1157   : > { %3424 = vmatpush3.bf16.xpose.msra.mxu0 %v1999_v22 }
0x115b   : > { %v1986_v35 = vpop.permute.xlu1 %1985 }
0x115c   : > { %3524 = vmatprep.subr.msk.bf16.mxu0 %vm821_vm5, %v1986_v35  ;;  %v1996_v37 = vsel %vm821_vm5, %v1986_v35, 0 }
0x115f   : > { %3426 = vmatpush3.bf16.xpose.msra.mxu0 %v1996_v37 }
0x1166   : > { %3428 = vmatmul.mubr.msk.bf16.vlgmr.msra.gmra.mxu0 %vm821_vm5, %v4355_v13 }
0x1226   : > { %v3429_v23 = vpop.f32.mrf.mxu0 }
0x1227   : > { %v2051_v32 = vmul.f32 0.35355338, %v3429_v23 }
0x1228   : > { %v2035_v24 = vpop.f32.mrf.mxu0 }
0x1229   : > { %v2049_v2 = vmul.f32 0.35355338, %v2035_v24  ;;  %v2058_v36 = vsel %vm892_vm7, %v2051_v32, -inf }
0x122a   : > { %v3430_v27 = vpop.f32.mrf.mxu0 }
0x122b   : > { %v2052_v40 = vsel %vm885_vm6, %v2049_v2, -inf }
0x122c   : > { %2053 = vmax.xlane.f32.xlu1 %v2052_v40  ;;  %v2038_v28 = vpop.f32.mrf.mxu0 }
0x122d   : > { %v2050_v29 = vmul.f32 0.35355338, %v2038_v28 }
0x122f   : > { %v2055_v33 = vsel %vm885_vm6, %v2050_v29, -inf }
0x1230   : > { %2056 = vmax.xlane.f32.xlu0 %v2055_v33 }
0x1234   : > { %2059 = vmax.xlane.f32.xlu0 %v2058_v36 }
0x12b5   : > { %v2054_v38 = vpop.xlane.xlu1 %2053 }
0x12b6   : > { %v2061_v30 = vsub.f32 %v2049_v2, %v2054_v38 }
0x12b8   : > { %v2064_v43 = vmul.f32 1.442695, %v2061_v30 }
0x12b9   : > { %v2057_v39 = vpop.xlane.xlu0 %2056 }
0x12ba   : > { %v2062_v25 = vsub.f32 %v2050_v29, %v2057_v39 }
0x12bc   : > { %v2066_v41 = vmul.f32 1.442695, %v2062_v25 }
0x12bd   : > { %v2060_v26 = vpop.xlane.xlu0 %2059 }
0x12be   : > { %3689 = vpow2.f32 %v2066_v41  ;;  %v2063_v42 = vsub.f32 %v2051_v32, %v2060_v26 }
0x12c0   : > { %v2068_v31 = vmul.f32 1.442695, %v2063_v42 }
0x12c2   : > { %3691 = vpow2.f32 %v2068_v31 }
0x12c3   : > { %3693 = vpow2.f32 %v2064_v43 }
0x12cb   : > { %v3690_v7 = vpop.eup %3689 }
0x12cc   : > { %v2073_v9 = vsel %vm885_vm6, %v3690_v7, 0.0 }
0x12cd   : > { %2074 = vadd.xlane.f32.xlu0 %v2073_v9 }
0x12cf   : > { %v3692_v20 = vpop.eup %3691 }
0x12d0   : > { %v2076_v6 = vsel %vm892_vm7, %v3692_v20, 0.0  ;;  %v3694_v10 = vpop.eup %3693 }
0x12d1   : > { %2077 = vadd.xlane.f32.xlu1 %v2076_v6  ;;  %v2070_v44 = vsel %vm885_vm6, %v3694_v10, 0.0 }
0x12d5   : > { %2071 = vadd.xlane.f32.xlu1 %v2070_v44 }
0x12e3   : > { %2089 = vrot.lane.b32.xlu0 %v4355_v13, %s3818_s25 }
0x12e6   : > { %2087 = vrot.lane.b32.xlu1 %v4359_v19, %s3818_s25  ;;  %s4696_s25 = smov 80  }
0x12e7   : > { %2149 = vrot.lane.b32.xlu0 %v4359_v19, %s3816_s21 }
0x12ea   : > { %2155 = vrot.lane.b32.xlu1 %v4355_v13, %s4694_s0 }
0x12ee   : > { %2153 = vrot.lane.b32.xlu1 %v4359_v19, %s4694_s0  ;;  %s3830_s0 = smov [#allocation2]  }
0x12f2   : > { %2151 = vrot.lane.b32.xlu1 %v4355_v13, %s3816_s21  ;;  %s4695_s21 = smov 56  }
0x1356   : > { %v2075_v45 = vpop.xlane.xlu0 %2074 }
0x135a   : > { %v2078_v46 = vpop.xlane.xlu1 %2077  ;;  %v2090_v47 = vpop.permute.xlu0 %2089 }
0x135b   : > { %v2099_v48 = vand.u32 %v2090_v47, %v4128_v34  ;;  %3695 = vrcp.f32 %v2078_v46 }
0x135c   : > { %3697 = vrcp.f32 %v2075_v45 }
0x135d   : > { %3431 = vmatprep.subr.bf16.mxu1 %v2099_v48 }
0x135e   : > { %v2072_v49 = vpop.xlane.xlu1 %2071  ;;  %3432 = vmatpush3.bf16.msra.mxu1 %v2099_v48  ;;  %v2150_v60 = vpop.permute.xlu0 %2149 }
0x135f   : > { %3699 = vrcp.f32 %v2072_v49 }
0x1362   : > { %v2088_v50 = vpop.permute.xlu1 %2087 }
0x1363   : > { %3433 = vmatprep.subr.bf16.mxu1 %v2088_v50 }
0x1364   : > { %3434 = vmatpush3.bf16.msra.mxu1 %v2088_v50 }
0x1366   : > { %v2156_v51 = vpop.permute.xlu1 %2155 }
0x1367   : > { %3525 = vmatprep.subr.msk.bf16.mxu1 %vm821_vm5, %v2156_v51  ;;  %v2167_v61 = vsel %vm821_vm5, %v2156_v51, 0 }
0x1368   : > { %v3696_v52 = vpop.eup %3695 }
0x1369   : > { %v3698_v53 = vpop.eup %3697  ;;  %v2084_v55 = vmul.f32 %v3696_v52, %v3692_v20 }
0x136a   : > { %v2083_v57 = vmul.f32 %v3698_v53, %v3690_v7  ;;  %v2154_v62 = vpop.permute.xlu1 %2153 }
0x136b   : > { %v2086_v59 = vpack.c.bf16 %v2084_v55, %v2084_v55  ;;  %v2164_v63 = vsel %vm821_vm5, %v2154_v62, 0 }
0x136c   : > { %v3700_v54 = vpop.eup %3699 }
0x136d   : > { %v2082_v56 = vmul.f32 %v3700_v54, %v3694_v10 }
0x136e   : > { %v2152_v0 = vpop.permute.xlu1 %2151 }
0x136f   : > { %v2085_v58 = vpack.c.bf16 %v2083_v57, %v2082_v56 }
0x1371   : > { %3435 = vmatprep.mubr.msk.bf16.mxu1 %vm885_vm6, %v2085_v58 }
0x1372   : > { %3436 = vmatmul.mubr.msk.bf16.vlgmr.msra.gmra.mxu1 %vm885_vm6, %v2086_v59 }
0x1373   : > { %3440 = vmatpush3.bf16.xpose.msra.mxu1 %v2167_v61  ;;  %3443 = vmatprep.mubr.msk.bf16.mxu1 %vm821_vm5, %v2150_v60 }
0x1374   : > { %3526 = vmatprep.subr.msk.bf16.mxu1 %vm821_vm5, %v2154_v62 }
0x137b   : > { %3442 = vmatpush3.bf16.xpose.msra.mxu1 %v2164_v63 }
0x1382   : > { %3444 = vmatmul.mubr.msk.bf16.vlgmr.msra.gmra.mxu1 %vm821_vm5, %v2152_v0 }
0x1432   : > { %v4398_v1 = vpop.f32.mrf.mxu1 }
0x1434   : > { %v4400_v4 = vpop.f32.mrf.mxu1 }
0x1436   : > { %v3438_v8 = vpop.f32.mrf.mxu1 }
0x1438   : > { %v4402_v11 = vpop.f32.mrf.mxu1 }
0x1442   : > { %v3445_v12 = vpop.f32.mrf.mxu1 }
0x1443   : > { %v2219_v17 = vmul.f32 0.35355338, %v3445_v12 }
0x1444   : > { %v2203_v14 = vpop.f32.mrf.mxu1 }
0x1445   : > { %v2217_v15 = vmul.f32 0.35355338, %v2203_v14  ;;  %v2226_v37 = vsel %vm892_vm7, %v2219_v17, -inf }
0x1446   : > { %v3446_v16 = vpop.f32.mrf.mxu1 }
0x1447   : > { %v2220_v5 = vsel %vm885_vm6, %v2217_v15, -inf }
0x1448   : > { %2221 = vmax.xlane.f32.xlu0 %v2220_v5  ;;  %v2206_v22 = vpop.f32.mrf.mxu1 }
0x1449   : > { %v2218_v35 = vmul.f32 0.35355338, %v2206_v22 }
0x144b   : > { %v2223_v23 = vsel %vm885_vm6, %v2218_v35, -inf }
0x144c   : > { %2227 = vmax.xlane.f32.xlu0 %v2226_v37  ;;  %2224 = vmax.xlane.f32.xlu1 %v2223_v23 }
0x14d1   : > { %v2222_v24 = vpop.xlane.xlu0 %2221 }
0x14d2   : > { %v2229_v2 = vsub.f32 %v2217_v15, %v2222_v24 }
0x14d4   : > { %v2232_v27 = vmul.f32 1.442695, %v2229_v2 }
0x14d5   : > { %v2228_v40 = vpop.xlane.xlu0 %2227  ;;  %v2225_v28 = vpop.xlane.xlu1 %2224 }
0x14d6   : > { %3701 = vpow2.f32 %v2232_v27  ;;  %v2231_v29 = vsub.f32 %v2219_v17, %v2228_v40  ;;  %v2230_v32 = vsub.f32 %v2218_v35, %v2225_v28 }
0x14d8   : > { %v2236_v33 = vmul.f32 1.442695, %v2231_v29  ;;  %v2234_v36 = vmul.f32 1.442695, %v2230_v32 }
0x14da   : > { %3703 = vpow2.f32 %v2236_v33 }
0x14db   : > { %3705 = vpow2.f32 %v2234_v36 }
0x14e3   : > { %v3702_v38 = vpop.eup %3701 }
0x14e4   : > { %v2238_v39 = vsel %vm885_vm6, %v3702_v38, 0.0 }
0x14e5   : > { %2239 = vadd.xlane.f32.xlu0 %v2238_v39 }
0x14e7   : > { %v3704_v25 = vpop.eup %3703 }
0x14e8   : > { %v3706_v30 = vpop.eup %3705  ;;  %v2244_v41 = vsel %vm892_vm7, %v3704_v25, 0.0 }
0x14e9   : > { %2245 = vadd.xlane.f32.xlu1 %v2244_v41  ;;  %v2241_v26 = vsel %vm885_vm6, %v3706_v30, 0.0 }
0x14ea   : > { %2242 = vadd.xlane.f32.xlu0 %v2241_v26 }
0x14fa   : > { %2255 = vrot.lane.b32.xlu1 %v4359_v19, %s4695_s21 }
0x14fe   : > { %2323 = vrot.lane.b32.xlu1 %v4355_v13, %s4696_s25 }
0x1500   : > { %2257 = vrot.lane.b32.xlu0 %v4355_v13, %s4695_s21  ;;  %s3755_s21 = sshll.u32 %s3830_s0, 4  ;;  %s3756_s21 = int_to_ptr.vmem [resolvable:$false] %s3755_s21 }
0x1502   : > { %2321 = vrot.lane.b32.xlu1 %v4359_v19, %s4696_s25 }
0x1504   : > { %2317 = vrot.lane.b32.xlu0 %v4359_v19, %s4697_s26 }
0x1506   : > { %2319 = vrot.lane.b32.xlu1 %v4355_v13, %s4697_s26  ;;  %s3197_s26 = sshll.u32 %s3952_s1, 4  ;;  %s3757_s1 = scalar_lea.vmem %s3756_s21, 32 }
0x156e   : > { %v2240_v42 = vpop.xlane.xlu0 %2239 }
0x156f   : > { %3707 = vrcp.f32 %v2240_v42 }
0x1572   : > { %v2246_v43 = vpop.xlane.xlu1 %2245 }
0x1573   : > { %v2243_v31 = vpop.xlane.xlu0 %2242  ;;  %3709 = vrcp.f32 %v2246_v43 }
0x1574   : > { %3711 = vrcp.f32 %v2243_v31 }
0x1576   : > { %v2256_v20 = vpop.permute.xlu1 %2255 }
0x1577   : > { %v2258_v7 = vpop.permute.xlu0 %2257 }
0x1578   : > { %v2267_v9 = vand.u32 %v2258_v7, %v4128_v34 }
0x157a   : > { %3447 = vmatprep.subr.bf16.mxu0 %v2267_v9  ;;  %v2324_v10 = vpop.permute.xlu1 %2323 }
0x157b   : > { %3448 = vmatpush3.bf16.msra.mxu0 %v2267_v9  ;;  %v2318_v51 = vpop.permute.xlu0 %2317  ;;  %v2335_v52 = vsel %vm821_vm5, %v2324_v10, 0 }
0x157c   : > { %3449 = vmatprep.subr.bf16.mxu0 %v2256_v20  ;;  %v3708_v6 = vpop.eup %3707 }
0x157d   : > { %v2250_v47 = vmul.f32 %v3708_v6, %v3702_v38 }
0x157e   : > { %v2322_v53 = vpop.permute.xlu1 %2321 }
0x157f   : > { %3450 = vmatpush3.bf16.msra.mxu0 %v2256_v20  ;;  %v2332_v54 = vsel %vm821_vm5, %v2322_v53, 0 }
0x1580   : > { %v3710_v44 = vpop.eup %3709  ;;  %3527 = vmatprep.subr.msk.bf16.mxu0 %vm821_vm5, %v2324_v10 }
0x1581   : > { %v3712_v45 = vpop.eup %3711  ;;  %v2252_v46 = vmul.f32 %v3710_v44, %v3704_v25 }
0x1582   : > { %v2251_v48 = vmul.f32 %v3712_v45, %v3706_v30  ;;  %v2320_v55 = vpop.permute.xlu1 %2319 }
0x1583   : > { %v2254_v49 = vpack.c.bf16 %v2252_v46, %v2252_v46 }
0x1584   : > { %v2253_v50 = vpack.c.bf16 %v2251_v48, %v2250_v47 }
0x1586   : > { %3451 = vmatprep.mubr.msk.bf16.mxu0 %vm885_vm6, %v2253_v50 }
0x1587   : > { %3452 = vmatmul.mubr.msk.bf16.vlgmr.msra.gmra.mxu0 %vm885_vm6, %v2254_v49 }
0x1588   : > { %3456 = vmatpush3.bf16.xpose.msra.mxu0 %v2335_v52  ;;  %3459 = vmatprep.mubr.msk.bf16.mxu0 %vm821_vm5, %v2318_v51 }
0x1589   : > { %3528 = vmatprep.subr.msk.bf16.mxu0 %vm821_vm5, %v2322_v53 }
0x1590   : > { %3458 = vmatpush3.bf16.xpose.msra.mxu0 %v2332_v54 }
0x1597   : > { %3460 = vmatmul.mubr.msk.bf16.vlgmr.msra.gmra.mxu0 %vm821_vm5, %v2320_v55 }
0x1647   : > { %v4431_v56 = vpop.f32.mrf.mxu0 }
0x1649   : > { %v4433_v57 = vpop.f32.mrf.mxu0 }
0x164b   : > { %v3454_v58 = vpop.f32.mrf.mxu0 }
0x164d   : > { %v4435_v59 = vpop.f32.mrf.mxu0 }
0x164e   : > { %v3602_v60 = vpack.i.bf16 %v4435_v59, %v4433_v57 }
0x1657   : > { %v3461_v61 = vpop.f32.mrf.mxu0 }
0x1658   : > { %v2387_v8 = vmul.f32 0.35355338, %v3461_v61 }
0x1659   : > { %v2371_v62 = vpop.f32.mrf.mxu0 }
0x165a   : > { %v2385_v63 = vmul.f32 0.35355338, %v2371_v62  ;;  %v2394_v16 = vsel %vm892_vm7, %v2387_v8, -inf }
0x165b   : > { %v3462_v0 = vpop.f32.mrf.mxu0 }
0x165c   : > { %v2388_v12 = vsel %vm885_vm6, %v2385_v63, -inf }
0x165d   : > { %2389 = vmax.xlane.f32.xlu0 %v2388_v12  ;;  %v2374_v14 = vpop.f32.mrf.mxu0 }
0x165e   : > { %v2386_v15 = vmul.f32 0.35355338, %v2374_v14 }
0x1660   : > { %v2391_v17 = vsel %vm885_vm6, %v2386_v15, -inf }
0x1661   : > { %2395 = vmax.xlane.f32.xlu0 %v2394_v16  ;;  %2392 = vmax.xlane.f32.xlu1 %v2391_v17 }
0x16e6   : > { %v2390_v5 = vpop.xlane.xlu0 %2389 }
0x16e7   : > { %v2397_v22 = vsub.f32 %v2385_v63, %v2390_v5 }
0x16e9   : > { %v2400_v35 = vmul.f32 1.442695, %v2397_v22 }
0x16ea   : > { %v2396_v37 = vpop.xlane.xlu0 %2395  ;;  %v2393_v23 = vpop.xlane.xlu1 %2392 }
0x16eb   : > { %3713 = vpow2.f32 %v2400_v35  ;;  %v2399_v24 = vsub.f32 %v2387_v8, %v2396_v37  ;;  %v2398_v2 = vsub.f32 %v2386_v15, %v2393_v23 }
0x16ed   : > { %v2404_v27 = vmul.f32 1.442695, %v2399_v24  ;;  %v2402_v40 = vmul.f32 1.442695, %v2398_v2 }
0x16ef   : > { %3715 = vpow2.f32 %v2404_v27 }
0x16f0   : > { %3717 = vpow2.f32 %v2402_v40 }
0x16f8   : > { %v3714_v28 = vpop.eup %3713 }
0x16f9   : > { %v2406_v29 = vsel %vm885_vm6, %v3714_v28, 0.0 }
0x16fa   : > { %2407 = vadd.xlane.f32.xlu0 %v2406_v29 }
0x16fc   : > { %v3716_v32 = vpop.eup %3715 }
0x16fd   : > { %v3718_v33 = vpop.eup %3717  ;;  %v2412_v36 = vsel %vm892_vm7, %v3716_v32, 0.0 }
0x16fe   : > { %2413 = vadd.xlane.f32.xlu1 %v2412_v36  ;;  %v2409_v38 = vsel %vm885_vm6, %v3718_v33, 0.0 }
0x16ff   : > { %2410 = vadd.xlane.f32.xlu0 %v2409_v38 }
0x170f   : > { %2423 = vrot.lane.b32.xlu1 %v4359_v19, %s4698_s23 }
0x1713   : > { %2491 = vrot.lane.b32.xlu1 %v4355_v13, %s4699_s28 }
0x1715   : > { %2425 = vrot.lane.b32.xlu0 %v4355_v13, %s4698_s23 }
0x1717   : > { %2489 = vrot.lane.b32.xlu1 %v4359_v19, %s4699_s28 }
0x1719   : > { %2485 = vrot.lane.b32.xlu0 %v4359_v19, %s4700_s24 }
0x171b   : > { %2487 = vrot.lane.b32.xlu1 %v4355_v13, %s4700_s24 }
0x1783   : > { %v2408_v39 = vpop.xlane.xlu0 %2407 }
0x1784   : > { %3719 = vrcp.f32 %v2408_v39 }
0x1787   : > { %v2414_v25 = vpop.xlane.xlu1 %2413 }
0x1788   : > { %v2411_v30 = vpop.xlane.xlu0 %2410  ;;  %3721 = vrcp.f32 %v2414_v25 }
0x1789   : > { %3723 = vrcp.f32 %v2411_v30 }
0x178b   : > { %v2424_v42 = vpop.permute.xlu1 %2423 }
0x178c   : > { %v2426_v41 = vpop.permute.xlu0 %2425 }
0x178d   : > { %v2435_v26 = vand.u32 %v2426_v41, %v4128_v34 }
0x178f   : > { %3463 = vmatprep.subr.bf16.mxu1 %v2435_v26  ;;  %v2492_v31 = vpop.permute.xlu1 %2491 }
0x1790   : > { %3464 = vmatpush3.bf16.msra.mxu1 %v2435_v26  ;;  %v2486_v46 = vpop.permute.xlu0 %2485  ;;  %v2503_v47 = vsel %vm821_vm5, %v2492_v31, 0 }
0x1791   : > { %3465 = vmatprep.subr.bf16.mxu1 %v2424_v42  ;;  %v3720_v43 = vpop.eup %3719 }
0x1792   : > { %v2418_v6 = vmul.f32 %v3720_v43, %v3714_v28 }
0x1793   : > { %v2490_v48 = vpop.permute.xlu1 %2489 }
0x1794   : > { %3466 = vmatpush3.bf16.msra.mxu1 %v2424_v42  ;;  %v2500_v49 = vsel %vm821_vm5, %v2490_v48, 0 }
0x1795   : > { %v3722_v7 = vpop.eup %3721  ;;  %3529 = vmatprep.subr.msk.bf16.mxu1 %vm821_vm5, %v2492_v31  ;;  %v3168_v31 = vld [vmem:[%s4636_s9 + $0x38] sm:$0xff] }
0x1796   : > { %v3724_v9 = vpop.eup %3723  ;;  %v2420_v20 = vmul.f32 %v3722_v7, %v3716_v32 }
0x1797   : > { %v2419_v10 = vmul.f32 %v3724_v9, %v3718_v33  ;;  %v2488_v50 = vpop.permute.xlu1 %2487  ;;  %v3165_v9 = vld [vmem:[%s4636_s9 + $0x20] sm:$0xff] }
0x1798   : > { %v2422_v44 = vpack.c.bf16 %v2420_v20, %v2420_v20  ;;  %v3166_v20 = vld [vmem:[%s4636_s9 + $0x28] sm:$0xff] }
0x1799   : > { %v2421_v45 = vpack.c.bf16 %v2419_v10, %v2418_v6  ;;  %v2705_v6 = vpack.c.bf16 %v3166_v20, %v3165_v9  ;;  %v3178_v9 = vld [vmem:[%s4640_s13 + $0x28] sm:$0xff] }
0x179b   : > { %3467 = vmatprep.mubr.msk.bf16.mxu1 %vm885_vm6, %v2421_v45 }
0x179c   : > { %3468 = vmatmul.mubr.msk.bf16.vlgmr.msra.gmra.mxu1 %vm885_vm6, %v2422_v44 }
0x179d   : > { %3472 = vmatpush3.bf16.xpose.msra.mxu1 %v2503_v47  ;;  %3475 = vmatprep.mubr.msk.bf16.mxu1 %vm821_vm5, %v2486_v46 }
0x179e   : > { %3530 = vmatprep.subr.msk.bf16.mxu1 %vm821_vm5, %v2490_v48 }
0x17a5   : > { %3474 = vmatpush3.bf16.xpose.msra.mxu1 %v2500_v49 }
0x17ac   : > { %3476 = vmatmul.mubr.msk.bf16.vlgmr.msra.gmra.mxu1 %vm821_vm5, %v2488_v50 }
0x185c   : > { %v3469_v51 = vpop.f32.mrf.mxu1 }
0x185e   : > { %v2471_v52 = vpop.f32.mrf.mxu1 }
0x1860   : > { %v3470_v53 = vpop.f32.mrf.mxu1 }
0x1862   : > { %v2474_v54 = vpop.f32.mrf.mxu1 }
0x1863   : > { %v3607_v55 = vpack.i.bf16 %v2474_v54, %v2471_v52 }
0x186c   : > { %v3477_v58 = vpop.f32.mrf.mxu1 }
0x186d   : > { %v2555_v0 = vmul.f32 0.35355338, %v3477_v58 }
0x186e   : > { %v2539_v61 = vpop.f32.mrf.mxu1 }
0x186f   : > { %v2553_v62 = vmul.f32 0.35355338, %v2539_v61  ;;  %v2562_v15 = vsel %vm892_vm7, %v2555_v0, -inf }
0x1870   : > { %v3478_v63 = vpop.f32.mrf.mxu1 }
0x1871   : > { %v2556_v8 = vsel %vm885_vm6, %v2553_v62, -inf }
0x1872   : > { %2557 = vmax.xlane.f32.xlu0 %v2556_v8  ;;  %v2542_v12 = vpop.f32.mrf.mxu1 }
0x1873   : > { %v2554_v14 = vmul.f32 0.35355338, %v2542_v12 }
0x1875   : > { %v2559_v16 = vsel %vm885_vm6, %v2554_v14, -inf }
0x1876   : > { %2563 = vmax.xlane.f32.xlu0 %v2562_v15  ;;  %2560 = vmax.xlane.f32.xlu1 %v2559_v16 }
0x18fb   : > { %v2558_v17 = vpop.xlane.xlu0 %2557 }
0x18fc   : > { %v2565_v5 = vsub.f32 %v2553_v62, %v2558_v17 }
0x18fe   : > { %v2568_v22 = vmul.f32 1.442695, %v2565_v5 }
0x18ff   : > { %v2564_v35 = vpop.xlane.xlu0 %2563  ;;  %v2561_v37 = vpop.xlane.xlu1 %2560 }
0x1900   : > { %3725 = vpow2.f32 %v2568_v22  ;;  %v2567_v23 = vsub.f32 %v2555_v0, %v2564_v35  ;;  %v2566_v24 = vsub.f32 %v2554_v14, %v2561_v37 }
0x1902   : > { %v2572_v2 = vmul.f32 1.442695, %v2567_v23  ;;  %v2570_v27 = vmul.f32 1.442695, %v2566_v24  ;;  %v3172_v24 = vld [vmem:[%s4637_s10 + $0x1] ss:$0 sm:$0xff] }
0x1904   : > { %3727 = vpow2.f32 %v2572_v2 }
0x1905   : > { %3729 = vpow2.f32 %v2570_v27 }
0x190d   : > { %v3726_v40 = vpop.eup %3725 }
0x190e   : > { %v2574_v28 = vsel %vm885_vm6, %v3726_v40, 0.0 }
0x190f   : > { %2575 = vadd.xlane.f32.xlu0 %v2574_v28 }
0x1911   : > { %v3728_v29 = vpop.eup %3727 }
0x1912   : > { %v3730_v32 = vpop.eup %3729  ;;  %v2580_v33 = vsel %vm892_vm7, %v3728_v29, 0.0 }
0x1913   : > { %2581 = vadd.xlane.f32.xlu1 %v2580_v33  ;;  %v2577_v36 = vsel %vm885_vm6, %v3730_v32, 0.0 }
0x1914   : > { %2578 = vadd.xlane.f32.xlu0 %v2577_v36 }
0x1924   : > { %2591 = vrot.lane.b32.xlu1 %v4359_v19, %s4701_s20 }
0x1928   : > { %3603 = vrot.lane.b32.xlu1 %v3602_v60, %s4702_s2 }
0x192a   : > { %2593 = vrot.lane.b32.xlu0 %v4355_v13, %s4701_s20  ;;  %s4704_s20 = smov 24  }
0x192c   : > { %2660 = vrot.lane.b32.xlu1 %v4431_v56, %s4702_s2  ;;  %s3040_s2 = scalar_lea.hbm %s4646_s19, %s3197_s26 }
0x192e   : > { %3608 = vrot.lane.b32.xlu0 %v3607_v55, %s4703_s22 }
0x1930   : > { %2672 = vrot.lane.b32.xlu1 %v3469_v51, %s4703_s22  ;;  %s593_s22 = sand.u32 1, %s3803_s30  }
0x1931   : > { %s594_s23 = scalar_lea.vmem [#allocation2], %s593_s22  ;;  %s3030_s4 = scalar_lea.sflag [#allocation3], %s593_s22 }
0x1932   : > { %s3042_s28 = sshll.u32 %s594_s23, 4  ;;  %s3043_s28 = int_to_ptr.vmem [resolvable:$true] %s3042_s28 }
0x1933   : > { %s3751_s27 = scalar_lea.vmem %s3043_s28, 16  ;;  %p3758_p0 = scmp.lt.s32.totalorder %s3043_s28, %s3756_s21 }
0x1934   : > { %p3752_p11 = scmp.ne.s32.totalorder %s3043_s28, %s3751_s27  ;;  %p3759_p1 = scmp.lt.s32.totalorder %s3757_s1, %s3751_s27 }
0x1936   : > { %p3753_p12 = pnand %p3752_p11, %p3969_p5  ;;  %p3760_p2 = por %p3759_p1, %p3758_p0 }
0x1938   : > { %p3754_p13 = pneg %p3753_p12 }
0x193a   : > { %p3761_p3 = pnand %p3760_p2, %p3754_p13 }
0x1998   : > { %v2576_v38 = vpop.xlane.xlu0 %2575 }
0x1999   : > { %3731 = vrcp.f32 %v2576_v38 }
0x199c   : > { %v2582_v39 = vpop.xlane.xlu1 %2581 }
0x199d   : > { %v2579_v25 = vpop.xlane.xlu0 %2578  ;;  %3733 = vrcp.f32 %v2582_v39 }
0x199e   : > { %3735 = vrcp.f32 %v2579_v25 }
0x19a0   : > { %v2592_v59 = vpop.permute.xlu1 %2591 }
0x19a1   : > { %v2594_v19 = vpop.permute.xlu0 %2593 }
0x19a2   : > { %v2603_v57 = vand.u32 %v2594_v19, %v4128_v34  ;;  %v3167_v34 = vld [vmem:[%s4636_s9 + $0x30] sm:$0xff] }
0x19a3   : > { %v2706_v7 = vpack.c.bf16 %v3168_v31, %v3167_v34  ;;  %v3180_v34 = vld [vmem:[%s4640_s13 + $0x38] sm:$0xff] }
0x19a4   : > { %3479 = vmatprep.subr.bf16.mxu0 %v2603_v57  ;;  %v3604_v48 = vpop.permute.xlu1 %3603 }
0x19a5   : > { %3480 = vmatpush3.bf16.msra.mxu0 %v2603_v57  ;;  %v3609_v50 = vpop.permute.xlu0 %3608  ;;  %v3606_v51 = vunpack.i.h.bf16 %v3604_v48  ;;  %v3605_v52 = vunpack.i.l.bf16 %v3604_v48 }
0x19a6   : > { %3481 = vmatprep.subr.bf16.mxu0 %v2592_v59  ;;  %v3732_v13 = vpop.eup %3731  ;;  %v3611_v54 = vunpack.i.h.bf16 %v3609_v50  ;;  %v3610_v55 = vunpack.i.l.bf16 %v3609_v50 }
0x19a7   : > { %v2586_v41 = vmul.f32 %v3732_v13, %v3726_v40  ;;  %v2690_v58 = vsel %vm821_vm5, %v4402_v11, %v3606_v51  ;;  %v2689_v61 = vsel %vm821_vm5, %v4400_v4, %v3605_v52 }
0x19a8   : > { %v2661_v49 = vpop.permute.xlu1 %2660  ;;  %v2692_v16 = vsel %vm1529_vm8, %v2689_v61, %v3610_v55  ;;  %v2693_v17 = vsel %vm1529_vm8, %v2690_v58, %v3611_v54 }
0x19a9   : > { %3482 = vmatpush3.bf16.msra.mxu0 %v2592_v59  ;;  %v2691_v63 = vsel %vm821_vm5, %v4398_v1, %v2661_v49 }
0x19aa   : > { %v3734_v56 = vpop.eup %3733  ;;  %3487 = vmatprep.subr.bf16.mxu0 %v2706_v7 }
0x19ab   : > { %v3736_v60 = vpop.eup %3735  ;;  %v2588_v30 = vmul.f32 %v3734_v56, %v3728_v29 }
0x19ac   : > { %v2587_v26 = vmul.f32 %v3736_v60, %v3730_v32  ;;  %v2673_v53 = vpop.permute.xlu1 %2672 }
0x19ad   : > { %v2590_v42 = vpack.c.bf16 %v2588_v30, %v2588_v30  ;;  %v2694_v8 = vsel %vm1529_vm8, %v2691_v63, %v2673_v53  ;;  %v3175_v53 = vld [vmem:[%s4638_s11 + $0x1] ss:$0 sm:$0xff] }
0x19ae   : > { %v2589_v43 = vpack.c.bf16 %v2587_v26, %v2586_v41  ;;  %v3176_v63 = vld [vmem:[%s4639_s12 + $0x1] ss:$0 sm:$0xff] }
0x19b0   : > { %3483 = vmatprep.mubr.msk.bf16.mxu0 %vm885_vm6, %v2589_v43  ;;  %v3179_v43 = vld [vmem:[%s4640_s13 + $0x30] sm:$0xff] }
0x19b1   : > { %3484 = vmatmul.mubr.msk.bf16.vlgmr.msra.gmra.mxu0 %vm885_vm6, %v2590_v42  ;;  %v2844_v31 = vpack.c.bf16 %v3180_v34, %v3179_v43 }
0x19b2   : > { %3488 = vmatpush3.bf16.msra.mxu0 %v2706_v7  ;;  %v3177_v7 = vld [vmem:[%s4640_s13 + $0x20] sm:$0xff] }
0x19b3   : > { %3489 = vmatprep.subr.bf16.mxu0 %v2705_v6  ;;  %3495 = vmatprep.subr.bf16.mxu1 %v2844_v31  ;;  %v2843_v20 = vpack.c.bf16 %v3178_v9, %v3177_v7 }
0x19b4   : > { %3496 = vmatpush3.bf16.msra.mxu1 %v2844_v31 }
0x19b5   : > { %3497 = vmatprep.subr.bf16.mxu1 %v2843_v20 }
0x19b6   : > { %3490 = vmatpush3.bf16.msra.mxu0 %v2705_v6 }
0x19b8   : > { %3498 = vmatpush3.bf16.msra.mxu1 %v2843_v20 }
0x1a71   : > { %v3485_v10 = vpop.f32.mrf.mxu0 }
0x1a72   : > { %2684 = vrot.lane.b32.xlu1 %v3485_v10, %s4704_s20 }
0x1a73   : > { %v2639_v44 = vpop.f32.mrf.mxu0 }
0x1a75   : > { %v3486_v45 = vpop.f32.mrf.mxu0 }
0x1a77   : > { %v2642_v46 = vpop.f32.mrf.mxu0 }
0x1a78   : > { %v3612_v47 = vpack.i.bf16 %v2642_v46, %v2639_v44 }
0x1a7a   : > { %3613 = vrot.lane.b32.xlu0 %v3612_v47, %s4704_s20 }
0x1ae4   : > { %v2685_v62 = vpop.permute.xlu1 %2684 }
0x1ae5   : > { %v2697_v15 = vsel %vm1533_vm9, %v2694_v8, %v2685_v62 }
0x1ae6   : > { %v2704_v22 = vpack.c.bf16 %v2697_v15, %v2697_v15 }
0x1aec   : > { %v3614_v0 = vpop.permute.xlu0 %3613 }
0x1aed   : > { %v3616_v12 = vunpack.i.h.bf16 %v3614_v0  ;;  %v3615_v14 = vunpack.i.l.bf16 %v3614_v0 }
0x1aef   : > { %v2695_v11 = vsel %vm1533_vm9, %v2692_v16, %v3615_v14  ;;  %v2696_v5 = vsel %vm1533_vm9, %v2693_v17, %v3616_v12 }
0x1af0   : > { %v2703_v4 = vpack.c.bf16 %v2696_v5, %v2695_v11  ;;  %v3191_v11 = vld [vmem:[%s4642_s15 + $0x70] sm:$0xff]  ;;  %v3192_v5 = vld [vmem:[%s4642_s15 + $0x78] sm:$0xff] }
0x1af2   : > { %3491 = vmatprep.mubr.msk.bf16.mxu0 %vm684_vm3, %v2703_v4  ;;  %v2948_v4 = vpack.c.bf16 %v3192_v5, %v3191_v11 }
0x1af3   : > { %3492 = vmatmul.mubr.msk.bf16.vlgmr.msra.gmra.mxu0 %vm684_vm3, %v2704_v22  ;;  %v3189_v22 = vld [vmem:[%s4642_s15 + $0x60] sm:$0xff] }
0x1af4   : > { %3503 = vmatprep.subr.bf16.mxu0 %v2948_v4 }
0x1af5   : > { %3504 = vmatpush3.bf16.msra.mxu0 %v2948_v4  ;;  %v3011_v4 = vld [vmem:[%s4644_s17] sm:$0x1] }
0x1bb3   : > { %v3493_v1 = vpop.f32.mrf.mxu0 }
0x1bb4   : > { %v2763_v37 = vadd.f32 %v3493_v1, %v4315_v21  ;;  %v3190_v1 = vld [vmem:[%s4642_s15 + $0x68] sm:$0xff] }
0x1bb5   : > { %v2747_v35 = vpop.f32.mrf.mxu0 }
0x1bb6   : > { %v2761_v23 = vadd.f32 %v2747_v35, %v4313_v18  ;;  %v2774_v28 = vadd.f32 %v3172_v24, %v2763_v37  ;;  %v2947_v35 = vpack.c.bf16 %v3190_v1, %v3189_v22  ;;  %v3187_v37 = vld [vmem:[%s4642_s15 + $0x50] sm:$0xff]  ;;  %v3012_v1 = vld [vmem:[%s4645_s18] sm:$0x1] }
0x1bb7   : > { %v3494_v2 = vpop.f32.mrf.mxu0 }
0x1bb8   : > { %v4520_v27 = vadd.f32 %v3172_v24, %v2761_v23  ;;  %v2785_v21 = vsel %vm691_vm4, %v2774_v28, 0.0  ;;  %3505 = vmatprep.subr.bf16.mxu0 %v2947_v35  ;;  %v3188_v23 = vld [vmem:[%s4642_s15 + $0x58] sm:$0xff]  ;;  %v3185_v2 = vld [vmem:[%s4642_s15 + $0x40] sm:$0xff] }
0x1bb9   : > { %v2750_v40 = vpop.f32.mrf.mxu0  ;;  %3506 = vmatpush3.bf16.msra.mxu0 %v2947_v35 }
0x1bba   : > { %v2762_v29 = vadd.f32 %v2750_v40, %v4320_v3  ;;  %v2779_v32 = vsel %vm684_vm3, %v4520_v27, 0.0  ;;  %v3186_v40 = vld [vmem:[%s4642_s15 + $0x48] sm:$0xff] }
0x1bbb   : > { %2780 = vadd.xlane.f32.xlu0 %v2779_v32 }
0x1bbc   : > { %v2773_v33 = vadd.f32 %v3172_v24, %v2762_v29  ;;  %v2946_v24 = vpack.c.bf16 %v3188_v23, %v3187_v37  ;;  %v3182_v29 = vld [vmem:[%s4641_s14 + $0x1] ss:$0 sm:$0xff] }
0x1bbe   : > { %v2782_v18 = vsel %vm684_vm3, %v2773_v33, 0.0  ;;  %3507 = vmatprep.subr.bf16.mxu0 %v2946_v24 }
0x1bbf   : > { %2786 = vadd.xlane.f32.xlu0 %v2785_v21  ;;  %2783 = vadd.xlane.f32.xlu1 %v2782_v18 }
0x1bc0   : > { %3508 = vmatpush3.bf16.msra.mxu0 %v2946_v24 }
0x1c44   : > { %v2781_v36 = vpop.xlane.xlu0 %2780 }
0x1c45   : > { %v2788_v38 = vmul.f32 0.03125, %v2781_v36 }
0x1c47   : > { %v2791_v39 = vsub.f32 %v4520_v27, %v2788_v38 }
0x1c48   : > { %v2787_v25 = vpop.xlane.xlu0 %2786  ;;  %v2784_v19 = vpop.xlane.xlu1 %2783 }
0x1c49   : > { %v2790_v57 = vmul.f32 0.03125, %v2787_v25  ;;  %v2789_v59 = vmul.f32 0.03125, %v2784_v19  ;;  %v2794_v3 = vmul.f32 %v2791_v39, %v2791_v39 }
0x1c4b   : > { %v2793_v13 = vsub.f32 %v2774_v28, %v2790_v57  ;;  %v2792_v56 = vsub.f32 %v2773_v33, %v2789_v59  ;;  %v2797_v60 = vsel %vm684_vm3, %v2794_v3, 0.0  ;;  %v2945_v28 = vpack.c.bf16 %v3186_v40, %v3185_v2 }
0x1c4c   : > { %2798 = vadd.xlane.f32.xlu0 %v2797_v60 }
0x1c4d   : > { %v2796_v30 = vmul.f32 %v2793_v13, %v2793_v13  ;;  %v2795_v41 = vmul.f32 %v2792_v56, %v2792_v56  ;;  %3509 = vmatprep.subr.bf16.mxu0 %v2945_v28 }
0x1c4e   : > { %3510 = vmatpush3.bf16.msra.mxu0 %v2945_v28 }
0x1c4f   : > { %v2803_v26 = vsel %vm691_vm4, %v2796_v30, 0.0  ;;  %v2800_v42 = vsel %vm684_vm3, %v2795_v41, 0.0 }
0x1c50   : > { %2804 = vadd.xlane.f32.xlu1 %v2803_v26  ;;  %2801 = vadd.xlane.f32.xlu0 %v2800_v42 }
0x1cd5   : > { %v2799_v6 = vpop.xlane.xlu0 %2798 }
0x1cd6   : > { %v2806_v10 = vmul.f32 0.03125, %v2799_v6 }
0x1cd8   : > { %v2809_v44 = vadd.f32 1e-05, %v2806_v10 }
0x1cd9   : > { %v2802_v45 = vpop.xlane.xlu0 %2801  ;;  %v2805_v46 = vpop.xlane.xlu1 %2804 }
0x1cda   : > { %3737 = vrsqrt.f32 %v2809_v44  ;;  %v2807_v47 = vmul.f32 0.03125, %v2802_v45  ;;  %v2808_v48 = vmul.f32 0.03125, %v2805_v46 }
0x1cdc   : > { %v2810_v49 = vadd.f32 1e-05, %v2807_v47  ;;  %v2811_v50 = vadd.f32 1e-05, %v2808_v48 }
0x1cde   : > { %3739 = vrsqrt.f32 %v2810_v49 }
0x1cdf   : > { %3741 = vrsqrt.f32 %v2811_v50 }
0x1ce7   : > { %v3738_v51 = vpop.eup %3737 }
0x1ce8   : > { %v2815_v52 = vmul.f32 %v3738_v51, %v2791_v39 }
0x1cea   : > { %v2824_v61 = vmul.f32 %v3175_v53, %v2815_v52 }
0x1ceb   : > { %v3740_v54 = vpop.eup %3739 }
0x1cec   : > { %v3742_v55 = vpop.eup %3741  ;;  %v2816_v58 = vmul.f32 %v3740_v54, %v2792_v56  ;;  %v2833_v12 = vadd.f32 %v3176_v63, %v2824_v61 }
0x1ced   : > { %v2817_v62 = vmul.f32 %v3742_v55, %v2793_v13  ;;  %v3196_v55 = vld [vmem:[%s4643_s16 + $0x1] ss:$0 sm:$0xff] }
0x1cee   : > { %v2825_v0 = vmul.f32 %v3175_v53, %v2816_v58 }
0x1cef   : > { %v2826_v8 = vmul.f32 %v3175_v53, %v2817_v62 }
0x1cf0   : > { %v2834_v14 = vadd.f32 %v3176_v63, %v2825_v0 }
0x1cf1   : > { %v2835_v15 = vadd.f32 %v3176_v63, %v2826_v8 }
0x1cf2   : > { %v2841_v16 = vpack.c.bf16 %v2834_v14, %v2833_v12 }
0x1cf3   : > { %v2842_v17 = vpack.c.bf16 %v2835_v15, %v2835_v15 }
0x1cf4   : > { %3499 = vmatprep.mubr.msk.bf16.mxu1 %vm684_vm3, %v2841_v16 }
0x1cf5   : > { %3500 = vmatmul.mubr.msk.bf16.vlgmr.msra.gmra.mxu1 %vm684_vm3, %v2842_v17 }
0x1db5   : > { %v3501_v32 = vpop.f32.mrf.mxu1 }
0x1db6   : > { %v2902_v33 = vadd.f32 %v3501_v32, %v3182_v29 }
0x1db7   : > { %v2893_v21 = vpop.f32.mrf.mxu1 }
0x1db8   : > { %v2909_v18 = vmul.f32 %v2902_v33, %v2902_v33  ;;  %v2894_v36 = vadd.f32 %v3182_v29, %v2893_v21 }
0x1db9   : > { %v3502_v38 = vpop.f32.mrf.mxu1 }
0x1dba   : > { %v2912_v39 = vmul.f32 %v2909_v18, %v2902_v33  ;;  %v2907_v25 = vmul.f32 %v2894_v36, %v2894_v36 }
0x1dbb   : > { %v2896_v19 = vpop.f32.mrf.mxu1 }
0x1dbc   : > { %v2915_v57 = vmul.f32 0.044715, %v2912_v39  ;;  %v2910_v59 = vmul.f32 %v2907_v25, %v2894_v36  ;;  %v2897_v3 = vadd.f32 %v3182_v29, %v2896_v19 }
0x1dbe   : > { %v2918_v13 = vadd.f32 %v2915_v57, %v2902_v33  ;;  %v2913_v56 = vmul.f32 0.044715, %v2910_v59  ;;  %v2908_v60 = vmul.f32 %v2897_v3, %v2897_v3 }
0x1dc0   : > { %v2921_v30 = vmul.f32 0.7978846, %v2918_v13  ;;  %v2916_v41 = vadd.f32 %v2913_v56, %v2894_v36  ;;  %v2911_v26 = vmul.f32 %v2908_v60, %v2897_v3 }
0x1dc2   : > { %3743 = vtanh.f32 %v2921_v30  ;;  %v2919_v42 = vmul.f32 0.7978846, %v2916_v41  ;;  %v2914_v43 = vmul.f32 0.044715, %v2911_v26 }
0x1dc4   : > { %3745 = vtanh.f32 %v2919_v42  ;;  %v2917_v34 = vadd.f32 %v2914_v43, %v2897_v3 }
0x1dc6   : > { %v2920_v31 = vmul.f32 0.7978846, %v2917_v34 }
0x1dc8   : > { %3747 = vtanh.f32 %v2920_v31 }
0x1dcf   : > { %v3744_v7 = vpop.eup %3743 }
0x1dd0   : > { %v2927_v20 = vadd.f32 1.0, %v3744_v7 }
0x1dd1   : > { %v3746_v9 = vpop.eup %3745 }
0x1dd2   : > { %v2925_v6 = vadd.f32 1.0, %v3746_v9  ;;  %v2930_v44 = vmul.f32 0.5, %v2927_v20 }
0x1dd4   : > { %v2928_v45 = vmul.f32 0.5, %v2925_v6  ;;  %v2933_v48 = vmul.f32 %v2930_v44, %v2902_v33 }
0x1dd5   : > { %v3748_v10 = vpop.eup %3747 }
0x1dd6   : > { %v2926_v46 = vadd.f32 1.0, %v3748_v10  ;;  %v2931_v49 = vmul.f32 %v2928_v45, %v2894_v36  ;;  %v2944_v52 = vpack.c.bf16 %v2933_v48, %v2933_v48 }
0x1dd8   : > { %v2929_v47 = vmul.f32 0.5, %v2926_v46 }
0x1dda   : > { %v2932_v50 = vmul.f32 %v2929_v47, %v2897_v3 }
0x1ddc   : > { %v2943_v51 = vpack.c.bf16 %v2932_v50, %v2931_v49 }
0x1dde   : > { %3511 = vmatprep.mubr.msk.bf16.mxu0 %vm1781_vm10, %v2943_v51 }
0x1ddf   : > { %3512 = vmatmul.mubr.msk.bf16.vlgmr.msra.gmra.mxu0 %vm1781_vm10, %v2944_v52 }
0x1e9f   : > { %v3513_v53 = vpop.f32.mrf.mxu0 }
0x1ea1   : > { %v2989_v54 = vpop.f32.mrf.mxu0 }
0x1ea2   : > { %v3001_v58 = vadd.f32 %v2989_v54, %v4520_v27 }
0x1ea3   : > { %v3514_v61 = vpop.f32.mrf.mxu0 }
0x1ea4   : > { %v3010_v62 = vadd.f32 %v3196_v55, %v3001_v58 }
0x1ea5   : > { %v2992_v63 = vpop.f32.mrf.mxu0 }
0x1ea6   : > { %v3013_v0 = vsel %vm691_vm4, %v3010_v62, 0.0 }
0x1ea7   : > { %3014 = vadd.xlane.f32.xlu0 %v3013_v0 }
0x1f30   : > { %v3015_v8 = vpop.xlane.xlu0 %3014 }
0x1f31   : > { %v3016_v12 = vmul.f32 0.03125, %v3015_v8 }
0x1f33   : > { %v3017_v14 = vsub.f32 %v3010_v62, %v3016_v12 }
0x1f35   : > { %v3018_v15 = vmul.f32 %v3017_v14, %v3017_v14 }
0x1f37   : > { %v3019_v16 = vsel %vm691_vm4, %v3018_v15, 0.0 }
0x1f38   : > { %3020 = vadd.xlane.f32.xlu1 %v3019_v16 }
0x1fc1   : > { %v3021_v17 = vpop.xlane.xlu1 %3020 }
0x1fc2   : > { %v3022_v11 = vmul.f32 0.03125, %v3021_v17 }
0x1fc4   : > { %v3023_v5 = vadd.f32 1e-05, %v3022_v11 }
0x1fc6   : > { %3749 = vrsqrt.f32 %v3023_v5 }
0x1fd3   : > { %v3750_v27 = vpop.eup %3749 }
0x1fd4   : > { %v3025_v22 = vmul.f32 %v3750_v27, %v3017_v14 }
0x1fd6   : > { %v3026_v35 = vmul.f32 %v3025_v22, %v3011_v4 }
0x1fd8   : > { %v3027_v37 = vadd.f32 %v3026_v35, %v3012_v1 }
0x1fda   : > { %3028 = vst.msk [vmem:[%s594_s23] sm:$0x1] %vm691_vm4, %v3027_v37 }
0x1fdb   : > { %3764 = shalt.err (!%p3761_p3)
}
0x1fdc   : > { %s3765_s25 = scalar_lea.hbm %s3040_s2, 16  ;;  %s3769_s23 = scalar_lea.hbm %s4646_s19, 32 }
0x1fdd   : > { %p3766_p4 = scmp.ne.s32.totalorder %s3040_s2, %s3765_s25  ;;  %p3770_p9 = scmp.lt.s32.totalorder %s3040_s2, %s4646_s19 }
0x1fde   : > { %p3771_p10 = scmp.lt.s32.totalorder %s3769_s23, %s3765_s25 }
0x1fdf   : > { %p3767_p7 = pnand %p3766_p4, %p3969_p5 }
0x1fe0   : > { %p3772_p11 = por %p3771_p10, %p3770_p9 }
0x1fe1   : > { %p3768_p8 = pneg %p3767_p7 }
0x1fe3   : > { %p3773_p12 = pnand %p3772_p11, %p3768_p8 }
0x1fe5   : > { %3776 = shalt.err (!%p3773_p12)
}
0x1fe6   : > { %3531 = dma.vmem_to_hbm [thread:$0]  (%p3969_p5), %s3043_s28, 16, %s3040_s2, %s3030_s4  }
0x1fe7 PF: > { %s4705_s27 = sld [smem:[#allocation7_spill]] }
0x1fe8   : > { %s4706_s0 = sld [smem:[#allocation5_spill]] }
0x1fed   : > { %p3537_p13 = scmp.ge.s32.totalorder %s4705_s27, 2 }
0x1fee   : > { %s3054_s1 = sand.u32 1, %s4706_s0  }
0x1fef   : > { %p3534_p0 = pnand %p3537_p13, %p3973_p6  ;;  %s3055_s22 = scalar_lea.sflag [#allocation3], %s3054_s1 }
0x1ff1   : > { %p3535_p1 = pneg %p3534_p0 }
0x1ff3   : > { %3794 = dma.done.wait (%p3535_p1), %s3055_s22, 16  }
0x1ff4   : > { %3796 = vsyncadd (%p3535_p1), %s3055_s22, 4294967280  ;;  %s4708_s21 = sld [smem:[#allocation8_spill]]  ;;  %s4711_s0 = smov %s3803_s30 }
0x1ff5   : > { %s4709_s25 = sld [smem:[#allocation6_spill]] }
0x1ff6   : > { %s4710_s20 = sld [smem:[#allocation9_spill]] }
0x1ffa   : > { %p29_p2 = scmp.ge.s32.totalorder %s4708_s21, 4  }
0x1ffb   : > { %s4712_s30 = smov %s4709_s25 }
0x1ffc   :  { %31 = sbr.rel (!%p29_p2) target bundleno = 9 (0x9), region = 143 }
0x2001   :  { %3059 = vsyncpa [#allocation3], 1 }
0x2002   :  { %3061 = vsyncpa [#allocation3 + $0x1], 1 }

</bundles_post_ra>
